<compile_context>
chip_gen: v7x
topology: tpu7x:2x2x1
jax: 0.10.0
libtpu: 0.0.40
codegen_flags: <defaults>
</compile_context>

<pallas_src>
import math
from functools import partial

import jax
import jax.numpy as jnp
from jax.experimental import pallas as pl
from jax.experimental.pallas import tpu as pltpu


# ----------------------------------------------------------------------------
# In-kernel helpers (traced inside the fused layer kernels; values, not refs)
# ----------------------------------------------------------------------------

def _mm(x, w_ref, b_ref):
    """f32 activations (M, K) @ bf16 weight ref (K, N) + f32 bias ref (1, N).

    Operands are fed to the MXU in bf16, accumulation is f32."""
    acc = jnp.dot(x.astype(jnp.bfloat16), w_ref[...],
                  preferred_element_type=jnp.float32)
    return acc + b_ref[...]


def _layernorm(x, g_ref, b_ref, eps):
    mean = jnp.mean(x, axis=-1, keepdims=True)
    c = x - mean
    var = jnp.mean(c * c, axis=-1, keepdims=True)
    y = c * jax.lax.rsqrt(var + eps)
    return y * g_ref[...] + b_ref[...]


def _mha(q, k, v, nhead, dh, scale):
    """q: (Tq, D), k/v: (Tk, D) -> (Tq, D).  Static unroll over heads."""
    outs = []
    for h in range(nhead):
        sl = slice(h * dh, (h + 1) * dh)
        qh = q[:, sl].astype(jnp.bfloat16)
        kh = k[:, sl].astype(jnp.bfloat16)
        vh = v[:, sl].astype(jnp.bfloat16)
        s = jax.lax.dot_general(qh, kh, (((1,), (1,)), ((), ())),
                                preferred_element_type=jnp.float32) * scale
        m = jnp.max(s, axis=-1, keepdims=True)
        p = jnp.exp(s - m)
        denom = jnp.sum(p, axis=-1, keepdims=True)
        o = jnp.dot(p.astype(jnp.bfloat16), vh,
                    preferred_element_type=jnp.float32)
        # divide the (Tq, dh) output instead of the (Tq, Tk) probabilities
        outs.append(o * pl.reciprocal(denom, approx=True))
    return jnp.concatenate(outs, axis=-1)


# ----------------------------------------------------------------------------
# Fused encoder / decoder layer kernels
# ----------------------------------------------------------------------------

def _encoder_layer_kernel(x_ref,
                          wqkv_ref, bqkv_ref, wo_ref, bo_ref,
                          ln1_g_ref, ln1_b_ref,
                          ff1_w_ref, ff1_b_ref, ff2_w_ref, ff2_b_ref,
                          ln2_g_ref, ln2_b_ref,
                          o_ref, *, nhead, eps):
    x = x_ref[0].astype(jnp.float32)                      # (T, D)
    D = x.shape[1]
    dh = D // nhead
    scale = 1.0 / math.sqrt(dh)

    # self-attention (fused QKV)
    qkv = _mm(x, wqkv_ref, bqkv_ref)                      # (T, 3D)
    attn = _mha(qkv[:, :D], qkv[:, D:2 * D], qkv[:, 2 * D:], nhead, dh, scale)
    x1 = _layernorm(x + _mm(attn, wo_ref, bo_ref), ln1_g_ref, ln1_b_ref, eps)

    # feed-forward (ReLU)
    h = jnp.maximum(_mm(x1, ff1_w_ref, ff1_b_ref), 0.0)
    ff = _mm(h, ff2_w_ref, ff2_b_ref)
    out = _layernorm(x1 + ff, ln2_g_ref, ln2_b_ref, eps)

    o_ref[0] = out.astype(o_ref.dtype)


def _decoder_layer_kernel(x_ref, mem_ref,
                          sa_wqkv_ref, sa_bqkv_ref, sa_wo_ref, sa_bo_ref,
                          ln1_g_ref, ln1_b_ref,
                          ca_wq_ref, ca_bq_ref, ca_wkv_ref, ca_bkv_ref,
                          ca_wo_ref, ca_bo_ref,
                          ln2_g_ref, ln2_b_ref,
                          ff1_w_ref, ff1_b_ref, ff2_w_ref, ff2_b_ref,
                          ln3_g_ref, ln3_b_ref,
                          o_ref, *, nhead, eps):
    x = x_ref[0].astype(jnp.float32)                      # (Tt, D)
    mem = mem_ref[0].astype(jnp.float32)                  # (Ts, D)
    D = x.shape[1]
    dh = D // nhead
    scale = 1.0 / math.sqrt(dh)

    # self-attention (no causal mask: matches reference call with tgt_mask=None)
    qkv = _mm(x, sa_wqkv_ref, sa_bqkv_ref)
    attn = _mha(qkv[:, :D], qkv[:, D:2 * D], qkv[:, 2 * D:], nhead, dh, scale)
    x1 = _layernorm(x + _mm(attn, sa_wo_ref, sa_bo_ref),
                    ln1_g_ref, ln1_b_ref, eps)

    # cross-attention over encoder memory (fused K/V projection)
    q = _mm(x1, ca_wq_ref, ca_bq_ref)
    kv = _mm(mem, ca_wkv_ref, ca_bkv_ref)
    attn = _mha(q, kv[:, :D], kv[:, D:], nhead, dh, scale)
    x2 = _layernorm(x1 + _mm(attn, ca_wo_ref, ca_bo_ref),
                    ln2_g_ref, ln2_b_ref, eps)

    # feed-forward (ReLU)
    h = jnp.maximum(_mm(x2, ff1_w_ref, ff1_b_ref), 0.0)
    ff = _mm(h, ff2_w_ref, ff2_b_ref)
    out = _layernorm(x2 + ff, ln3_g_ref, ln3_b_ref, eps)

    o_ref[0] = out.astype(o_ref.dtype)


# ----------------------------------------------------------------------------
# pallas_call wrappers
# ----------------------------------------------------------------------------

def _rep_spec(arr):
    """Full-array BlockSpec, batch-invariant index_map (weight fetched once)."""
    shape = arr.shape
    nd = len(shape)
    return pl.BlockSpec(shape, lambda b, _nd=nd: (0,) * _nd)


def encoder_layer(p, x, nhead):
    B, T, D = x.shape
    weights = (p["wqkv"], p["bqkv"], p["wo"], p["bo"],
               p["ln1_g"], p["ln1_b"],
               p["ff1_w"], p["ff1_b"], p["ff2_w"], p["ff2_b"],
               p["ln2_g"], p["ln2_b"])
    in_specs = [pl.BlockSpec((1, T, D), lambda b: (b, 0, 0))]
    in_specs += [_rep_spec(w) for w in weights]
    return pl.pallas_call(
        partial(_encoder_layer_kernel, nhead=nhead, eps=1e-5),
        grid=(B,),
        in_specs=in_specs,
        out_specs=pl.BlockSpec((1, T, D), lambda b: (b, 0, 0)),
        out_shape=jax.ShapeDtypeStruct((B, T, D), x.dtype),
        compiler_params=pltpu.CompilerParams(
            dimension_semantics=("parallel",)),
    )(x, *weights)


def decoder_layer(p, x, memory, nhead):
    B, Tt, D = x.shape
    Ts = memory.shape[1]
    weights = (p["sa_wqkv"], p["sa_bqkv"], p["sa_wo"], p["sa_bo"],
               p["ln1_g"], p["ln1_b"],
               p["ca_wq"], p["ca_bq"], p["ca_wkv"], p["ca_bkv"],
               p["ca_wo"], p["ca_bo"],
               p["ln2_g"], p["ln2_b"],
               p["ff1_w"], p["ff1_b"], p["ff2_w"], p["ff2_b"],
               p["ln3_g"], p["ln3_b"])
    in_specs = [pl.BlockSpec((1, Tt, D), lambda b: (b, 0, 0)),
                pl.BlockSpec((1, Ts, D), lambda b: (b, 0, 0))]
    in_specs += [_rep_spec(w) for w in weights]
    return pl.pallas_call(
        partial(_decoder_layer_kernel, nhead=nhead, eps=1e-5),
        grid=(B,),
        in_specs=in_specs,
        out_specs=pl.BlockSpec((1, Tt, D), lambda b: (b, 0, 0)),
        out_shape=jax.ShapeDtypeStruct((B, Tt, D), x.dtype),
        compiler_params=pltpu.CompilerParams(
            dimension_semantics=("parallel",)),
    )(x, memory, *weights)


def _linear_kernel(x_ref, w_ref, b_ref, o_ref):
    acc = jnp.dot(x_ref[...].astype(jnp.bfloat16), w_ref[...],
                  preferred_element_type=jnp.float32)
    o_ref[...] = (acc + b_ref[...]).astype(o_ref.dtype)


def linear(x, w, b):
    """x: (M, K), w: (K, N) bf16, b: (1, N) -> (M, N).  Fits in VMEM whole.

    TODO(synk): at realistic vocab sizes tile N in lane-dense (multiple-of-128)
    blocks with M/N 'parallel' and K 'arbitrary'; unnecessary at vocab=60."""
    M, _ = x.shape
    N = w.shape[1]
    return pl.pallas_call(
        _linear_kernel,
        out_shape=jax.ShapeDtypeStruct((M, N), x.dtype),
    )(x, w, b)


# ----------------------------------------------------------------------------
# Forward pass (plain-JAX glue: embeddings, positional encoding, layer stack)
# ----------------------------------------------------------------------------

def transformer_forward(params, src, tgt, *, nhead):
    d_model = params["src_emb"].shape[1]          # static Python int
    B, Ts = src.shape
    Tt = tgt.shape[1]
    scale = math.sqrt(d_model)

    # embedding * sqrt(d_model) + sinusoidal positional encoding
    src_emb = params["src_emb"][src] * scale + params["pe"][:Ts][None, :, :]
    tgt_emb = params["tgt_emb"][tgt] * scale + params["pe"][:Tt][None, :, :]
    # TODO(synk): dropout (pos-encoding + in-layer) is identity (eval mode).

    mem = src_emb
    for lp in params["enc_layers"]:
        mem = encoder_layer(lp, mem, nhead)

    out = tgt_emb
    for lp in params["dec_layers"]:
        out = decoder_layer(lp, out, mem, nhead)

    logits = linear(out.reshape(B * Tt, d_model), params["fc_w"], params["fc_b"])
    return logits.reshape(B, Tt, -1)


# ----------------------------------------------------------------------------
# Deterministic parameter initialization (fused QKV / KV weights, 2-D biases,
# bf16 matmul weights, f32 biases / LN affine params)
# ----------------------------------------------------------------------------

def _bf16(x):
    return x.astype(jnp.bfloat16)


def _make_pe(max_len, d_model):
    position = jnp.arange(max_len, dtype=jnp.float32)[:, None]
    div_term = jnp.exp(jnp.arange(0, d_model, 2, dtype=jnp.float32)
                       * (-math.log(10000.0) / d_model))
    pe = jnp.zeros((max_len, d_model), jnp.float32)
    pe = pe.at[:, 0::2].set(jnp.sin(position * div_term))
    pe = pe.at[:, 1::2].set(jnp.cos(position * div_term))
    return pe


def _init_self_attn(key, d):
    kq, kk, kv, ko = jax.random.split(key, 4)
    s = 1.0 / math.sqrt(d)
    wq = jax.random.normal(kq, (d, d), jnp.float32) * s
    wk = jax.random.normal(kk, (d, d), jnp.float32) * s
    wv = jax.random.normal(kv, (d, d), jnp.float32) * s
    return {
        "wqkv": _bf16(jnp.concatenate([wq, wk, wv], axis=1)),
        "bqkv": jnp.zeros((1, 3 * d), jnp.float32),
        "wo": _bf16(jax.random.normal(ko, (d, d), jnp.float32) * s),
        "bo": jnp.zeros((1, d), jnp.float32),
    }


def _init_cross_attn(key, d):
    kq, kk, kv, ko = jax.random.split(key, 4)
    s = 1.0 / math.sqrt(d)
    wk = jax.random.normal(kk, (d, d), jnp.float32) * s
    wv = jax.random.normal(kv, (d, d), jnp.float32) * s
    return {
        "wq": _bf16(jax.random.normal(kq, (d, d), jnp.float32) * s),
        "bq": jnp.zeros((1, d), jnp.float32),
        "wkv": _bf16(jnp.concatenate([wk, wv], axis=1)),
        "bkv": jnp.zeros((1, 2 * d), jnp.float32),
        "wo": _bf16(jax.random.normal(ko, (d, d), jnp.float32) * s),
        "bo": jnp.zeros((1, d), jnp.float32),
    }


def _init_enc_layer(key, d, dff):
    k_attn, k1, k2 = jax.random.split(key, 3)
    p = dict(_init_self_attn(k_attn, d))
    p.update({
        "ln1_g": jnp.ones((1, d), jnp.float32),
        "ln1_b": jnp.zeros((1, d), jnp.float32),
        "ff1_w": _bf16(jax.random.normal(k1, (d, dff), jnp.float32)
                       / math.sqrt(d)),
        "ff1_b": jnp.zeros((1, dff), jnp.float32),
        "ff2_w": _bf16(jax.random.normal(k2, (dff, d), jnp.float32)
                       / math.sqrt(dff)),
        "ff2_b": jnp.zeros((1, d), jnp.float32),
        "ln2_g": jnp.ones((1, d), jnp.float32),
        "ln2_b": jnp.zeros((1, d), jnp.float32),
    })
    return p


def _init_dec_layer(key, d, dff):
    k_sa, k_ca, k1, k2 = jax.random.split(key, 4)
    p = {"sa_" + k: v for k, v in _init_self_attn(k_sa, d).items()}
    p.update({"ca_" + k: v for k, v in _init_cross_attn(k_ca, d).items()})
    p.update({
        "ln1_g": jnp.ones((1, d), jnp.float32),
        "ln1_b": jnp.zeros((1, d), jnp.float32),
        "ln2_g": jnp.ones((1, d), jnp.float32),
        "ln2_b": jnp.zeros((1, d), jnp.float32),
        "ff1_w": _bf16(jax.random.normal(k1, (d, dff), jnp.float32)
                       / math.sqrt(d)),
        "ff1_b": jnp.zeros((1, dff), jnp.float32),
        "ff2_w": _bf16(jax.random.normal(k2, (dff, d), jnp.float32)
                       / math.sqrt(dff)),
        "ff2_b": jnp.zeros((1, d), jnp.float32),
        "ln3_g": jnp.ones((1, d), jnp.float32),
        "ln3_b": jnp.zeros((1, d), jnp.float32),
    })
    return p


def init_params(key, src_vocab, tgt_vocab, d_model, n_enc, n_dec, dff,
                max_len=64):
    keys = jax.random.split(key, 4 + n_enc + n_dec)
    return {
        "src_emb": jax.random.normal(keys[0], (src_vocab, d_model), jnp.float32) * 0.1,
        "tgt_emb": jax.random.normal(keys[1], (tgt_vocab, d_model), jnp.float32) * 0.1,
        "pe": _make_pe(max_len, d_model),
        "enc_layers": [_init_enc_layer(keys[4 + i], d_model, dff)
                       for i in range(n_enc)],
        "dec_layers": [_init_dec_layer(keys[4 + n_enc + i], d_model, dff)
                       for i in range(n_dec)],
        "fc_w": _bf16(jax.random.normal(keys[2], (d_model, tgt_vocab), jnp.float32)
                      / math.sqrt(d_model)),
        "fc_b": jnp.zeros((1, tgt_vocab), jnp.float32),
    }


# ----------------------------------------------------------------------------
# main
# ----------------------------------------------------------------------------

if __name__ == "__main__":
    # small config consistent with the module: d_model=32, nhead=4, 3 enc / 3 dec
    src_vocab, tgt_vocab = 50, 60
    d_model, nhead, dff = 32, 4, 64
    n_enc, n_dec = 3, 3
    B, Ts, Tt = 2, 16, 8

    root = jax.random.PRNGKey(0)
    k_params, k_src, k_tgt = jax.random.split(root, 3)

    params = init_params(k_params, src_vocab, tgt_vocab, d_model,
                         n_enc, n_dec, dff)

    src = jax.random.randint(k_src, (B, Ts), 0, src_vocab, dtype=jnp.int32)
    tgt = jax.random.randint(k_tgt, (B, Tt), 0, tgt_vocab, dtype=jnp.int32)

    fwd = jax.jit(partial(transformer_forward, nhead=nhead))
    logits = fwd(params, src, tgt)
    jax.block_until_ready(logits)

    assert logits.shape == (B, Tt, tgt_vocab), logits.shape
    assert bool(jnp.all(jnp.isfinite(logits)))
    print("KERNEL_OK")
</pallas_src>

<mosaic_0001>
module attributes {stable_mosaic.version = 11 : i64} {
  func.func @_linear_kernel(%arg0: memref<16x32xf32, #tpu.memory_space<vmem>>, %arg1: memref<32x60xbf16, #tpu.memory_space<vmem>>, %arg2: memref<1x60xf32, #tpu.memory_space<vmem>>, %arg3: memref<16x60xf32, #tpu.memory_space<vmem>>) attributes {dimension_semantics = [], scalar_prefetch = 0 : i64, scratch_operands = 0 : i64, tpu.core_type = #tpu.core_type<tc>} {
    %c0 = arith.constant 0 : index
    %c0_0 = arith.constant 0 : index
    %0 = vector.load %arg0[%c0, %c0_0] : memref<16x32xf32, #tpu.memory_space<vmem>>, vector<16x32xf32>
    %1 = arith.truncf %0 : vector<16x32xf32> to vector<16x32xbf16>
    %c0_1 = arith.constant 0 : index
    %c0_2 = arith.constant 0 : index
    %2 = vector.load %arg1[%c0_1, %c0_2] : memref<32x60xbf16, #tpu.memory_space<vmem>>, vector<32x60xbf16>
    %cst = arith.constant dense<0.000000e+00> : vector<16x60xf32>
    %3 = tpu.matmul %1, %2, %cst {dimension_numbers = #tpu.dot_dimension_numbers<[1], [0], [0], [1], [0, 0, 1, 1], [], []>} : vector<16x32xbf16>, vector<32x60xbf16>, vector<16x60xf32> -> vector<16x60xf32>
    %c0_3 = arith.constant 0 : index
    %c0_4 = arith.constant 0 : index
    %4 = vector.load %arg2[%c0_3, %c0_4] : memref<1x60xf32, #tpu.memory_space<vmem>>, vector<1x60xf32>
    %5 = vector.broadcast %4 : vector<1x60xf32> to vector<16x60xf32>
    %6 = arith.addf %3, %5 : vector<16x60xf32>
    %c0_5 = arith.constant 0 : index
    %c0_6 = arith.constant 0 : index
    %7 = vector.load %arg3[%c0_5, %c0_6] : memref<16x60xf32, #tpu.memory_space<vmem>>, vector<16x60xf32>
    tpu.vector_store %arg3[%c0_5, %c0_6], %6 {strides = array<i32>} : memref<16x60xf32, #tpu.memory_space<vmem>>, vector<16x60xf32>,
    return
  }
}

module attributes {stable_mosaic.version = 11 : i64} {
  func.func @_encoder_layer_kernel(%arg0: i32, %arg1: memref<1x16x32xf32, #tpu.memory_space<vmem>>, %arg2: memref<32x96xbf16, #tpu.memory_space<vmem>>, %arg3: memref<1x96xf32, #tpu.memory_space<vmem>>, %arg4: memref<32x32xbf16, #tpu.memory_space<vmem>>, %arg5: memref<1x32xf32, #tpu.memory_space<vmem>>, %arg6: memref<1x32xf32, #tpu.memory_space<vmem>>, %arg7: memref<1x32xf32, #tpu.memory_space<vmem>>, %arg8: memref<32x64xbf16, #tpu.memory_space<vmem>>, %arg9: memref<1x64xf32, #tpu.memory_space<vmem>>, %arg10: memref<64x32xbf16, #tpu.memory_space<vmem>>, %arg11: memref<1x32xf32, #tpu.memory_space<vmem>>, %arg12: memref<1x32xf32, #tpu.memory_space<vmem>>, %arg13: memref<1x32xf32, #tpu.memory_space<vmem>>, %arg14: memref<1x16x32xf32, #tpu.memory_space<vmem>>) attributes {dimension_semantics = [#tpu.dimension_semantics<parallel>], iteration_bounds = array<i64: 2>, scalar_prefetch = 0 : i64, scratch_operands = 0 : i64, tpu.core_type = #tpu.core_type<tc>, window_params = [{transform_indices = @transform_0, window_bounds = array<i64: 1, 16, 32>}, {pipeline_mode = #tpu.pipeline_mode<synchronous>, transform_indices = @transform_1, window_bounds = array<i64: 32, 96>}, {pipeline_mode = #tpu.pipeline_mode<synchronous>, transform_indices = @transform_2, window_bounds = array<i64: 1, 96>}, {pipeline_mode = #tpu.pipeline_mode<synchronous>, transform_indices = @transform_3, window_bounds = array<i64: 32, 32>}, {pipeline_mode = #tpu.pipeline_mode<synchronous>, transform_indices = @transform_4, window_bounds = array<i64: 1, 32>}, {pipeline_mode = #tpu.pipeline_mode<synchronous>, transform_indices = @transform_5, window_bounds = array<i64: 1, 32>}, {pipeline_mode = #tpu.pipeline_mode<synchronous>, transform_indices = @transform_6, window_bounds = array<i64: 1, 32>}, {pipeline_mode = #tpu.pipeline_mode<synchronous>, transform_indices = @transform_7, window_bounds = array<i64: 32, 64>}, {pipeline_mode = #tpu.pipeline_mode<synchronous>, transform_indices = @transform_8, window_bounds = array<i64: 1, 64>}, {pipeline_mode = #tpu.pipeline_mode<synchronous>, transform_indices = @transform_9, window_bounds = array<i64: 64, 32>}, {pipeline_mode = #tpu.pipeline_mode<synchronous>, transform_indices = @transform_10, window_bounds = array<i64: 1, 32>}, {pipeline_mode = #tpu.pipeline_mode<synchronous>, transform_indices = @transform_11, window_bounds = array<i64: 1, 32>}, {pipeline_mode = #tpu.pipeline_mode<synchronous>, transform_indices = @transform_12, window_bounds = array<i64: 1, 32>}, {transform_indices = @transform_13, window_bounds = array<i64: 1, 16, 32>}]} {
    %c0 = arith.constant 0 : index
    %c0_0 = arith.constant 0 : index
    %c0_1 = arith.constant 0 : index
    %0 = vector.load %arg1[%c0, %c0_0, %c0_1] : memref<1x16x32xf32, #tpu.memory_space<vmem>>, vector<1x16x32xf32>
    %1 = vector.shape_cast %0 : vector<1x16x32xf32> to vector<16x32xf32>
    %2 = arith.truncf %1 : vector<16x32xf32> to vector<16x32xbf16>
    %c0_2 = arith.constant 0 : index
    %c0_3 = arith.constant 0 : index
    %3 = vector.load %arg2[%c0_2, %c0_3] : memref<32x96xbf16, #tpu.memory_space<vmem>>, vector<32x96xbf16>
    %cst = arith.constant dense<0.000000e+00> : vector<16x96xf32>
    %4 = tpu.matmul %2, %3, %cst {dimension_numbers = #tpu.dot_dimension_numbers<[1], [0], [0], [1], [0, 0, 1, 1], [], []>} : vector<16x32xbf16>, vector<32x96xbf16>, vector<16x96xf32> -> vector<16x96xf32>
    %c0_4 = arith.constant 0 : index
    %c0_5 = arith.constant 0 : index
    %5 = vector.load %arg3[%c0_4, %c0_5] : memref<1x96xf32, #tpu.memory_space<vmem>>, vector<1x96xf32>
    %6 = vector.broadcast %5 : vector<1x96xf32> to vector<16x96xf32>
    %7 = arith.addf %4, %6 : vector<16x96xf32>
    %8 = vector.extract_strided_slice %7 {offsets = [0, 0], sizes = [16, 32], strides = [1, 1]} : vector<16x96xf32> to vector<16x32xf32>
    %9 = vector.extract_strided_slice %7 {offsets = [0, 32], sizes = [16, 32], strides = [1, 1]} : vector<16x96xf32> to vector<16x32xf32>
    %10 = vector.extract_strided_slice %7 {offsets = [0, 64], sizes = [16, 32], strides = [1, 1]} : vector<16x96xf32> to vector<16x32xf32>
    %11 = vector.extract_strided_slice %8 {offsets = [0, 0], sizes = [16, 8], strides = [1, 1]} : vector<16x32xf32> to vector<16x8xf32>
    %12 = arith.truncf %11 : vector<16x8xf32> to vector<16x8xbf16>
    %13 = vector.extract_strided_slice %9 {offsets = [0, 0], sizes = [16, 8], strides = [1, 1]} : vector<16x32xf32> to vector<16x8xf32>
    %14 = arith.truncf %13 : vector<16x8xf32> to vector<16x8xbf16>
    %15 = vector.extract_strided_slice %10 {offsets = [0, 0], sizes = [16, 8], strides = [1, 1]} : vector<16x32xf32> to vector<16x8xf32>
    %16 = arith.truncf %15 : vector<16x8xf32> to vector<16x8xbf16>
    %cst_6 = arith.constant dense<0.000000e+00> : vector<16x16xf32>
    %17 = tpu.matmul %12, %14, %cst_6 {dimension_numbers = #tpu.dot_dimension_numbers<[1], [1], [0], [0], [0, 0, 1, 0], [], []>} : vector<16x8xbf16>, vector<16x8xbf16>, vector<16x16xf32> -> vector<16x16xf32>
    %cst_7 = arith.constant 0.353553385 : f32
    %18 = vector.broadcast %cst_7 : f32 to vector<16x16xf32>
    %19 = arith.mulf %17, %18 : vector<16x16xf32>
    %cst_8 = arith.constant dense<0xFF800000> : vector<16xf32>
    %20 = vector.multi_reduction <maximumf>, %19, %cst_8 [1] : vector<16x16xf32> to vector<16xf32>
    %21 = vector.shape_cast %20 : vector<16xf32> to vector<16x1xf32>
    %22 = vector.broadcast %21 : vector<16x1xf32> to vector<16x16xf32>
    %23 = arith.subf %19, %22 : vector<16x16xf32>
    %24 = math.exp %23 : vector<16x16xf32>
    %cst_9 = arith.constant dense<0.000000e+00> : vector<16xf32>
    %25 = vector.multi_reduction <add>, %24, %cst_9 [1] : vector<16x16xf32> to vector<16xf32>
    %26 = vector.shape_cast %25 : vector<16xf32> to vector<16x1xf32>
    %27 = arith.truncf %24 : vector<16x16xf32> to vector<16x16xbf16>
    %cst_10 = arith.constant dense<0.000000e+00> : vector<16x8xf32>
    %28 = tpu.matmul %27, %16, %cst_10 {dimension_numbers = #tpu.dot_dimension_numbers<[1], [0], [0], [1], [0, 0, 1, 1], [], []>} : vector<16x16xbf16>, vector<16x8xbf16>, vector<16x8xf32> -> vector<16x8xf32>
    %29 = tpu.reciprocal %26 {approx = true} : vector<16x1xf32> -> vector<16x1xf32>
    %30 = vector.broadcast %29 : vector<16x1xf32> to vector<16x8xf32>
    %31 = arith.mulf %28, %30 : vector<16x8xf32>
    %32 = vector.extract_strided_slice %8 {offsets = [0, 8], sizes = [16, 8], strides = [1, 1]} : vector<16x32xf32> to vector<16x8xf32>
    %33 = arith.truncf %32 : vector<16x8xf32> to vector<16x8xbf16>
    %34 = vector.extract_strided_slice %9 {offsets = [0, 8], sizes = [16, 8], strides = [1, 1]} : vector<16x32xf32> to vector<16x8xf32>
    %35 = arith.truncf %34 : vector<16x8xf32> to vector<16x8xbf16>
    %36 = vector.extract_strided_slice %10 {offsets = [0, 8], sizes = [16, 8], strides = [1, 1]} : vector<16x32xf32> to vector<16x8xf32>
    %37 = arith.truncf %36 : vector<16x8xf32> to vector<16x8xbf16>
    %cst_11 = arith.constant dense<0.000000e+00> : vector<16x16xf32>
    %38 = tpu.matmul %33, %35, %cst_11 {dimension_numbers = #tpu.dot_dimension_numbers<[1], [1], [0], [0], [0, 0, 1, 0], [], []>} : vector<16x8xbf16>, vector<16x8xbf16>, vector<16x16xf32> -> vector<16x16xf32>
    %cst_12 = arith.constant 0.353553385 : f32
    %39 = vector.broadcast %cst_12 : f32 to vector<16x16xf32>
    %40 = arith.mulf %38, %39 : vector<16x16xf32>
    %cst_13 = arith.constant dense<0xFF800000> : vector<16xf32>
    %41 = vector.multi_reduction <maximumf>, %40, %cst_13 [1] : vector<16x16xf32> to vector<16xf32>
    %42 = vector.shape_cast %41 : vector<16xf32> to vector<16x1xf32>
    %43 = vector.broadcast %42 : vector<16x1xf32> to vector<16x16xf32>
    %44 = arith.subf %40, %43 : vector<16x16xf32>
    %45 = math.exp %44 : vector<16x16xf32>
    %cst_14 = arith.constant dense<0.000000e+00> : vector<16xf32>
    %46 = vector.multi_reduction <add>, %45, %cst_14 [1] : vector<16x16xf32> to vector<16xf32>
    %47 = vector.shape_cast %46 : vector<16xf32> to vector<16x1xf32>
    %48 = arith.truncf %45 : vector<16x16xf32> to vector<16x16xbf16>
    %cst_15 = arith.constant dense<0.000000e+00> : vector<16x8xf32>
    %49 = tpu.matmul %48, %37, %cst_15 {dimension_numbers = #tpu.dot_dimension_numbers<[1], [0], [0], [1], [0, 0, 1, 1], [], []>} : vector<16x16xbf16>, vector<16x8xbf16>, vector<16x8xf32> -> vector<16x8xf32>
    %50 = tpu.reciprocal %47 {approx = true} : vector<16x1xf32> -> vector<16x1xf32>
    %51 = vector.broadcast %50 : vector<16x1xf32> to vector<16x8xf32>
    %52 = arith.mulf %49, %51 : vector<16x8xf32>
    %53 = vector.extract_strided_slice %8 {offsets = [0, 16], sizes = [16, 8], strides = [1, 1]} : vector<16x32xf32> to vector<16x8xf32>
    %54 = arith.truncf %53 : vector<16x8xf32> to vector<16x8xbf16>
    %55 = vector.extract_strided_slice %9 {offsets = [0, 16], sizes = [16, 8], strides = [1, 1]} : vector<16x32xf32> to vector<16x8xf32>
    %56 = arith.truncf %55 : vector<16x8xf32> to vector<16x8xbf16>
    %57 = vector.extract_strided_slice %10 {offsets = [0, 16], sizes = [16, 8], strides = [1, 1]} : vector<16x32xf32> to vector<16x8xf32>
    %58 = arith.truncf %57 : vector<16x8xf32> to vector<16x8xbf16>
    %cst_16 = arith.constant dense<0.000000e+00> : vector<16x16xf32>
    %59 = tpu.matmul %54, %56, %cst_16 {dimension_numbers = #tpu.dot_dimension_numbers<[1], [1], [0], [0], [0, 0, 1, 0], [], []>} : vector<16x8xbf16>, vector<16x8xbf16>, vector<16x16xf32> -> vector<16x16xf32>
    %cst_17 = arith.constant 0.353553385 : f32
    %60 = vector.broadcast %cst_17 : f32 to vector<16x16xf32>
    %61 = arith.mulf %59, %60 : vector<16x16xf32>
    %cst_18 = arith.constant dense<0xFF800000> : vector<16xf32>
    %62 = vector.multi_reduction <maximumf>, %61, %cst_18 [1] : vector<16x16xf32> to vector<16xf32>
    %63 = vector.shape_cast %62 : vector<16xf32> to vector<16x1xf32>
    %64 = vector.broadcast %63 : vector<16x1xf32> to vector<16x16xf32>
    %65 = arith.subf %61, %64 : vector<16x16xf32>
    %66 = math.exp %65 : vector<16x16xf32>
    %cst_19 = arith.constant dense<0.000000e+00> : vector<16xf32>
    %67 = vector.multi_reduction <add>, %66, %cst_19 [1] : vector<16x16xf32> to vector<16xf32>
    %68 = vector.shape_cast %67 : vector<16xf32> to vector<16x1xf32>
    %69 = arith.truncf %66 : vector<16x16xf32> to vector<16x16xbf16>
    %cst_20 = arith.constant dense<0.000000e+00> : vector<16x8xf32>
    %70 = tpu.matmul %69, %58, %cst_20 {dimension_numbers = #tpu.dot_dimension_numbers<[1], [0], [0], [1], [0, 0, 1, 1], [], []>} : vector<16x16xbf16>, vector<16x8xbf16>, vector<16x8xf32> -> vector<16x8xf32>
    %71 = tpu.reciprocal %68 {approx = true} : vector<16x1xf32> -> vector<16x1xf32>
    %72 = vector.broadcast %71 : vector<16x1xf32> to vector<16x8xf32>
    %73 = arith.mulf %70, %72 : vector<16x8xf32>
    %74 = vector.extract_strided_slice %8 {offsets = [0, 24], sizes = [16, 8], strides = [1, 1]} : vector<16x32xf32> to vector<16x8xf32>
    %75 = arith.truncf %74 : vector<16x8xf32> to vector<16x8xbf16>
    %76 = vector.extract_strided_slice %9 {offsets = [0, 24], sizes = [16, 8], strides = [1, 1]} : vector<16x32xf32> to vector<16x8xf32>
    %77 = arith.truncf %76 : vector<16x8xf32> to vector<16x8xbf16>
    %78 = vector.extract_strided_slice %10 {offsets = [0, 24], sizes = [16, 8], strides = [1, 1]} : vector<16x32xf32> to vector<16x8xf32>
    %79 = arith.truncf %78 : vector<16x8xf32> to vector<16x8xbf16>
    %cst_21 = arith.constant dense<0.000000e+00> : vector<16x16xf32>
    %80 = tpu.matmul %75, %77, %cst_21 {dimension_numbers = #tpu.dot_dimension_numbers<[1], [1], [0], [0], [0, 0, 1, 0], [], []>} : vector<16x8xbf16>, vector<16x8xbf16>, vector<16x16xf32> -> vector<16x16xf32>
    %cst_22 = arith.constant 0.353553385 : f32
    %81 = vector.broadcast %cst_22 : f32 to vector<16x16xf32>
    %82 = arith.mulf %80, %81 : vector<16x16xf32>
    %cst_23 = arith.constant dense<0xFF800000> : vector<16xf32>
    %83 = vector.multi_reduction <maximumf>, %82, %cst_23 [1] : vector<16x16xf32> to vector<16xf32>
    %84 = vector.shape_cast %83 : vector<16xf32> to vector<16x1xf32>
    %85 = vector.broadcast %84 : vector<16x1xf32> to vector<16x16xf32>
    %86 = arith.subf %82, %85 : vector<16x16xf32>
    %87 = math.exp %86 : vector<16x16xf32>
    %cst_24 = arith.constant dense<0.000000e+00> : vector<16xf32>
    %88 = vector.multi_reduction <add>, %87, %cst_24 [1] : vector<16x16xf32> to vector<16xf32>
    %89 = vector.shape_cast %88 : vector<16xf32> to vector<16x1xf32>
    %90 = arith.truncf %87 : vector<16x16xf32> to vector<16x16xbf16>
    %cst_25 = arith.constant dense<0.000000e+00> : vector<16x8xf32>
    %91 = tpu.matmul %90, %79, %cst_25 {dimension_numbers = #tpu.dot_dimension_numbers<[1], [0], [0], [1], [0, 0, 1, 1], [], []>} : vector<16x16xbf16>, vector<16x8xbf16>, vector<16x8xf32> -> vector<16x8xf32>
    %92 = tpu.reciprocal %89 {approx = true} : vector<16x1xf32> -> vector<16x1xf32>
    %93 = vector.broadcast %92 : vector<16x1xf32> to vector<16x8xf32>
    %94 = arith.mulf %91, %93 : vector<16x8xf32>
    %95 = tpu.concatenate %31, %52, %73, %94 in 1 : vector<16x8xf32>, vector<16x8xf32>, vector<16x8xf32>, vector<16x8xf32> -> vector<16x32xf32>
    %96 = arith.truncf %95 : vector<16x32xf32> to vector<16x32xbf16>
    %c0_26 = arith.constant 0 : index
    %c0_27 = arith.constant 0 : index
    %97 = vector.load %arg4[%c0_26, %c0_27] : memref<32x32xbf16, #tpu.memory_space<vmem>>, vector<32x32xbf16>
    %cst_28 = arith.constant dense<0.000000e+00> : vector<16x32xf32>
    %98 = tpu.matmul %96, %97, %cst_28 {dimension_numbers = #tpu.dot_dimension_numbers<[1], [0], [0], [1], [0, 0, 1, 1], [], []>} : vector<16x32xbf16>, vector<32x32xbf16>, vector<16x32xf32> -> vector<16x32xf32>
    %c0_29 = arith.constant 0 : index
    %c0_30 = arith.constant 0 : index
    %99 = vector.load %arg5[%c0_29, %c0_30] : memref<1x32xf32, #tpu.memory_space<vmem>>, vector<1x32xf32>
    %100 = vector.broadcast %99 : vector<1x32xf32> to vector<16x32xf32>
    %101 = arith.addf %98, %100 : vector<16x32xf32>
    %102 = arith.addf %1, %101 : vector<16x32xf32>
    %cst_31 = arith.constant dense<0.000000e+00> : vector<16xf32>
    %103 = vector.multi_reduction <add>, %102, %cst_31 [1] : vector<16x32xf32> to vector<16xf32>
    %104 = vector.shape_cast %103 : vector<16xf32> to vector<16x1xf32>
    %cst_32 = arith.constant 3.200000e+01 : f32
    %105 = vector.broadcast %cst_32 : f32 to vector<16x1xf32>
    %106 = arith.divf %104, %105 : vector<16x1xf32>
    %107 = vector.broadcast %106 : vector<16x1xf32> to vector<16x32xf32>
    %108 = arith.subf %102, %107 : vector<16x32xf32>
    %109 = arith.mulf %108, %108 : vector<16x32xf32>
    %cst_33 = arith.constant dense<0.000000e+00> : vector<16xf32>
    %110 = vector.multi_reduction <add>, %109, %cst_33 [1] : vector<16x32xf32> to vector<16xf32>
    %111 = vector.shape_cast %110 : vector<16xf32> to vector<16x1xf32>
    %cst_34 = arith.constant 3.200000e+01 : f32
    %112 = vector.broadcast %cst_34 : f32 to vector<16x1xf32>
    %113 = arith.divf %111, %112 : vector<16x1xf32>
    %cst_35 = arith.constant 9.99999974E-6 : f32
    %114 = vector.broadcast %cst_35 : f32 to vector<16x1xf32>
    %115 = arith.addf %113, %114 : vector<16x1xf32>
    %116 = math.rsqrt %115 : vector<16x1xf32>
    %117 = vector.broadcast %116 : vector<16x1xf32> to vector<16x32xf32>
    %118 = arith.mulf %108, %117 : vector<16x32xf32>
    %c0_36 = arith.constant 0 : index
    %c0_37 = arith.constant 0 : index
    %119 = vector.load %arg6[%c0_36, %c0_37] : memref<1x32xf32, #tpu.memory_space<vmem>>, vector<1x32xf32>
    %120 = vector.broadcast %119 : vector<1x32xf32> to vector<16x32xf32>
    %121 = arith.mulf %118, %120 : vector<16x32xf32>
    %c0_38 = arith.constant 0 : index
    %c0_39 = arith.constant 0 : index
    %122 = vector.load %arg7[%c0_38, %c0_39] : memref<1x32xf32, #tpu.memory_space<vmem>>, vector<1x32xf32>
    %123 = vector.broadcast %122 : vector<1x32xf32> to vector<16x32xf32>
    %124 = arith.addf %121, %123 : vector<16x32xf32>
    %125 = arith.truncf %124 : vector<16x32xf32> to vector<16x32xbf16>
    %c0_40 = arith.constant 0 : index
    %c0_41 = arith.constant 0 : index
    %126 = vector.load %arg8[%c0_40, %c0_41] : memref<32x64xbf16, #tpu.memory_space<vmem>>, vector<32x64xbf16>
    %cst_42 = arith.constant dense<0.000000e+00> : vector<16x64xf32>
    %127 = tpu.matmul %125, %126, %cst_42 {dimension_numbers = #tpu.dot_dimension_numbers<[1], [0], [0], [1], [0, 0, 1, 1], [], []>} : vector<16x32xbf16>, vector<32x64xbf16>, vector<16x64xf32> -> vector<16x64xf32>
    %c0_43 = arith.constant 0 : index
    %c0_44 = arith.constant 0 : index
    %128 = vector.load %arg9[%c0_43, %c0_44] : memref<1x64xf32, #tpu.memory_space<vmem>>, vector<1x64xf32>
    %129 = vector.broadcast %128 : vector<1x64xf32> to vector<16x64xf32>
    %130 = arith.addf %127, %129 : vector<16x64xf32>
    %cst_45 = arith.constant 0.000000e+00 : f32
    %131 = vector.broadcast %cst_45 : f32 to vector<16x64xf32>
    %132 = arith.maximumf %130, %131 : vector<16x64xf32>
    %133 = arith.truncf %132 : vector<16x64xf32> to vector<16x64xbf16>
    %c0_46 = arith.constant 0 : index
    %c0_47 = arith.constant 0 : index
    %134 = vector.load %arg10[%c0_46, %c0_47] : memref<64x32xbf16, #tpu.memory_space<vmem>>, vector<64x32xbf16>
    %cst_48 = arith.constant dense<0.000000e+00> : vector<16x32xf32>
    %135 = tpu.matmul %133, %134, %cst_48 {dimension_numbers = #tpu.dot_dimension_numbers<[1], [0], [0], [1], [0, 0, 1, 1], [], []>} : vector<16x64xbf16>, vector<64x32xbf16>, vector<16x32xf32> -> vector<16x32xf32>
    %c0_49 = arith.constant 0 : index
    %c0_50 = arith.constant 0 : index
    %136 = vector.load %arg11[%c0_49, %c0_50] : memref<1x32xf32, #tpu.memory_space<vmem>>, vector<1x32xf32>
    %137 = vector.broadcast %136 : vector<1x32xf32> to vector<16x32xf32>
    %138 = arith.addf %135, %137 : vector<16x32xf32>
    %139 = arith.addf %124, %138 : vector<16x32xf32>
    %cst_51 = arith.constant dense<0.000000e+00> : vector<16xf32>
    %140 = vector.multi_reduction <add>, %139, %cst_51 [1] : vector<16x32xf32> to vector<16xf32>
    %141 = vector.shape_cast %140 : vector<16xf32> to vector<16x1xf32>
    %cst_52 = arith.constant 3.200000e+01 : f32
    %142 = vector.broadcast %cst_52 : f32 to vector<16x1xf32>
    %143 = arith.divf %141, %142 : vector<16x1xf32>
    %144 = vector.broadcast %143 : vector<16x1xf32> to vector<16x32xf32>
    %145 = arith.subf %139, %144 : vector<16x32xf32>
    %146 = arith.mulf %145, %145 : vector<16x32xf32>
    %cst_53 = arith.constant dense<0.000000e+00> : vector<16xf32>
    %147 = vector.multi_reduction <add>, %146, %cst_53 [1] : vector<16x32xf32> to vector<16xf32>
    %148 = vector.shape_cast %147 : vector<16xf32> to vector<16x1xf32>
    %cst_54 = arith.constant 3.200000e+01 : f32
    %149 = vector.broadcast %cst_54 : f32 to vector<16x1xf32>
    %150 = arith.divf %148, %149 : vector<16x1xf32>
    %cst_55 = arith.constant 9.99999974E-6 : f32
    %151 = vector.broadcast %cst_55 : f32 to vector<16x1xf32>
    %152 = arith.addf %150, %151 : vector<16x1xf32>
    %153 = math.rsqrt %152 : vector<16x1xf32>
    %154 = vector.broadcast %153 : vector<16x1xf32> to vector<16x32xf32>
    %155 = arith.mulf %145, %154 : vector<16x32xf32>
    %c0_56 = arith.constant 0 : index
    %c0_57 = arith.constant 0 : index
    %156 = vector.load %arg12[%c0_56, %c0_57] : memref<1x32xf32, #tpu.memory_space<vmem>>, vector<1x32xf32>
    %157 = vector.broadcast %156 : vector<1x32xf32> to vector<16x32xf32>
    %158 = arith.mulf %155, %157 : vector<16x32xf32>
    %c0_58 = arith.constant 0 : index
    %c0_59 = arith.constant 0 : index
    %159 = vector.load %arg13[%c0_58, %c0_59] : memref<1x32xf32, #tpu.memory_space<vmem>>, vector<1x32xf32>
    %160 = vector.broadcast %159 : vector<1x32xf32> to vector<16x32xf32>
    %161 = arith.addf %158, %160 : vector<16x32xf32>
    %c0_60 = arith.constant 0 : index
    %c0_61 = arith.constant 0 : index
    %c0_62 = arith.constant 0 : index
    %162 = vector.load %arg14[%c0_60, %c0_61, %c0_62] : memref<1x16x32xf32, #tpu.memory_space<vmem>>, vector<1x16x32xf32>
    %163 = vector.shape_cast %162 : vector<1x16x32xf32> to vector<16x32xf32>
    %164 = vector.shape_cast %161 : vector<16x32xf32> to vector<1x16x32xf32>
    tpu.vector_store %arg14[%c0_60, %c0_61, %c0_62], %164 {strides = array<i32>} : memref<1x16x32xf32, #tpu.memory_space<vmem>>, vector<1x16x32xf32>,
    return
  }
  func.func @transform_0(%arg0: i32) -> (i32, i32, i32) {
    %c0_i32 = arith.constant 0 : i32
    %c0_i32_0 = arith.constant 0 : i32
    %c0_i32_1 = arith.constant 0 : i32
    return %arg0, %c0_i32, %c0_i32_0 : i32, i32, i32
  }
  func.func @transform_1(%arg0: i32) -> (i32, i32) {
    %c0_i32 = arith.constant 0 : i32
    %c0_i32_0 = arith.constant 0 : i32
    %c0_i32_1 = arith.constant 0 : i32
    return %c0_i32, %c0_i32_0 : i32, i32
  }
  func.func @transform_2(%arg0: i32) -> (i32, i32) {
    %c0_i32 = arith.constant 0 : i32
    %c0_i32_0 = arith.constant 0 : i32
    %c0_i32_1 = arith.constant 0 : i32
    return %c0_i32, %c0_i32_0 : i32, i32
  }
  func.func @transform_3(%arg0: i32) -> (i32, i32) {
    %c0_i32 = arith.constant 0 : i32
    %c0_i32_0 = arith.constant 0 : i32
    %c0_i32_1 = arith.constant 0 : i32
    return %c0_i32, %c0_i32_0 : i32, i32
  }
  func.func @transform_4(%arg0: i32) -> (i32, i32) {
    %c0_i32 = arith.constant 0 : i32
    %c0_i32_0 = arith.constant 0 : i32
    %c0_i32_1 = arith.constant 0 : i32
    return %c0_i32, %c0_i32_0 : i32, i32
  }
  func.func @transform_5(%arg0: i32) -> (i32, i32) {
    %c0_i32 = arith.constant 0 : i32
    %c0_i32_0 = arith.constant 0 : i32
    %c0_i32_1 = arith.constant 0 : i32
    return %c0_i32, %c0_i32_0 : i32, i32
  }
  func.func @transform_6(%arg0: i32) -> (i32, i32) {
    %c0_i32 = arith.constant 0 : i32
    %c0_i32_0 = arith.constant 0 : i32
    %c0_i32_1 = arith.constant 0 : i32
    return %c0_i32, %c0_i32_0 : i32, i32
  }
  func.func @transform_7(%arg0: i32) -> (i32, i32) {
    %c0_i32 = arith.constant 0 : i32
    %c0_i32_0 = arith.constant 0 : i32
    %c0_i32_1 = arith.constant 0 : i32
    return %c0_i32, %c0_i32_0 : i32, i32
  }
  func.func @transform_8(%arg0: i32) -> (i32, i32) {
    %c0_i32 = arith.constant 0 : i32
    %c0_i32_0 = arith.constant 0 : i32
    %c0_i32_1 = arith.constant 0 : i32
    return %c0_i32, %c0_i32_0 : i32, i32
  }
  func.func @transform_9(%arg0: i32) -> (i32, i32) {
    %c0_i32 = arith.constant 0 : i32
    %c0_i32_0 = arith.constant 0 : i32
    %c0_i32_1 = arith.constant 0 : i32
    return %c0_i32, %c0_i32_0 : i32, i32
  }
  func.func @transform_10(%arg0: i32) -> (i32, i32) {
    %c0_i32 = arith.constant 0 : i32
    %c0_i32_0 = arith.constant 0 : i32
    %c0_i32_1 = arith.constant 0 : i32
    return %c0_i32, %c0_i32_0 : i32, i32
  }
  func.func @transform_11(%arg0: i32) -> (i32, i32) {
    %c0_i32 = arith.constant 0 : i32
    %c0_i32_0 = arith.constant 0 : i32
    %c0_i32_1 = arith.constant 0 : i32
    return %c0_i32, %c0_i32_0 : i32, i32
  }
  func.func @transform_12(%arg0: i32) -> (i32, i32) {
    %c0_i32 = arith.constant 0 : i32
    %c0_i32_0 = arith.constant 0 : i32
    %c0_i32_1 = arith.constant 0 : i32
    return %c0_i32, %c0_i32_0 : i32, i32
  }
  func.func @transform_13(%arg0: i32) -> (i32, i32, i32) {
    %c0_i32 = arith.constant 0 : i32
    %c0_i32_0 = arith.constant 0 : i32
    %c0_i32_1 = arith.constant 0 : i32
    return %arg0, %c0_i32, %c0_i32_0 : i32, i32, i32
  }
}

module attributes {stable_mosaic.version = 11 : i64} {
  func.func @_decoder_layer_kernel(%arg0: i32, %arg1: memref<1x8x32xf32, #tpu.memory_space<vmem>>, %arg2: memref<1x16x32xf32, #tpu.memory_space<vmem>>, %arg3: memref<32x96xbf16, #tpu.memory_space<vmem>>, %arg4: memref<1x96xf32, #tpu.memory_space<vmem>>, %arg5: memref<32x32xbf16, #tpu.memory_space<vmem>>, %arg6: memref<1x32xf32, #tpu.memory_space<vmem>>, %arg7: memref<1x32xf32, #tpu.memory_space<vmem>>, %arg8: memref<1x32xf32, #tpu.memory_space<vmem>>, %arg9: memref<32x32xbf16, #tpu.memory_space<vmem>>, %arg10: memref<1x32xf32, #tpu.memory_space<vmem>>, %arg11: memref<32x64xbf16, #tpu.memory_space<vmem>>, %arg12: memref<1x64xf32, #tpu.memory_space<vmem>>, %arg13: memref<32x32xbf16, #tpu.memory_space<vmem>>, %arg14: memref<1x32xf32, #tpu.memory_space<vmem>>, %arg15: memref<1x32xf32, #tpu.memory_space<vmem>>, %arg16: memref<1x32xf32, #tpu.memory_space<vmem>>, %arg17: memref<32x64xbf16, #tpu.memory_space<vmem>>, %arg18: memref<1x64xf32, #tpu.memory_space<vmem>>, %arg19: memref<64x32xbf16, #tpu.memory_space<vmem>>, %arg20: memref<1x32xf32, #tpu.memory_space<vmem>>, %arg21: memref<1x32xf32, #tpu.memory_space<vmem>>, %arg22: memref<1x32xf32, #tpu.memory_space<vmem>>, %arg23: memref<1x8x32xf32, #tpu.memory_space<vmem>>) attributes {dimension_semantics = [#tpu.dimension_semantics<parallel>], iteration_bounds = array<i64: 2>, scalar_prefetch = 0 : i64, scratch_operands = 0 : i64, tpu.core_type = #tpu.core_type<tc>, window_params = [{transform_indices = @transform_0, window_bounds = array<i64: 1, 8, 32>}, {transform_indices = @transform_1, window_bounds = array<i64: 1, 16, 32>}, {pipeline_mode = #tpu.pipeline_mode<synchronous>, transform_indices = @transform_2, window_bounds = array<i64: 32, 96>}, {pipeline_mode = #tpu.pipeline_mode<synchronous>, transform_indices = @transform_3, window_bounds = array<i64: 1, 96>}, {pipeline_mode = #tpu.pipeline_mode<synchronous>, transform_indices = @transform_4, window_bounds = array<i64: 32, 32>}, {pipeline_mode = #tpu.pipeline_mode<synchronous>, transform_indices = @transform_5, window_bounds = array<i64: 1, 32>}, {pipeline_mode = #tpu.pipeline_mode<synchronous>, transform_indices = @transform_6, window_bounds = array<i64: 1, 32>}, {pipeline_mode = #tpu.pipeline_mode<synchronous>, transform_indices = @transform_7, window_bounds = array<i64: 1, 32>}, {pipeline_mode = #tpu.pipeline_mode<synchronous>, transform_indices = @transform_8, window_bounds = array<i64: 32, 32>}, {pipeline_mode = #tpu.pipeline_mode<synchronous>, transform_indices = @transform_9, window_bounds = array<i64: 1, 32>}, {pipeline_mode = #tpu.pipeline_mode<synchronous>, transform_indices = @transform_10, window_bounds = array<i64: 32, 64>}, {pipeline_mode = #tpu.pipeline_mode<synchronous>, transform_indices = @transform_11, window_bounds = array<i64: 1, 64>}, {pipeline_mode = #tpu.pipeline_mode<synchronous>, transform_indices = @transform_12, window_bounds = array<i64: 32, 32>}, {pipeline_mode = #tpu.pipeline_mode<synchronous>, transform_indices = @transform_13, window_bounds = array<i64: 1, 32>}, {pipeline_mode = #tpu.pipeline_mode<synchronous>, transform_indices = @transform_14, window_bounds = array<i64: 1, 32>}, {pipeline_mode = #tpu.pipeline_mode<synchronous>, transform_indices = @transform_15, window_bounds = array<i64: 1, 32>}, {pipeline_mode = #tpu.pipeline_mode<synchronous>, transform_indices = @transform_16, window_bounds = array<i64: 32, 64>}, {pipeline_mode = #tpu.pipeline_mode<synchronous>, transform_indices = @transform_17, window_bounds = array<i64: 1, 64>}, {pipeline_mode = #tpu.pipeline_mode<synchronous>, transform_indices = @transform_18, window_bounds = array<i64: 64, 32>}, {pipeline_mode = #tpu.pipeline_mode<synchronous>, transform_indices = @transform_19, window_bounds = array<i64: 1, 32>}, {pipeline_mode = #tpu.pipeline_mode<synchronous>, transform_indices = @transform_20, window_bounds = array<i64: 1, 32>}, {pipeline_mode = #tpu.pipeline_mode<synchronous>, transform_indices = @transform_21, window_bounds = array<i64: 1, 32>}, {transform_indices = @transform_22, window_bounds = array<i64: 1, 8, 32>}]} {
    %c0 = arith.constant 0 : index
    %c0_0 = arith.constant 0 : index
    %c0_1 = arith.constant 0 : index
    %0 = vector.load %arg1[%c0, %c0_0, %c0_1] : memref<1x8x32xf32, #tpu.memory_space<vmem>>, vector<1x8x32xf32>
    %1 = vector.shape_cast %0 : vector<1x8x32xf32> to vector<8x32xf32>
    %c0_2 = arith.constant 0 : index
    %c0_3 = arith.constant 0 : index
    %c0_4 = arith.constant 0 : index
    %2 = vector.load %arg2[%c0_2, %c0_3, %c0_4] : memref<1x16x32xf32, #tpu.memory_space<vmem>>, vector<1x16x32xf32>
    %3 = vector.shape_cast %2 : vector<1x16x32xf32> to vector<16x32xf32>
    %4 = arith.truncf %1 : vector<8x32xf32> to vector<8x32xbf16>
    %c0_5 = arith.constant 0 : index
    %c0_6 = arith.constant 0 : index
    %5 = vector.load %arg3[%c0_5, %c0_6] : memref<32x96xbf16, #tpu.memory_space<vmem>>, vector<32x96xbf16>
    %cst = arith.constant dense<0.000000e+00> : vector<8x96xf32>
    %6 = tpu.matmul %4, %5, %cst {dimension_numbers = #tpu.dot_dimension_numbers<[1], [0], [0], [1], [0, 0, 1, 1], [], []>} : vector<8x32xbf16>, vector<32x96xbf16>, vector<8x96xf32> -> vector<8x96xf32>
    %c0_7 = arith.constant 0 : index
    %c0_8 = arith.constant 0 : index
    %7 = vector.load %arg4[%c0_7, %c0_8] : memref<1x96xf32, #tpu.memory_space<vmem>>, vector<1x96xf32>
    %8 = vector.broadcast %7 : vector<1x96xf32> to vector<8x96xf32>
    %9 = arith.addf %6, %8 : vector<8x96xf32>
    %10 = vector.extract_strided_slice %9 {offsets = [0, 0], sizes = [8, 32], strides = [1, 1]} : vector<8x96xf32> to vector<8x32xf32>
    %11 = vector.extract_strided_slice %9 {offsets = [0, 32], sizes = [8, 32], strides = [1, 1]} : vector<8x96xf32> to vector<8x32xf32>
    %12 = vector.extract_strided_slice %9 {offsets = [0, 64], sizes = [8, 32], strides = [1, 1]} : vector<8x96xf32> to vector<8x32xf32>
    %13 = vector.extract_strided_slice %10 {offsets = [0, 0], sizes = [8, 8], strides = [1, 1]} : vector<8x32xf32> to vector<8x8xf32>
    %14 = arith.truncf %13 : vector<8x8xf32> to vector<8x8xbf16>
    %15 = vector.extract_strided_slice %11 {offsets = [0, 0], sizes = [8, 8], strides = [1, 1]} : vector<8x32xf32> to vector<8x8xf32>
    %16 = arith.truncf %15 : vector<8x8xf32> to vector<8x8xbf16>
    %17 = vector.extract_strided_slice %12 {offsets = [0, 0], sizes = [8, 8], strides = [1, 1]} : vector<8x32xf32> to vector<8x8xf32>
    %18 = arith.truncf %17 : vector<8x8xf32> to vector<8x8xbf16>
    %cst_9 = arith.constant dense<0.000000e+00> : vector<8x8xf32>
    %19 = tpu.matmul %14, %16, %cst_9 {dimension_numbers = #tpu.dot_dimension_numbers<[1], [1], [0], [0], [0, 0, 1, 0], [], []>} : vector<8x8xbf16>, vector<8x8xbf16>, vector<8x8xf32> -> vector<8x8xf32>
    %cst_10 = arith.constant 0.353553385 : f32
    %20 = vector.broadcast %cst_10 : f32 to vector<8x8xf32>
    %21 = arith.mulf %19, %20 : vector<8x8xf32>
    %cst_11 = arith.constant dense<0xFF800000> : vector<8xf32>
    %22 = vector.multi_reduction <maximumf>, %21, %cst_11 [1] : vector<8x8xf32> to vector<8xf32>
    %23 = vector.shape_cast %22 : vector<8xf32> to vector<8x1xf32>
    %24 = vector.broadcast %23 : vector<8x1xf32> to vector<8x8xf32>
    %25 = arith.subf %21, %24 : vector<8x8xf32>
    %26 = math.exp %25 : vector<8x8xf32>
    %cst_12 = arith.constant dense<0.000000e+00> : vector<8xf32>
    %27 = vector.multi_reduction <add>, %26, %cst_12 [1] : vector<8x8xf32> to vector<8xf32>
    %28 = vector.shape_cast %27 : vector<8xf32> to vector<8x1xf32>
    %29 = arith.truncf %26 : vector<8x8xf32> to vector<8x8xbf16>
    %cst_13 = arith.constant dense<0.000000e+00> : vector<8x8xf32>
    %30 = tpu.matmul %29, %18, %cst_13 {dimension_numbers = #tpu.dot_dimension_numbers<[1], [0], [0], [1], [0, 0, 1, 1], [], []>} : vector<8x8xbf16>, vector<8x8xbf16>, vector<8x8xf32> -> vector<8x8xf32>
    %31 = tpu.reciprocal %28 {approx = true} : vector<8x1xf32> -> vector<8x1xf32>
    %32 = vector.broadcast %31 : vector<8x1xf32> to vector<8x8xf32>
    %33 = arith.mulf %30, %32 : vector<8x8xf32>
    %34 = vector.extract_strided_slice %10 {offsets = [0, 8], sizes = [8, 8], strides = [1, 1]} : vector<8x32xf32> to vector<8x8xf32>
    %35 = arith.truncf %34 : vector<8x8xf32> to vector<8x8xbf16>
    %36 = vector.extract_strided_slice %11 {offsets = [0, 8], sizes = [8, 8], strides = [1, 1]} : vector<8x32xf32> to vector<8x8xf32>
    %37 = arith.truncf %36 : vector<8x8xf32> to vector<8x8xbf16>
    %38 = vector.extract_strided_slice %12 {offsets = [0, 8], sizes = [8, 8], strides = [1, 1]} : vector<8x32xf32> to vector<8x8xf32>
    %39 = arith.truncf %38 : vector<8x8xf32> to vector<8x8xbf16>
    %cst_14 = arith.constant dense<0.000000e+00> : vector<8x8xf32>
    %40 = tpu.matmul %35, %37, %cst_14 {dimension_numbers = #tpu.dot_dimension_numbers<[1], [1], [0], [0], [0, 0, 1, 0], [], []>} : vector<8x8xbf16>, vector<8x8xbf16>, vector<8x8xf32> -> vector<8x8xf32>
    %cst_15 = arith.constant 0.353553385 : f32
    %41 = vector.broadcast %cst_15 : f32 to vector<8x8xf32>
    %42 = arith.mulf %40, %41 : vector<8x8xf32>
    %cst_16 = arith.constant dense<0xFF800000> : vector<8xf32>
    %43 = vector.multi_reduction <maximumf>, %42, %cst_16 [1] : vector<8x8xf32> to vector<8xf32>
    %44 = vector.shape_cast %43 : vector<8xf32> to vector<8x1xf32>
    %45 = vector.broadcast %44 : vector<8x1xf32> to vector<8x8xf32>
    %46 = arith.subf %42, %45 : vector<8x8xf32>
    %47 = math.exp %46 : vector<8x8xf32>
    %cst_17 = arith.constant dense<0.000000e+00> : vector<8xf32>
    %48 = vector.multi_reduction <add>, %47, %cst_17 [1] : vector<8x8xf32> to vector<8xf32>
    %49 = vector.shape_cast %48 : vector<8xf32> to vector<8x1xf32>
    %50 = arith.truncf %47 : vector<8x8xf32> to vector<8x8xbf16>
    %cst_18 = arith.constant dense<0.000000e+00> : vector<8x8xf32>
    %51 = tpu.matmul %50, %39, %cst_18 {dimension_numbers = #tpu.dot_dimension_numbers<[1], [0], [0], [1], [0, 0, 1, 1], [], []>} : vector<8x8xbf16>, vector<8x8xbf16>, vector<8x8xf32> -> vector<8x8xf32>
    %52 = tpu.reciprocal %49 {approx = true} : vector<8x1xf32> -> vector<8x1xf32>
    %53 = vector.broadcast %52 : vector<8x1xf32> to vector<8x8xf32>
    %54 = arith.mulf %51, %53 : vector<8x8xf32>
    %55 = vector.extract_strided_slice %10 {offsets = [0, 16], sizes = [8, 8], strides = [1, 1]} : vector<8x32xf32> to vector<8x8xf32>
    %56 = arith.truncf %55 : vector<8x8xf32> to vector<8x8xbf16>
    %57 = vector.extract_strided_slice %11 {offsets = [0, 16], sizes = [8, 8], strides = [1, 1]} : vector<8x32xf32> to vector<8x8xf32>
    %58 = arith.truncf %57 : vector<8x8xf32> to vector<8x8xbf16>
    %59 = vector.extract_strided_slice %12 {offsets = [0, 16], sizes = [8, 8], strides = [1, 1]} : vector<8x32xf32> to vector<8x8xf32>
    %60 = arith.truncf %59 : vector<8x8xf32> to vector<8x8xbf16>
    %cst_19 = arith.constant dense<0.000000e+00> : vector<8x8xf32>
    %61 = tpu.matmul %56, %58, %cst_19 {dimension_numbers = #tpu.dot_dimension_numbers<[1], [1], [0], [0], [0, 0, 1, 0], [], []>} : vector<8x8xbf16>, vector<8x8xbf16>, vector<8x8xf32> -> vector<8x8xf32>
    %cst_20 = arith.constant 0.353553385 : f32
    %62 = vector.broadcast %cst_20 : f32 to vector<8x8xf32>
    %63 = arith.mulf %61, %62 : vector<8x8xf32>
    %cst_21 = arith.constant dense<0xFF800000> : vector<8xf32>
    %64 = vector.multi_reduction <maximumf>, %63, %cst_21 [1] : vector<8x8xf32> to vector<8xf32>
    %65 = vector.shape_cast %64 : vector<8xf32> to vector<8x1xf32>
    %66 = vector.broadcast %65 : vector<8x1xf32> to vector<8x8xf32>
    %67 = arith.subf %63, %66 : vector<8x8xf32>
    %68 = math.exp %67 : vector<8x8xf32>
    %cst_22 = arith.constant dense<0.000000e+00> : vector<8xf32>
    %69 = vector.multi_reduction <add>, %68, %cst_22 [1] : vector<8x8xf32> to vector<8xf32>
    %70 = vector.shape_cast %69 : vector<8xf32> to vector<8x1xf32>
    %71 = arith.truncf %68 : vector<8x8xf32> to vector<8x8xbf16>
    %cst_23 = arith.constant dense<0.000000e+00> : vector<8x8xf32>
    %72 = tpu.matmul %71, %60, %cst_23 {dimension_numbers = #tpu.dot_dimension_numbers<[1], [0], [0], [1], [0, 0, 1, 1], [], []>} : vector<8x8xbf16>, vector<8x8xbf16>, vector<8x8xf32> -> vector<8x8xf32>
    %73 = tpu.reciprocal %70 {approx = true} : vector<8x1xf32> -> vector<8x1xf32>
    %74 = vector.broadcast %73 : vector<8x1xf32> to vector<8x8xf32>
    %75 = arith.mulf %72, %74 : vector<8x8xf32>
    %76 = vector.extract_strided_slice %10 {offsets = [0, 24], sizes = [8, 8], strides = [1, 1]} : vector<8x32xf32> to vector<8x8xf32>
    %77 = arith.truncf %76 : vector<8x8xf32> to vector<8x8xbf16>
    %78 = vector.extract_strided_slice %11 {offsets = [0, 24], sizes = [8, 8], strides = [1, 1]} : vector<8x32xf32> to vector<8x8xf32>
    %79 = arith.truncf %78 : vector<8x8xf32> to vector<8x8xbf16>
    %80 = vector.extract_strided_slice %12 {offsets = [0, 24], sizes = [8, 8], strides = [1, 1]} : vector<8x32xf32> to vector<8x8xf32>
    %81 = arith.truncf %80 : vector<8x8xf32> to vector<8x8xbf16>
    %cst_24 = arith.constant dense<0.000000e+00> : vector<8x8xf32>
    %82 = tpu.matmul %77, %79, %cst_24 {dimension_numbers = #tpu.dot_dimension_numbers<[1], [1], [0], [0], [0, 0, 1, 0], [], []>} : vector<8x8xbf16>, vector<8x8xbf16>, vector<8x8xf32> -> vector<8x8xf32>
    %cst_25 = arith.constant 0.353553385 : f32
    %83 = vector.broadcast %cst_25 : f32 to vector<8x8xf32>
    %84 = arith.mulf %82, %83 : vector<8x8xf32>
    %cst_26 = arith.constant dense<0xFF800000> : vector<8xf32>
    %85 = vector.multi_reduction <maximumf>, %84, %cst_26 [1] : vector<8x8xf32> to vector<8xf32>
    %86 = vector.shape_cast %85 : vector<8xf32> to vector<8x1xf32>
    %87 = vector.broadcast %86 : vector<8x1xf32> to vector<8x8xf32>
    %88 = arith.subf %84, %87 : vector<8x8xf32>
    %89 = math.exp %88 : vector<8x8xf32>
    %cst_27 = arith.constant dense<0.000000e+00> : vector<8xf32>
    %90 = vector.multi_reduction <add>, %89, %cst_27 [1] : vector<8x8xf32> to vector<8xf32>
    %91 = vector.shape_cast %90 : vector<8xf32> to vector<8x1xf32>
    %92 = arith.truncf %89 : vector<8x8xf32> to vector<8x8xbf16>
    %cst_28 = arith.constant dense<0.000000e+00> : vector<8x8xf32>
    %93 = tpu.matmul %92, %81, %cst_28 {dimension_numbers = #tpu.dot_dimension_numbers<[1], [0], [0], [1], [0, 0, 1, 1], [], []>} : vector<8x8xbf16>, vector<8x8xbf16>, vector<8x8xf32> -> vector<8x8xf32>
    %94 = tpu.reciprocal %91 {approx = true} : vector<8x1xf32> -> vector<8x1xf32>
    %95 = vector.broadcast %94 : vector<8x1xf32> to vector<8x8xf32>
    %96 = arith.mulf %93, %95 : vector<8x8xf32>
    %97 = tpu.concatenate %33, %54, %75, %96 in 1 : vector<8x8xf32>, vector<8x8xf32>, vector<8x8xf32>, vector<8x8xf32> -> vector<8x32xf32>
    %98 = arith.truncf %97 : vector<8x32xf32> to vector<8x32xbf16>
    %c0_29 = arith.constant 0 : index
    %c0_30 = arith.constant 0 : index
    %99 = vector.load %arg5[%c0_29, %c0_30] : memref<32x32xbf16, #tpu.memory_space<vmem>>, vector<32x32xbf16>
    %cst_31 = arith.constant dense<0.000000e+00> : vector<8x32xf32>
    %100 = tpu.matmul %98, %99, %cst_31 {dimension_numbers = #tpu.dot_dimension_numbers<[1], [0], [0], [1], [0, 0, 1, 1], [], []>} : vector<8x32xbf16>, vector<32x32xbf16>, vector<8x32xf32> -> vector<8x32xf32>
    %c0_32 = arith.constant 0 : index
    %c0_33 = arith.constant 0 : index
    %101 = vector.load %arg6[%c0_32, %c0_33] : memref<1x32xf32, #tpu.memory_space<vmem>>, vector<1x32xf32>
    %102 = vector.broadcast %101 : vector<1x32xf32> to vector<8x32xf32>
    %103 = arith.addf %100, %102 : vector<8x32xf32>
    %104 = arith.addf %1, %103 : vector<8x32xf32>
    %cst_34 = arith.constant dense<0.000000e+00> : vector<8xf32>
    %105 = vector.multi_reduction <add>, %104, %cst_34 [1] : vector<8x32xf32> to vector<8xf32>
    %106 = vector.shape_cast %105 : vector<8xf32> to vector<8x1xf32>
    %cst_35 = arith.constant 3.200000e+01 : f32
    %107 = vector.broadcast %cst_35 : f32 to vector<8x1xf32>
    %108 = arith.divf %106, %107 : vector<8x1xf32>
    %109 = vector.broadcast %108 : vector<8x1xf32> to vector<8x32xf32>
    %110 = arith.subf %104, %109 : vector<8x32xf32>
    %111 = arith.mulf %110, %110 : vector<8x32xf32>
    %cst_36 = arith.constant dense<0.000000e+00> : vector<8xf32>
    %112 = vector.multi_reduction <add>, %111, %cst_36 [1] : vector<8x32xf32> to vector<8xf32>
    %113 = vector.shape_cast %112 : vector<8xf32> to vector<8x1xf32>
    %cst_37 = arith.constant 3.200000e+01 : f32
    %114 = vector.broadcast %cst_37 : f32 to vector<8x1xf32>
    %115 = arith.divf %113, %114 : vector<8x1xf32>
    %cst_38 = arith.constant 9.99999974E-6 : f32
    %116 = vector.broadcast %cst_38 : f32 to vector<8x1xf32>
    %117 = arith.addf %115, %116 : vector<8x1xf32>
    %118 = math.rsqrt %117 : vector<8x1xf32>
    %119 = vector.broadcast %118 : vector<8x1xf32> to vector<8x32xf32>
    %120 = arith.mulf %110, %119 : vector<8x32xf32>
    %c0_39 = arith.constant 0 : index
    %c0_40 = arith.constant 0 : index
    %121 = vector.load %arg7[%c0_39, %c0_40] : memref<1x32xf32, #tpu.memory_space<vmem>>, vector<1x32xf32>
    %122 = vector.broadcast %121 : vector<1x32xf32> to vector<8x32xf32>
    %123 = arith.mulf %120, %122 : vector<8x32xf32>
    %c0_41 = arith.constant 0 : index
    %c0_42 = arith.constant 0 : index
    %124 = vector.load %arg8[%c0_41, %c0_42] : memref<1x32xf32, #tpu.memory_space<vmem>>, vector<1x32xf32>
    %125 = vector.broadcast %124 : vector<1x32xf32> to vector<8x32xf32>
    %126 = arith.addf %123, %125 : vector<8x32xf32>
    %127 = arith.truncf %126 : vector<8x32xf32> to vector<8x32xbf16>
    %c0_43 = arith.constant 0 : index
    %c0_44 = arith.constant 0 : index
    %128 = vector.load %arg9[%c0_43, %c0_44] : memref<32x32xbf16, #tpu.memory_space<vmem>>, vector<32x32xbf16>
    %cst_45 = arith.constant dense<0.000000e+00> : vector<8x32xf32>
    %129 = tpu.matmul %127, %128, %cst_45 {dimension_numbers = #tpu.dot_dimension_numbers<[1], [0], [0], [1], [0, 0, 1, 1], [], []>} : vector<8x32xbf16>, vector<32x32xbf16>, vector<8x32xf32> -> vector<8x32xf32>
    %c0_46 = arith.constant 0 : index
    %c0_47 = arith.constant 0 : index
    %130 = vector.load %arg10[%c0_46, %c0_47] : memref<1x32xf32, #tpu.memory_space<vmem>>, vector<1x32xf32>
    %131 = vector.broadcast %130 : vector<1x32xf32> to vector<8x32xf32>
    %132 = arith.addf %129, %131 : vector<8x32xf32>
    %133 = arith.truncf %3 : vector<16x32xf32> to vector<16x32xbf16>
    %c0_48 = arith.constant 0 : index
    %c0_49 = arith.constant 0 : index
    %134 = vector.load %arg11[%c0_48, %c0_49] : memref<32x64xbf16, #tpu.memory_space<vmem>>, vector<32x64xbf16>
    %cst_50 = arith.constant dense<0.000000e+00> : vector<16x64xf32>
    %135 = tpu.matmul %133, %134, %cst_50 {dimension_numbers = #tpu.dot_dimension_numbers<[1], [0], [0], [1], [0, 0, 1, 1], [], []>} : vector<16x32xbf16>, vector<32x64xbf16>, vector<16x64xf32> -> vector<16x64xf32>
    %c0_51 = arith.constant 0 : index
    %c0_52 = arith.constant 0 : index
    %136 = vector.load %arg12[%c0_51, %c0_52] : memref<1x64xf32, #tpu.memory_space<vmem>>, vector<1x64xf32>
    %137 = vector.broadcast %136 : vector<1x64xf32> to vector<16x64xf32>
    %138 = arith.addf %135, %137 : vector<16x64xf32>
    %139 = vector.extract_strided_slice %138 {offsets = [0, 0], sizes = [16, 32], strides = [1, 1]} : vector<16x64xf32> to vector<16x32xf32>
    %140 = vector.extract_strided_slice %138 {offsets = [0, 32], sizes = [16, 32], strides = [1, 1]} : vector<16x64xf32> to vector<16x32xf32>
    %141 = vector.extract_strided_slice %132 {offsets = [0, 0], sizes = [8, 8], strides = [1, 1]} : vector<8x32xf32> to vector<8x8xf32>
    %142 = arith.truncf %141 : vector<8x8xf32> to vector<8x8xbf16>
    %143 = vector.extract_strided_slice %139 {offsets = [0, 0], sizes = [16, 8], strides = [1, 1]} : vector<16x32xf32> to vector<16x8xf32>
    %144 = arith.truncf %143 : vector<16x8xf32> to vector<16x8xbf16>
    %145 = vector.extract_strided_slice %140 {offsets = [0, 0], sizes = [16, 8], strides = [1, 1]} : vector<16x32xf32> to vector<16x8xf32>
    %146 = arith.truncf %145 : vector<16x8xf32> to vector<16x8xbf16>
    %cst_53 = arith.constant dense<0.000000e+00> : vector<8x16xf32>
    %147 = tpu.matmul %142, %144, %cst_53 {dimension_numbers = #tpu.dot_dimension_numbers<[1], [1], [0], [0], [0, 0, 1, 0], [], []>} : vector<8x8xbf16>, vector<16x8xbf16>, vector<8x16xf32> -> vector<8x16xf32>
    %cst_54 = arith.constant 0.353553385 : f32
    %148 = vector.broadcast %cst_54 : f32 to vector<8x16xf32>
    %149 = arith.mulf %147, %148 : vector<8x16xf32>
    %cst_55 = arith.constant dense<0xFF800000> : vector<8xf32>
    %150 = vector.multi_reduction <maximumf>, %149, %cst_55 [1] : vector<8x16xf32> to vector<8xf32>
    %151 = vector.shape_cast %150 : vector<8xf32> to vector<8x1xf32>
    %152 = vector.broadcast %151 : vector<8x1xf32> to vector<8x16xf32>
    %153 = arith.subf %149, %152 : vector<8x16xf32>
    %154 = math.exp %153 : vector<8x16xf32>
    %cst_56 = arith.constant dense<0.000000e+00> : vector<8xf32>
    %155 = vector.multi_reduction <add>, %154, %cst_56 [1] : vector<8x16xf32> to vector<8xf32>
    %156 = vector.shape_cast %155 : vector<8xf32> to vector<8x1xf32>
    %157 = arith.truncf %154 : vector<8x16xf32> to vector<8x16xbf16>
    %cst_57 = arith.constant dense<0.000000e+00> : vector<8x8xf32>
    %158 = tpu.matmul %157, %146, %cst_57 {dimension_numbers = #tpu.dot_dimension_numbers<[1], [0], [0], [1], [0, 0, 1, 1], [], []>} : vector<8x16xbf16>, vector<16x8xbf16>, vector<8x8xf32> -> vector<8x8xf32>
    %159 = tpu.reciprocal %156 {approx = true} : vector<8x1xf32> -> vector<8x1xf32>
    %160 = vector.broadcast %159 : vector<8x1xf32> to vector<8x8xf32>
    %161 = arith.mulf %158, %160 : vector<8x8xf32>
    %162 = vector.extract_strided_slice %132 {offsets = [0, 8], sizes = [8, 8], strides = [1, 1]} : vector<8x32xf32> to vector<8x8xf32>
    %163 = arith.truncf %162 : vector<8x8xf32> to vector<8x8xbf16>
    %164 = vector.extract_strided_slice %139 {offsets = [0, 8], sizes = [16, 8], strides = [1, 1]} : vector<16x32xf32> to vector<16x8xf32>
    %165 = arith.truncf %164 : vector<16x8xf32> to vector<16x8xbf16>
    %166 = vector.extract_strided_slice %140 {offsets = [0, 8], sizes = [16, 8], strides = [1, 1]} : vector<16x32xf32> to vector<16x8xf32>
    %167 = arith.truncf %166 : vector<16x8xf32> to vector<16x8xbf16>
    %cst_58 = arith.constant dense<0.000000e+00> : vector<8x16xf32>
    %168 = tpu.matmul %163, %165, %cst_58 {dimension_numbers = #tpu.dot_dimension_numbers<[1], [1], [0], [0], [0, 0, 1, 0], [], []>} : vector<8x8xbf16>, vector<16x8xbf16>, vector<8x16xf32> -> vector<8x16xf32>
    %cst_59 = arith.constant 0.353553385 : f32
    %169 = vector.broadcast %cst_59 : f32 to vector<8x16xf32>
    %170 = arith.mulf %168, %169 : vector<8x16xf32>
    %cst_60 = arith.constant dense<0xFF800000> : vector<8xf32>
    %171 = vector.multi_reduction <maximumf>, %170, %cst_60 [1] : vector<8x16xf32> to vector<8xf32>
    %172 = vector.shape_cast %171 : vector<8xf32> to vector<8x1xf32>
    %173 = vector.broadcast %172 : vector<8x1xf32> to vector<8x16xf32>
    %174 = arith.subf %170, %173 : vector<8x16xf32>
    %175 = math.exp %174 : vector<8x16xf32>
    %cst_61 = arith.constant dense<0.000000e+00> : vector<8xf32>
    %176 = vector.multi_reduction <add>, %175, %cst_61 [1] : vector<8x16xf32> to vector<8xf32>
    %177 = vector.shape_cast %176 : vector<8xf32> to vector<8x1xf32>
    %178 = arith.truncf %175 : vector<8x16xf32> to vector<8x16xbf16>
    %cst_62 = arith.constant dense<0.000000e+00> : vector<8x8xf32>
    %179 = tpu.matmul %178, %167, %cst_62 {dimension_numbers = #tpu.dot_dimension_numbers<[1], [0], [0], [1], [0, 0, 1, 1], [], []>} : vector<8x16xbf16>, vector<16x8xbf16>, vector<8x8xf32> -> vector<8x8xf32>
    %180 = tpu.reciprocal %177 {approx = true} : vector<8x1xf32> -> vector<8x1xf32>
    %181 = vector.broadcast %180 : vector<8x1xf32> to vector<8x8xf32>
    %182 = arith.mulf %179, %181 : vector<8x8xf32>
    %183 = vector.extract_strided_slice %132 {offsets = [0, 16], sizes = [8, 8], strides = [1, 1]} : vector<8x32xf32> to vector<8x8xf32>
    %184 = arith.truncf %183 : vector<8x8xf32> to vector<8x8xbf16>
    %185 = vector.extract_strided_slice %139 {offsets = [0, 16], sizes = [16, 8], strides = [1, 1]} : vector<16x32xf32> to vector<16x8xf32>
    %186 = arith.truncf %185 : vector<16x8xf32> to vector<16x8xbf16>
    %187 = vector.extract_strided_slice %140 {offsets = [0, 16], sizes = [16, 8], strides = [1, 1]} : vector<16x32xf32> to vector<16x8xf32>
    %188 = arith.truncf %187 : vector<16x8xf32> to vector<16x8xbf16>
    %cst_63 = arith.constant dense<0.000000e+00> : vector<8x16xf32>
    %189 = tpu.matmul %184, %186, %cst_63 {dimension_numbers = #tpu.dot_dimension_numbers<[1], [1], [0], [0], [0, 0, 1, 0], [], []>} : vector<8x8xbf16>, vector<16x8xbf16>, vector<8x16xf32> -> vector<8x16xf32>
    %cst_64 = arith.constant 0.353553385 : f32
    %190 = vector.broadcast %cst_64 : f32 to vector<8x16xf32>
    %191 = arith.mulf %189, %190 : vector<8x16xf32>
    %cst_65 = arith.constant dense<0xFF800000> : vector<8xf32>
    %192 = vector.multi_reduction <maximumf>, %191, %cst_65 [1] : vector<8x16xf32> to vector<8xf32>
    %193 = vector.shape_cast %192 : vector<8xf32> to vector<8x1xf32>
    %194 = vector.broadcast %193 : vector<8x1xf32> to vector<8x16xf32>
    %195 = arith.subf %191, %194 : vector<8x16xf32>
    %196 = math.exp %195 : vector<8x16xf32>
    %cst_66 = arith.constant dense<0.000000e+00> : vector<8xf32>
    %197 = vector.multi_reduction <add>, %196, %cst_66 [1] : vector<8x16xf32> to vector<8xf32>
    %198 = vector.shape_cast %197 : vector<8xf32> to vector<8x1xf32>
    %199 = arith.truncf %196 : vector<8x16xf32> to vector<8x16xbf16>
    %cst_67 = arith.constant dense<0.000000e+00> : vector<8x8xf32>
    %200 = tpu.matmul %199, %188, %cst_67 {dimension_numbers = #tpu.dot_dimension_numbers<[1], [0], [0], [1], [0, 0, 1, 1], [], []>} : vector<8x16xbf16>, vector<16x8xbf16>, vector<8x8xf32> -> vector<8x8xf32>
    %201 = tpu.reciprocal %198 {approx = true} : vector<8x1xf32> -> vector<8x1xf32>
    %202 = vector.broadcast %201 : vector<8x1xf32> to vector<8x8xf32>
    %203 = arith.mulf %200, %202 : vector<8x8xf32>
    %204 = vector.extract_strided_slice %132 {offsets = [0, 24], sizes = [8, 8], strides = [1, 1]} : vector<8x32xf32> to vector<8x8xf32>
    %205 = arith.truncf %204 : vector<8x8xf32> to vector<8x8xbf16>
    %206 = vector.extract_strided_slice %139 {offsets = [0, 24], sizes = [16, 8], strides = [1, 1]} : vector<16x32xf32> to vector<16x8xf32>
    %207 = arith.truncf %206 : vector<16x8xf32> to vector<16x8xbf16>
    %208 = vector.extract_strided_slice %140 {offsets = [0, 24], sizes = [16, 8], strides = [1, 1]} : vector<16x32xf32> to vector<16x8xf32>
    %209 = arith.truncf %208 : vector<16x8xf32> to vector<16x8xbf16>
    %cst_68 = arith.constant dense<0.000000e+00> : vector<8x16xf32>
    %210 = tpu.matmul %205, %207, %cst_68 {dimension_numbers = #tpu.dot_dimension_numbers<[1], [1], [0], [0], [0, 0, 1, 0], [], []>} : vector<8x8xbf16>, vector<16x8xbf16>, vector<8x16xf32> -> vector<8x16xf32>
    %cst_69 = arith.constant 0.353553385 : f32
    %211 = vector.broadcast %cst_69 : f32 to vector<8x16xf32>
    %212 = arith.mulf %210, %211 : vector<8x16xf32>
    %cst_70 = arith.constant dense<0xFF800000> : vector<8xf32>
    %213 = vector.multi_reduction <maximumf>, %212, %cst_70 [1] : vector<8x16xf32> to vector<8xf32>
    %214 = vector.shape_cast %213 : vector<8xf32> to vector<8x1xf32>
    %215 = vector.broadcast %214 : vector<8x1xf32> to vector<8x16xf32>
    %216 = arith.subf %212, %215 : vector<8x16xf32>
    %217 = math.exp %216 : vector<8x16xf32>
    %cst_71 = arith.constant dense<0.000000e+00> : vector<8xf32>
    %218 = vector.multi_reduction <add>, %217, %cst_71 [1] : vector<8x16xf32> to vector<8xf32>
    %219 = vector.shape_cast %218 : vector<8xf32> to vector<8x1xf32>
    %220 = arith.truncf %217 : vector<8x16xf32> to vector<8x16xbf16>
    %cst_72 = arith.constant dense<0.000000e+00> : vector<8x8xf32>
    %221 = tpu.matmul %220, %209, %cst_72 {dimension_numbers = #tpu.dot_dimension_numbers<[1], [0], [0], [1], [0, 0, 1, 1], [], []>} : vector<8x16xbf16>, vector<16x8xbf16>, vector<8x8xf32> -> vector<8x8xf32>
    %222 = tpu.reciprocal %219 {approx = true} : vector<8x1xf32> -> vector<8x1xf32>
    %223 = vector.broadcast %222 : vector<8x1xf32> to vector<8x8xf32>
    %224 = arith.mulf %221, %223 : vector<8x8xf32>
    %225 = tpu.concatenate %161, %182, %203, %224 in 1 : vector<8x8xf32>, vector<8x8xf32>, vector<8x8xf32>, vector<8x8xf32> -> vector<8x32xf32>
    %226 = arith.truncf %225 : vector<8x32xf32> to vector<8x32xbf16>
    %c0_73 = arith.constant 0 : index
    %c0_74 = arith.constant 0 : index
    %227 = vector.load %arg13[%c0_73, %c0_74] : memref<32x32xbf16, #tpu.memory_space<vmem>>, vector<32x32xbf16>
    %cst_75 = arith.constant dense<0.000000e+00> : vector<8x32xf32>
    %228 = tpu.matmul %226, %227, %cst_75 {dimension_numbers = #tpu.dot_dimension_numbers<[1], [0], [0], [1], [0, 0, 1, 1], [], []>} : vector<8x32xbf16>, vector<32x32xbf16>, vector<8x32xf32> -> vector<8x32xf32>
    %c0_76 = arith.constant 0 : index
    %c0_77 = arith.constant 0 : index
    %229 = vector.load %arg14[%c0_76, %c0_77] : memref<1x32xf32, #tpu.memory_space<vmem>>, vector<1x32xf32>
    %230 = vector.broadcast %229 : vector<1x32xf32> to vector<8x32xf32>
    %231 = arith.addf %228, %230 : vector<8x32xf32>
    %232 = arith.addf %126, %231 : vector<8x32xf32>
    %cst_78 = arith.constant dense<0.000000e+00> : vector<8xf32>
    %233 = vector.multi_reduction <add>, %232, %cst_78 [1] : vector<8x32xf32> to vector<8xf32>
    %234 = vector.shape_cast %233 : vector<8xf32> to vector<8x1xf32>
    %cst_79 = arith.constant 3.200000e+01 : f32
    %235 = vector.broadcast %cst_79 : f32 to vector<8x1xf32>
    %236 = arith.divf %234, %235 : vector<8x1xf32>
    %237 = vector.broadcast %236 : vector<8x1xf32> to vector<8x32xf32>
    %238 = arith.subf %232, %237 : vector<8x32xf32>
    %239 = arith.mulf %238, %238 : vector<8x32xf32>
    %cst_80 = arith.constant dense<0.000000e+00> : vector<8xf32>
    %240 = vector.multi_reduction <add>, %239, %cst_80 [1] : vector<8x32xf32> to vector<8xf32>
    %241 = vector.shape_cast %240 : vector<8xf32> to vector<8x1xf32>
    %cst_81 = arith.constant 3.200000e+01 : f32
    %242 = vector.broadcast %cst_81 : f32 to vector<8x1xf32>
    %243 = arith.divf %241, %242 : vector<8x1xf32>
    %cst_82 = arith.constant 9.99999974E-6 : f32
    %244 = vector.broadcast %cst_82 : f32 to vector<8x1xf32>
    %245 = arith.addf %243, %244 : vector<8x1xf32>
    %246 = math.rsqrt %245 : vector<8x1xf32>
    %247 = vector.broadcast %246 : vector<8x1xf32> to vector<8x32xf32>
    %248 = arith.mulf %238, %247 : vector<8x32xf32>
    %c0_83 = arith.constant 0 : index
    %c0_84 = arith.constant 0 : index
    %249 = vector.load %arg15[%c0_83, %c0_84] : memref<1x32xf32, #tpu.memory_space<vmem>>, vector<1x32xf32>
    %250 = vector.broadcast %249 : vector<1x32xf32> to vector<8x32xf32>
    %251 = arith.mulf %248, %250 : vector<8x32xf32>
    %c0_85 = arith.constant 0 : index
    %c0_86 = arith.constant 0 : index
    %252 = vector.load %arg16[%c0_85, %c0_86] : memref<1x32xf32, #tpu.memory_space<vmem>>, vector<1x32xf32>
    %253 = vector.broadcast %252 : vector<1x32xf32> to vector<8x32xf32>
    %254 = arith.addf %251, %253 : vector<8x32xf32>
    %255 = arith.truncf %254 : vector<8x32xf32> to vector<8x32xbf16>
    %c0_87 = arith.constant 0 : index
    %c0_88 = arith.constant 0 : index
    %256 = vector.load %arg17[%c0_87, %c0_88] : memref<32x64xbf16, #tpu.memory_space<vmem>>, vector<32x64xbf16>
    %cst_89 = arith.constant dense<0.000000e+00> : vector<8x64xf32>
    %257 = tpu.matmul %255, %256, %cst_89 {dimension_numbers = #tpu.dot_dimension_numbers<[1], [0], [0], [1], [0, 0, 1, 1], [], []>} : vector<8x32xbf16>, vector<32x64xbf16>, vector<8x64xf32> -> vector<8x64xf32>
    %c0_90 = arith.constant 0 : index
    %c0_91 = arith.constant 0 : index
    %258 = vector.load %arg18[%c0_90, %c0_91] : memref<1x64xf32, #tpu.memory_space<vmem>>, vector<1x64xf32>
    %259 = vector.broadcast %258 : vector<1x64xf32> to vector<8x64xf32>
    %260 = arith.addf %257, %259 : vector<8x64xf32>
    %cst_92 = arith.constant 0.000000e+00 : f32
    %261 = vector.broadcast %cst_92 : f32 to vector<8x64xf32>
    %262 = arith.maximumf %260, %261 : vector<8x64xf32>
    %263 = arith.truncf %262 : vector<8x64xf32> to vector<8x64xbf16>
    %c0_93 = arith.constant 0 : index
    %c0_94 = arith.constant 0 : index
    %264 = vector.load %arg19[%c0_93, %c0_94] : memref<64x32xbf16, #tpu.memory_space<vmem>>, vector<64x32xbf16>
    %cst_95 = arith.constant dense<0.000000e+00> : vector<8x32xf32>
    %265 = tpu.matmul %263, %264, %cst_95 {dimension_numbers = #tpu.dot_dimension_numbers<[1], [0], [0], [1], [0, 0, 1, 1], [], []>} : vector<8x64xbf16>, vector<64x32xbf16>, vector<8x32xf32> -> vector<8x32xf32>
    %c0_96 = arith.constant 0 : index
    %c0_97 = arith.constant 0 : index
    %266 = vector.load %arg20[%c0_96, %c0_97] : memref<1x32xf32, #tpu.memory_space<vmem>>, vector<1x32xf32>
    %267 = vector.broadcast %266 : vector<1x32xf32> to vector<8x32xf32>
    %268 = arith.addf %265, %267 : vector<8x32xf32>
    %269 = arith.addf %254, %268 : vector<8x32xf32>
    %cst_98 = arith.constant dense<0.000000e+00> : vector<8xf32>
    %270 = vector.multi_reduction <add>, %269, %cst_98 [1] : vector<8x32xf32> to vector<8xf32>
    %271 = vector.shape_cast %270 : vector<8xf32> to vector<8x1xf32>
    %cst_99 = arith.constant 3.200000e+01 : f32
    %272 = vector.broadcast %cst_99 : f32 to vector<8x1xf32>
    %273 = arith.divf %271, %272 : vector<8x1xf32>
    %274 = vector.broadcast %273 : vector<8x1xf32> to vector<8x32xf32>
    %275 = arith.subf %269, %274 : vector<8x32xf32>
    %276 = arith.mulf %275, %275 : vector<8x32xf32>
    %cst_100 = arith.constant dense<0.000000e+00> : vector<8xf32>
    %277 = vector.multi_reduction <add>, %276, %cst_100 [1] : vector<8x32xf32> to vector<8xf32>
    %278 = vector.shape_cast %277 : vector<8xf32> to vector<8x1xf32>
    %cst_101 = arith.constant 3.200000e+01 : f32
    %279 = vector.broadcast %cst_101 : f32 to vector<8x1xf32>
    %280 = arith.divf %278, %279 : vector<8x1xf32>
    %cst_102 = arith.constant 9.99999974E-6 : f32
    %281 = vector.broadcast %cst_102 : f32 to vector<8x1xf32>
    %282 = arith.addf %280, %281 : vector<8x1xf32>
    %283 = math.rsqrt %282 : vector<8x1xf32>
    %284 = vector.broadcast %283 : vector<8x1xf32> to vector<8x32xf32>
    %285 = arith.mulf %275, %284 : vector<8x32xf32>
    %c0_103 = arith.constant 0 : index
    %c0_104 = arith.constant 0 : index
    %286 = vector.load %arg21[%c0_103, %c0_104] : memref<1x32xf32, #tpu.memory_space<vmem>>, vector<1x32xf32>
    %287 = vector.broadcast %286 : vector<1x32xf32> to vector<8x32xf32>
    %288 = arith.mulf %285, %287 : vector<8x32xf32>
    %c0_105 = arith.constant 0 : index
    %c0_106 = arith.constant 0 : index
    %289 = vector.load %arg22[%c0_105, %c0_106] : memref<1x32xf32, #tpu.memory_space<vmem>>, vector<1x32xf32>
    %290 = vector.broadcast %289 : vector<1x32xf32> to vector<8x32xf32>
    %291 = arith.addf %288, %290 : vector<8x32xf32>
    %c0_107 = arith.constant 0 : index
    %c0_108 = arith.constant 0 : index
    %c0_109 = arith.constant 0 : index
    %292 = vector.load %arg23[%c0_107, %c0_108, %c0_109] : memref<1x8x32xf32, #tpu.memory_space<vmem>>, vector<1x8x32xf32>
    %293 = vector.shape_cast %292 : vector<1x8x32xf32> to vector<8x32xf32>
    %294 = vector.shape_cast %291 : vector<8x32xf32> to vector<1x8x32xf32>
    tpu.vector_store %arg23[%c0_107, %c0_108, %c0_109], %294 {strides = array<i32>} : memref<1x8x32xf32, #tpu.memory_space<vmem>>, vector<1x8x32xf32>,
    return
  }
  func.func @transform_0(%arg0: i32) -> (i32, i32, i32) {
    %c0_i32 = arith.constant 0 : i32
    %c0_i32_0 = arith.constant 0 : i32
    %c0_i32_1 = arith.constant 0 : i32
    return %arg0, %c0_i32, %c0_i32_0 : i32, i32, i32
  }
  func.func @transform_1(%arg0: i32) -> (i32, i32, i32) {
    %c0_i32 = arith.constant 0 : i32
    %c0_i32_0 = arith.constant 0 : i32
    %c0_i32_1 = arith.constant 0 : i32
    return %arg0, %c0_i32, %c0_i32_0 : i32, i32, i32
  }
  func.func @transform_2(%arg0: i32) -> (i32, i32) {
    %c0_i32 = arith.constant 0 : i32
    %c0_i32_0 = arith.constant 0 : i32
    %c0_i32_1 = arith.constant 0 : i32
    return %c0_i32, %c0_i32_0 : i32, i32
  }
  func.func @transform_3(%arg0: i32) -> (i32, i32) {
    %c0_i32 = arith.constant 0 : i32
    %c0_i32_0 = arith.constant 0 : i32
    %c0_i32_1 = arith.constant 0 : i32
    return %c0_i32, %c0_i32_0 : i32, i32
  }
  func.func @transform_4(%arg0: i32) -> (i32, i32) {
    %c0_i32 = arith.constant 0 : i32
    %c0_i32_0 = arith.constant 0 : i32
    %c0_i32_1 = arith.constant 0 : i32
    return %c0_i32, %c0_i32_0 : i32, i32
  }
  func.func @transform_5(%arg0: i32) -> (i32, i32) {
    %c0_i32 = arith.constant 0 : i32
    %c0_i32_0 = arith.constant 0 : i32
    %c0_i32_1 = arith.constant 0 : i32
    return %c0_i32, %c0_i32_0 : i32, i32
  }
  func.func @transform_6(%arg0: i32) -> (i32, i32) {
    %c0_i32 = arith.constant 0 : i32
    %c0_i32_0 = arith.constant 0 : i32
    %c0_i32_1 = arith.constant 0 : i32
    return %c0_i32, %c0_i32_0 : i32, i32
  }
  func.func @transform_7(%arg0: i32) -> (i32, i32) {
    %c0_i32 = arith.constant 0 : i32
    %c0_i32_0 = arith.constant 0 : i32
    %c0_i32_1 = arith.constant 0 : i32
    return %c0_i32, %c0_i32_0 : i32, i32
  }
  func.func @transform_8(%arg0: i32) -> (i32, i32) {
    %c0_i32 = arith.constant 0 : i32
    %c0_i32_0 = arith.constant 0 : i32
    %c0_i32_1 = arith.constant 0 : i32
    return %c0_i32, %c0_i32_0 : i32, i32
  }
  func.func @transform_9(%arg0: i32) -> (i32, i32) {
    %c0_i32 = arith.constant 0 : i32
    %c0_i32_0 = arith.constant 0 : i32
    %c0_i32_1 = arith.constant 0 : i32
    return %c0_i32, %c0_i32_0 : i32, i32
  }
  func.func @transform_10(%arg0: i32) -> (i32, i32) {
    %c0_i32 = arith.constant 0 : i32
    %c0_i32_0 = arith.constant 0 : i32
    %c0_i32_1 = arith.constant 0 : i32
    return %c0_i32, %c0_i32_0 : i32, i32
  }
  func.func @transform_11(%arg0: i32) -> (i32, i32) {
    %c0_i32 = arith.constant 0 : i32
    %c0_i32_0 = arith.constant 0 : i32
    %c0_i32_1 = arith.constant 0 : i32
    return %c0_i32, %c0_i32_0 : i32, i32
  }
  func.func @transform_12(%arg0: i32) -> (i32, i32) {
    %c0_i32 = arith.constant 0 : i32
    %c0_i32_0 = arith.constant 0 : i32
    %c0_i32_1 = arith.constant 0 : i32
    return %c0_i32, %c0_i32_0 : i32, i32
  }
  func.func @transform_13(%arg0: i32) -> (i32, i32) {
    %c0_i32 = arith.constant 0 : i32
    %c0_i32_0 = arith.constant 0 : i32
    %c0_i32_1 = arith.constant 0 : i32
    return %c0_i32, %c0_i32_0 : i32, i32
  }
  func.func @transform_14(%arg0: i32) -> (i32, i32) {
    %c0_i32 = arith.constant 0 : i32
    %c0_i32_0 = arith.constant 0 : i32
    %c0_i32_1 = arith.constant 0 : i32
    return %c0_i32, %c0_i32_0 : i32, i32
  }
  func.func @transform_15(%arg0: i32) -> (i32, i32) {
    %c0_i32 = arith.constant 0 : i32
    %c0_i32_0 = arith.constant 0 : i32
    %c0_i32_1 = arith.constant 0 : i32
    return %c0_i32, %c0_i32_0 : i32, i32
  }
  func.func @transform_16(%arg0: i32) -> (i32, i32) {
    %c0_i32 = arith.constant 0 : i32
    %c0_i32_0 = arith.constant 0 : i32
    %c0_i32_1 = arith.constant 0 : i32
    return %c0_i32, %c0_i32_0 : i32, i32
  }
  func.func @transform_17(%arg0: i32) -> (i32, i32) {
    %c0_i32 = arith.constant 0 : i32
    %c0_i32_0 = arith.constant 0 : i32
    %c0_i32_1 = arith.constant 0 : i32
    return %c0_i32, %c0_i32_0 : i32, i32
  }
  func.func @transform_18(%arg0: i32) -> (i32, i32) {
    %c0_i32 = arith.constant 0 : i32
    %c0_i32_0 = arith.constant 0 : i32
    %c0_i32_1 = arith.constant 0 : i32
    return %c0_i32, %c0_i32_0 : i32, i32
  }
  func.func @transform_19(%arg0: i32) -> (i32, i32) {
    %c0_i32 = arith.constant 0 : i32
    %c0_i32_0 = arith.constant 0 : i32
    %c0_i32_1 = arith.constant 0 : i32
    return %c0_i32, %c0_i32_0 : i32, i32
  }
  func.func @transform_20(%arg0: i32) -> (i32, i32) {
    %c0_i32 = arith.constant 0 : i32
    %c0_i32_0 = arith.constant 0 : i32
    %c0_i32_1 = arith.constant 0 : i32
    return %c0_i32, %c0_i32_0 : i32, i32
  }
  func.func @transform_21(%arg0: i32) -> (i32, i32) {
    %c0_i32 = arith.constant 0 : i32
    %c0_i32_0 = arith.constant 0 : i32
    %c0_i32_1 = arith.constant 0 : i32
    return %c0_i32, %c0_i32_0 : i32, i32
  }
  func.func @transform_22(%arg0: i32) -> (i32, i32, i32) {
    %c0_i32 = arith.constant 0 : i32
    %c0_i32_0 = arith.constant 0 : i32
    %c0_i32_1 = arith.constant 0 : i32
    return %arg0, %c0_i32, %c0_i32_0 : i32, i32, i32
  }
}

module attributes {stable_mosaic.version = 11 : i64} {
  func.func @_decoder_layer_kernel(%arg0: i32, %arg1: memref<1x8x32xf32, #tpu.memory_space<vmem>>, %arg2: memref<1x16x32xf32, #tpu.memory_space<vmem>>, %arg3: memref<32x96xbf16, #tpu.memory_space<vmem>>, %arg4: memref<1x96xf32, #tpu.memory_space<vmem>>, %arg5: memref<32x32xbf16, #tpu.memory_space<vmem>>, %arg6: memref<1x32xf32, #tpu.memory_space<vmem>>, %arg7: memref<1x32xf32, #tpu.memory_space<vmem>>, %arg8: memref<1x32xf32, #tpu.memory_space<vmem>>, %arg9: memref<32x32xbf16, #tpu.memory_space<vmem>>, %arg10: memref<1x32xf32, #tpu.memory_space<vmem>>, %arg11: memref<32x64xbf16, #tpu.memory_space<vmem>>, %arg12: memref<1x64xf32, #tpu.memory_space<vmem>>, %arg13: memref<32x32xbf16, #tpu.memory_space<vmem>>, %arg14: memref<1x32xf32, #tpu.memory_space<vmem>>, %arg15: memref<1x32xf32, #tpu.memory_space<vmem>>, %arg16: memref<1x32xf32, #tpu.memory_space<vmem>>, %arg17: memref<32x64xbf16, #tpu.memory_space<vmem>>, %arg18: memref<1x64xf32, #tpu.memory_space<vmem>>, %arg19: memref<64x32xbf16, #tpu.memory_space<vmem>>, %arg20: memref<1x32xf32, #tpu.memory_space<vmem>>, %arg21: memref<1x32xf32, #tpu.memory_space<vmem>>, %arg22: memref<1x32xf32, #tpu.memory_space<vmem>>, %arg23: memref<1x8x32xf32, #tpu.memory_space<vmem>>) attributes {dimension_semantics = [#tpu.dimension_semantics<parallel>], iteration_bounds = array<i64: 2>, scalar_prefetch = 0 : i64, scratch_operands = 0 : i64, tpu.core_type = #tpu.core_type<tc>, window_params = [{transform_indices = @transform_0, window_bounds = array<i64: 1, 8, 32>}, {transform_indices = @transform_1, window_bounds = array<i64: 1, 16, 32>}, {pipeline_mode = #tpu.pipeline_mode<synchronous>, transform_indices = @transform_2, window_bounds = array<i64: 32, 96>}, {pipeline_mode = #tpu.pipeline_mode<synchronous>, transform_indices = @transform_3, window_bounds = array<i64: 1, 96>}, {pipeline_mode = #tpu.pipeline_mode<synchronous>, transform_indices = @transform_4, window_bounds = array<i64: 32, 32>}, {pipeline_mode = #tpu.pipeline_mode<synchronous>, transform_indices = @transform_5, window_bounds = array<i64: 1, 32>}, {pipeline_mode = #tpu.pipeline_mode<synchronous>, transform_indices = @transform_6, window_bounds = array<i64: 1, 32>}, {pipeline_mode = #tpu.pipeline_mode<synchronous>, transform_indices = @transform_7, window_bounds = array<i64: 1, 32>}, {pipeline_mode = #tpu.pipeline_mode<synchronous>, transform_indices = @transform_8, window_bounds = array<i64: 32, 32>}, {pipeline_mode = #tpu.pipeline_mode<synchronous>, transform_indices = @transform_9, window_bounds = array<i64: 1, 32>}, {pipeline_mode = #tpu.pipeline_mode<synchronous>, transform_indices = @transform_10, window_bounds = array<i64: 32, 64>}, {pipeline_mode = #tpu.pipeline_mode<synchronous>, transform_indices = @transform_11, window_bounds = array<i64: 1, 64>}, {pipeline_mode = #tpu.pipeline_mode<synchronous>, transform_indices = @transform_12, window_bounds = array<i64: 32, 32>}, {pipeline_mode = #tpu.pipeline_mode<synchronous>, transform_indices = @transform_13, window_bounds = array<i64: 1, 32>}, {pipeline_mode = #tpu.pipeline_mode<synchronous>, transform_indices = @transform_14, window_bounds = array<i64: 1, 32>}, {pipeline_mode = #tpu.pipeline_mode<synchronous>, transform_indices = @transform_15, window_bounds = array<i64: 1, 32>}, {pipeline_mode = #tpu.pipeline_mode<synchronous>, transform_indices = @transform_16, window_bounds = array<i64: 32, 64>}, {pipeline_mode = #tpu.pipeline_mode<synchronous>, transform_indices = @transform_17, window_bounds = array<i64: 1, 64>}, {pipeline_mode = #tpu.pipeline_mode<synchronous>, transform_indices = @transform_18, window_bounds = array<i64: 64, 32>}, {pipeline_mode = #tpu.pipeline_mode<synchronous>, transform_indices = @transform_19, window_bounds = array<i64: 1, 32>}, {pipeline_mode = #tpu.pipeline_mode<synchronous>, transform_indices = @transform_20, window_bounds = array<i64: 1, 32>}, {pipeline_mode = #tpu.pipeline_mode<synchronous>, transform_indices = @transform_21, window_bounds = array<i64: 1, 32>}, {transform_indices = @transform_22, window_bounds = array<i64: 1, 8, 32>}]} {
    %c0 = arith.constant 0 : index
    %c0_0 = arith.constant 0 : index
    %c0_1 = arith.constant 0 : index
    %0 = vector.load %arg1[%c0, %c0_0, %c0_1] : memref<1x8x32xf32, #tpu.memory_space<vmem>>, vector<1x8x32xf32>
    %1 = vector.shape_cast %0 : vector<1x8x32xf32> to vector<8x32xf32>
    %c0_2 = arith.constant 0 : index
    %c0_3 = arith.constant 0 : index
    %c0_4 = arith.constant 0 : index
    %2 = vector.load %arg2[%c0_2, %c0_3, %c0_4] : memref<1x16x32xf32, #tpu.memory_space<vmem>>, vector<1x16x32xf32>
    %3 = vector.shape_cast %2 : vector<1x16x32xf32> to vector<16x32xf32>
    %4 = arith.truncf %1 : vector<8x32xf32> to vector<8x32xbf16>
    %c0_5 = arith.constant 0 : index
    %c0_6 = arith.constant 0 : index
    %5 = vector.load %arg3[%c0_5, %c0_6] : memref<32x96xbf16, #tpu.memory_space<vmem>>, vector<32x96xbf16>
    %cst = arith.constant dense<0.000000e+00> : vector<8x96xf32>
    %6 = tpu.matmul %4, %5, %cst {dimension_numbers = #tpu.dot_dimension_numbers<[1], [0], [0], [1], [0, 0, 1, 1], [], []>} : vector<8x32xbf16>, vector<32x96xbf16>, vector<8x96xf32> -> vector<8x96xf32>
    %c0_7 = arith.constant 0 : index
    %c0_8 = arith.constant 0 : index
    %7 = vector.load %arg4[%c0_7, %c0_8] : memref<1x96xf32, #tpu.memory_space<vmem>>, vector<1x96xf32>
    %8 = vector.broadcast %7 : vector<1x96xf32> to vector<8x96xf32>
    %9 = arith.addf %6, %8 : vector<8x96xf32>
    %10 = vector.extract_strided_slice %9 {offsets = [0, 0], sizes = [8, 32], strides = [1, 1]} : vector<8x96xf32> to vector<8x32xf32>
    %11 = vector.extract_strided_slice %9 {offsets = [0, 32], sizes = [8, 32], strides = [1, 1]} : vector<8x96xf32> to vector<8x32xf32>
    %12 = vector.extract_strided_slice %9 {offsets = [0, 64], sizes = [8, 32], strides = [1, 1]} : vector<8x96xf32> to vector<8x32xf32>
    %13 = vector.extract_strided_slice %10 {offsets = [0, 0], sizes = [8, 8], strides = [1, 1]} : vector<8x32xf32> to vector<8x8xf32>
    %14 = arith.truncf %13 : vector<8x8xf32> to vector<8x8xbf16>
    %15 = vector.extract_strided_slice %11 {offsets = [0, 0], sizes = [8, 8], strides = [1, 1]} : vector<8x32xf32> to vector<8x8xf32>
    %16 = arith.truncf %15 : vector<8x8xf32> to vector<8x8xbf16>
    %17 = vector.extract_strided_slice %12 {offsets = [0, 0], sizes = [8, 8], strides = [1, 1]} : vector<8x32xf32> to vector<8x8xf32>
    %18 = arith.truncf %17 : vector<8x8xf32> to vector<8x8xbf16>
    %cst_9 = arith.constant dense<0.000000e+00> : vector<8x8xf32>
    %19 = tpu.matmul %14, %16, %cst_9 {dimension_numbers = #tpu.dot_dimension_numbers<[1], [1], [0], [0], [0, 0, 1, 0], [], []>} : vector<8x8xbf16>, vector<8x8xbf16>, vector<8x8xf32> -> vector<8x8xf32>
    %cst_10 = arith.constant 0.353553385 : f32
    %20 = vector.broadcast %cst_10 : f32 to vector<8x8xf32>
    %21 = arith.mulf %19, %20 : vector<8x8xf32>
    %cst_11 = arith.constant dense<0xFF800000> : vector<8xf32>
    %22 = vector.multi_reduction <maximumf>, %21, %cst_11 [1] : vector<8x8xf32> to vector<8xf32>
    %23 = vector.shape_cast %22 : vector<8xf32> to vector<8x1xf32>
    %24 = vector.broadcast %23 : vector<8x1xf32> to vector<8x8xf32>
    %25 = arith.subf %21, %24 : vector<8x8xf32>
    %26 = math.exp %25 : vector<8x8xf32>
    %cst_12 = arith.constant dense<0.000000e+00> : vector<8xf32>
    %27 = vector.multi_reduction <add>, %26, %cst_12 [1] : vector<8x8xf32> to vector<8xf32>
    %28 = vector.shape_cast %27 : vector<8xf32> to vector<8x1xf32>
    %29 = arith.truncf %26 : vector<8x8xf32> to vector<8x8xbf16>
    %cst_13 = arith.constant dense<0.000000e+00> : vector<8x8xf32>
    %30 = tpu.matmul %29, %18, %cst_13 {dimension_numbers = #tpu.dot_dimension_numbers<[1], [0], [0], [1], [0, 0, 1, 1], [], []>} : vector<8x8xbf16>, vector<8x8xbf16>, vector<8x8xf32> -> vector<8x8xf32>
    %31 = tpu.reciprocal %28 {approx = true} : vector<8x1xf32> -> vector<8x1xf32>
    %32 = vector.broadcast %31 : vector<8x1xf32> to vector<8x8xf32>
    %33 = arith.mulf %30, %32 : vector<8x8xf32>
    %34 = vector.extract_strided_slice %10 {offsets = [0, 8], sizes = [8, 8], strides = [1, 1]} : vector<8x32xf32> to vector<8x8xf32>
    %35 = arith.truncf %34 : vector<8x8xf32> to vector<8x8xbf16>
    %36 = vector.extract_strided_slice %11 {offsets = [0, 8], sizes = [8, 8], strides = [1, 1]} : vector<8x32xf32> to vector<8x8xf32>
    %37 = arith.truncf %36 : vector<8x8xf32> to vector<8x8xbf16>
    %38 = vector.extract_strided_slice %12 {offsets = [0, 8], sizes = [8, 8], strides = [1, 1]} : vector<8x32xf32> to vector<8x8xf32>
    %39 = arith.truncf %38 : vector<8x8xf32> to vector<8x8xbf16>
    %cst_14 = arith.constant dense<0.000000e+00> : vector<8x8xf32>
    %40 = tpu.matmul %35, %37, %cst_14 {dimension_numbers = #tpu.dot_dimension_numbers<[1], [1], [0], [0], [0, 0, 1, 0], [], []>} : vector<8x8xbf16>, vector<8x8xbf16>, vector<8x8xf32> -> vector<8x8xf32>
    %cst_15 = arith.constant 0.353553385 : f32
    %41 = vector.broadcast %cst_15 : f32 to vector<8x8xf32>
    %42 = arith.mulf %40, %41 : vector<8x8xf32>
    %cst_16 = arith.constant dense<0xFF800000> : vector<8xf32>
    %43 = vector.multi_reduction <maximumf>, %42, %cst_16 [1] : vector<8x8xf32> to vector<8xf32>
    %44 = vector.shape_cast %43 : vector<8xf32> to vector<8x1xf32>
    %45 = vector.broadcast %44 : vector<8x1xf32> to vector<8x8xf32>
    %46 = arith.subf %42, %45 : vector<8x8xf32>
    %47 = math.exp %46 : vector<8x8xf32>
    %cst_17 = arith.constant dense<0.000000e+00> : vector<8xf32>
    %48 = vector.multi_reduction <add>, %47, %cst_17 [1] : vector<8x8xf32> to vector<8xf32>
    %49 = vector.shape_cast %48 : vector<8xf32> to vector<8x1xf32>
    %50 = arith.truncf %47 : vector<8x8xf32> to vector<8x8xbf16>
    %cst_18 = arith.constant dense<0.000000e+00> : vector<8x8xf32>
    %51 = tpu.matmul %50, %39, %cst_18 {dimension_numbers = #tpu.dot_dimension_numbers<[1], [0], [0], [1], [0, 0, 1, 1], [], []>} : vector<8x8xbf16>, vector<8x8xbf16>, vector<8x8xf32> -> vector<8x8xf32>
    %52 = tpu.reciprocal %49 {approx = true} : vector<8x1xf32> -> vector<8x1xf32>
    %53 = vector.broadcast %52 : vector<8x1xf32> to vector<8x8xf32>
    %54 = arith.mulf %51, %53 : vector<8x8xf32>
    %55 = vector.extract_strided_slice %10 {offsets = [0, 16], sizes = [8, 8], strides = [1, 1]} : vector<8x32xf32> to vector<8x8xf32>
    %56 = arith.truncf %55 : vector<8x8xf32> to vector<8x8xbf16>
    %57 = vector.extract_strided_slice %11 {offsets = [0, 16], sizes = [8, 8], strides = [1, 1]} : vector<8x32xf32> to vector<8x8xf32>
    %58 = arith.truncf %57 : vector<8x8xf32> to vector<8x8xbf16>
    %59 = vector.extract_strided_slice %12 {offsets = [0, 16], sizes = [8, 8], strides = [1, 1]} : vector<8x32xf32> to vector<8x8xf32>
    %60 = arith.truncf %59 : vector<8x8xf32> to vector<8x8xbf16>
    %cst_19 = arith.constant dense<0.000000e+00> : vector<8x8xf32>
    %61 = tpu.matmul %56, %58, %cst_19 {dimension_numbers = #tpu.dot_dimension_numbers<[1], [1], [0], [0], [0, 0, 1, 0], [], []>} : vector<8x8xbf16>, vector<8x8xbf16>, vector<8x8xf32> -> vector<8x8xf32>
    %cst_20 = arith.constant 0.353553385 : f32
    %62 = vector.broadcast %cst_20 : f32 to vector<8x8xf32>
    %63 = arith.mulf %61, %62 : vector<8x8xf32>
    %cst_21 = arith.constant dense<0xFF800000> : vector<8xf32>
    %64 = vector.multi_reduction <maximumf>, %63, %cst_21 [1] : vector<8x8xf32> to vector<8xf32>
    %65 = vector.shape_cast %64 : vector<8xf32> to vector<8x1xf32>
    %66 = vector.broadcast %65 : vector<8x1xf32> to vector<8x8xf32>
    %67 = arith.subf %63, %66 : vector<8x8xf32>
    %68 = math.exp %67 : vector<8x8xf32>
    %cst_22 = arith.constant dense<0.000000e+00> : vector<8xf32>
    %69 = vector.multi_reduction <add>, %68, %cst_22 [1] : vector<8x8xf32> to vector<8xf32>
    %70 = vector.shape_cast %69 : vector<8xf32> to vector<8x1xf32>
    %71 = arith.truncf %68 : vector<8x8xf32> to vector<8x8xbf16>
    %cst_23 = arith.constant dense<0.000000e+00> : vector<8x8xf32>
    %72 = tpu.matmul %71, %60, %cst_23 {dimension_numbers = #tpu.dot_dimension_numbers<[1], [0], [0], [1], [0, 0, 1, 1], [], []>} : vector<8x8xbf16>, vector<8x8xbf16>, vector<8x8xf32> -> vector<8x8xf32>
    %73 = tpu.reciprocal %70 {approx = true} : vector<8x1xf32> -> vector<8x1xf32>
    %74 = vector.broadcast %73 : vector<8x1xf32> to vector<8x8xf32>
    %75 = arith.mulf %72, %74 : vector<8x8xf32>
    %76 = vector.extract_strided_slice %10 {offsets = [0, 24], sizes = [8, 8], strides = [1, 1]} : vector<8x32xf32> to vector<8x8xf32>
    %77 = arith.truncf %76 : vector<8x8xf32> to vector<8x8xbf16>
    %78 = vector.extract_strided_slice %11 {offsets = [0, 24], sizes = [8, 8], strides = [1, 1]} : vector<8x32xf32> to vector<8x8xf32>
    %79 = arith.truncf %78 : vector<8x8xf32> to vector<8x8xbf16>
    %80 = vector.extract_strided_slice %12 {offsets = [0, 24], sizes = [8, 8], strides = [1, 1]} : vector<8x32xf32> to vector<8x8xf32>
    %81 = arith.truncf %80 : vector<8x8xf32> to vector<8x8xbf16>
    %cst_24 = arith.constant dense<0.000000e+00> : vector<8x8xf32>
    %82 = tpu.matmul %77, %79, %cst_24 {dimension_numbers = #tpu.dot_dimension_numbers<[1], [1], [0], [0], [0, 0, 1, 0], [], []>} : vector<8x8xbf16>, vector<8x8xbf16>, vector<8x8xf32> -> vector<8x8xf32>
    %cst_25 = arith.constant 0.353553385 : f32
    %83 = vector.broadcast %cst_25 : f32 to vector<8x8xf32>
    %84 = arith.mulf %82, %83 : vector<8x8xf32>
    %cst_26 = arith.constant dense<0xFF800000> : vector<8xf32>
    %85 = vector.multi_reduction <maximumf>, %84, %cst_26 [1] : vector<8x8xf32> to vector<8xf32>
    %86 = vector.shape_cast %85 : vector<8xf32> to vector<8x1xf32>
    %87 = vector.broadcast %86 : vector<8x1xf32> to vector<8x8xf32>
    %88 = arith.subf %84, %87 : vector<8x8xf32>
    %89 = math.exp %88 : vector<8x8xf32>
    %cst_27 = arith.constant dense<0.000000e+00> : vector<8xf32>
    %90 = vector.multi_reduction <add>, %89, %cst_27 [1] : vector<8x8xf32> to vector<8xf32>
    %91 = vector.shape_cast %90 : vector<8xf32> to vector<8x1xf32>
    %92 = arith.truncf %89 : vector<8x8xf32> to vector<8x8xbf16>
    %cst_28 = arith.constant dense<0.000000e+00> : vector<8x8xf32>
    %93 = tpu.matmul %92, %81, %cst_28 {dimension_numbers = #tpu.dot_dimension_numbers<[1], [0], [0], [1], [0, 0, 1, 1], [], []>} : vector<8x8xbf16>, vector<8x8xbf16>, vector<8x8xf32> -> vector<8x8xf32>
    %94 = tpu.reciprocal %91 {approx = true} : vector<8x1xf32> -> vector<8x1xf32>
    %95 = vector.broadcast %94 : vector<8x1xf32> to vector<8x8xf32>
    %96 = arith.mulf %93, %95 : vector<8x8xf32>
    %97 = tpu.concatenate %33, %54, %75, %96 in 1 : vector<8x8xf32>, vector<8x8xf32>, vector<8x8xf32>, vector<8x8xf32> -> vector<8x32xf32>
    %98 = arith.truncf %97 : vector<8x32xf32> to vector<8x32xbf16>
    %c0_29 = arith.constant 0 : index
    %c0_30 = arith.constant 0 : index
    %99 = vector.load %arg5[%c0_29, %c0_30] : memref<32x32xbf16, #tpu.memory_space<vmem>>, vector<32x32xbf16>
    %cst_31 = arith.constant dense<0.000000e+00> : vector<8x32xf32>
    %100 = tpu.matmul %98, %99, %cst_31 {dimension_numbers = #tpu.dot_dimension_numbers<[1], [0], [0], [1], [0, 0, 1, 1], [], []>} : vector<8x32xbf16>, vector<32x32xbf16>, vector<8x32xf32> -> vector<8x32xf32>
    %c0_32 = arith.constant 0 : index
    %c0_33 = arith.constant 0 : index
    %101 = vector.load %arg6[%c0_32, %c0_33] : memref<1x32xf32, #tpu.memory_space<vmem>>, vector<1x32xf32>
    %102 = vector.broadcast %101 : vector<1x32xf32> to vector<8x32xf32>
    %103 = arith.addf %100, %102 : vector<8x32xf32>
    %104 = arith.addf %1, %103 : vector<8x32xf32>
    %cst_34 = arith.constant dense<0.000000e+00> : vector<8xf32>
    %105 = vector.multi_reduction <add>, %104, %cst_34 [1] : vector<8x32xf32> to vector<8xf32>
    %106 = vector.shape_cast %105 : vector<8xf32> to vector<8x1xf32>
    %cst_35 = arith.constant 3.200000e+01 : f32
    %107 = vector.broadcast %cst_35 : f32 to vector<8x1xf32>
    %108 = arith.divf %106, %107 : vector<8x1xf32>
    %109 = vector.broadcast %108 : vector<8x1xf32> to vector<8x32xf32>
    %110 = arith.subf %104, %109 : vector<8x32xf32>
    %111 = arith.mulf %110, %110 : vector<8x32xf32>
    %cst_36 = arith.constant dense<0.000000e+00> : vector<8xf32>
    %112 = vector.multi_reduction <add>, %111, %cst_36 [1] : vector<8x32xf32> to vector<8xf32>
    %113 = vector.shape_cast %112 : vector<8xf32> to vector<8x1xf32>
    %cst_37 = arith.constant 3.200000e+01 : f32
    %114 = vector.broadcast %cst_37 : f32 to vector<8x1xf32>
    %115 = arith.divf %113, %114 : vector<8x1xf32>
    %cst_38 = arith.constant 9.99999974E-6 : f32
    %116 = vector.broadcast %cst_38 : f32 to vector<8x1xf32>
    %117 = arith.addf %115, %116 : vector<8x1xf32>
    %118 = math.rsqrt %117 : vector<8x1xf32>
    %119 = vector.broadcast %118 : vector<8x1xf32> to vector<8x32xf32>
    %120 = arith.mulf %110, %119 : vector<8x32xf32>
    %c0_39 = arith.constant 0 : index
    %c0_40 = arith.constant 0 : index
    %121 = vector.load %arg7[%c0_39, %c0_40] : memref<1x32xf32, #tpu.memory_space<vmem>>, vector<1x32xf32>
    %122 = vector.broadcast %121 : vector<1x32xf32> to vector<8x32xf32>
    %123 = arith.mulf %120, %122 : vector<8x32xf32>
    %c0_41 = arith.constant 0 : index
    %c0_42 = arith.constant 0 : index
    %124 = vector.load %arg8[%c0_41, %c0_42] : memref<1x32xf32, #tpu.memory_space<vmem>>, vector<1x32xf32>
    %125 = vector.broadcast %124 : vector<1x32xf32> to vector<8x32xf32>
    %126 = arith.addf %123, %125 : vector<8x32xf32>
    %127 = arith.truncf %126 : vector<8x32xf32> to vector<8x32xbf16>
    %c0_43 = arith.constant 0 : index
    %c0_44 = arith.constant 0 : index
    %128 = vector.load %arg9[%c0_43, %c0_44] : memref<32x32xbf16, #tpu.memory_space<vmem>>, vector<32x32xbf16>
    %cst_45 = arith.constant dense<0.000000e+00> : vector<8x32xf32>
    %129 = tpu.matmul %127, %128, %cst_45 {dimension_numbers = #tpu.dot_dimension_numbers<[1], [0], [0], [1], [0, 0, 1, 1], [], []>} : vector<8x32xbf16>, vector<32x32xbf16>, vector<8x32xf32> -> vector<8x32xf32>
    %c0_46 = arith.constant 0 : index
    %c0_47 = arith.constant 0 : index
    %130 = vector.load %arg10[%c0_46, %c0_47] : memref<1x32xf32, #tpu.memory_space<vmem>>, vector<1x32xf32>
    %131 = vector.broadcast %130 : vector<1x32xf32> to vector<8x32xf32>
    %132 = arith.addf %129, %131 : vector<8x32xf32>
    %133 = arith.truncf %3 : vector<16x32xf32> to vector<16x32xbf16>
    %c0_48 = arith.constant 0 : index
    %c0_49 = arith.constant 0 : index
    %134 = vector.load %arg11[%c0_48, %c0_49] : memref<32x64xbf16, #tpu.memory_space<vmem>>, vector<32x64xbf16>
    %cst_50 = arith.constant dense<0.000000e+00> : vector<16x64xf32>
    %135 = tpu.matmul %133, %134, %cst_50 {dimension_numbers = #tpu.dot_dimension_numbers<[1], [0], [0], [1], [0, 0, 1, 1], [], []>} : vector<16x32xbf16>, vector<32x64xbf16>, vector<16x64xf32> -> vector<16x64xf32>
    %c0_51 = arith.constant 0 : index
    %c0_52 = arith.constant 0 : index
    %136 = vector.load %arg12[%c0_51, %c0_52] : memref<1x64xf32, #tpu.memory_space<vmem>>, vector<1x64xf32>
    %137 = vector.broadcast %136 : vector<1x64xf32> to vector<16x64xf32>
    %138 = arith.addf %135, %137 : vector<16x64xf32>
    %139 = vector.extract_strided_slice %138 {offsets = [0, 0], sizes = [16, 32], strides = [1, 1]} : vector<16x64xf32> to vector<16x32xf32>
    %140 = vector.extract_strided_slice %138 {offsets = [0, 32], sizes = [16, 32], strides = [1, 1]} : vector<16x64xf32> to vector<16x32xf32>
    %141 = vector.extract_strided_slice %132 {offsets = [0, 0], sizes = [8, 8], strides = [1, 1]} : vector<8x32xf32> to vector<8x8xf32>
    %142 = arith.truncf %141 : vector<8x8xf32> to vector<8x8xbf16>
    %143 = vector.extract_strided_slice %139 {offsets = [0, 0], sizes = [16, 8], strides = [1, 1]} : vector<16x32xf32> to vector<16x8xf32>
    %144 = arith.truncf %143 : vector<16x8xf32> to vector<16x8xbf16>
    %145 = vector.extract_strided_slice %140 {offsets = [0, 0], sizes = [16, 8], strides = [1, 1]} : vector<16x32xf32> to vector<16x8xf32>
    %146 = arith.truncf %145 : vector<16x8xf32> to vector<16x8xbf16>
    %cst_53 = arith.constant dense<0.000000e+00> : vector<8x16xf32>
    %147 = tpu.matmul %142, %144, %cst_53 {dimension_numbers = #tpu.dot_dimension_numbers<[1], [1], [0], [0], [0, 0, 1, 0], [], []>} : vector<8x8xbf16>, vector<16x8xbf16>, vector<8x16xf32> -> vector<8x16xf32>
    %cst_54 = arith.constant 0.353553385 : f32
    %148 = vector.broadcast %cst_54 : f32 to vector<8x16xf32>
    %149 = arith.mulf %147, %148 : vector<8x16xf32>
    %cst_55 = arith.constant dense<0xFF800000> : vector<8xf32>
    %150 = vector.multi_reduction <maximumf>, %149, %cst_55 [1] : vector<8x16xf32> to vector<8xf32>
    %151 = vector.shape_cast %150 : vector<8xf32> to vector<8x1xf32>
    %152 = vector.broadcast %151 : vector<8x1xf32> to vector<8x16xf32>
    %153 = arith.subf %149, %152 : vector<8x16xf32>
    %154 = math.exp %153 : vector<8x16xf32>
    %cst_56 = arith.constant dense<0.000000e+00> : vector<8xf32>
    %155 = vector.multi_reduction <add>, %154, %cst_56 [1] : vector<8x16xf32> to vector<8xf32>
    %156 = vector.shape_cast %155 : vector<8xf32> to vector<8x1xf32>
    %157 = arith.truncf %154 : vector<8x16xf32> to vector<8x16xbf16>
    %cst_57 = arith.constant dense<0.000000e+00> : vector<8x8xf32>
    %158 = tpu.matmul %157, %146, %cst_57 {dimension_numbers = #tpu.dot_dimension_numbers<[1], [0], [0], [1], [0, 0, 1, 1], [], []>} : vector<8x16xbf16>, vector<16x8xbf16>, vector<8x8xf32> -> vector<8x8xf32>
    %159 = tpu.reciprocal %156 {approx = true} : vector<8x1xf32> -> vector<8x1xf32>
    %160 = vector.broadcast %159 : vector<8x1xf32> to vector<8x8xf32>
    %161 = arith.mulf %158, %160 : vector<8x8xf32>
    %162 = vector.extract_strided_slice %132 {offsets = [0, 8], sizes = [8, 8], strides = [1, 1]} : vector<8x32xf32> to vector<8x8xf32>
    %163 = arith.truncf %162 : vector<8x8xf32> to vector<8x8xbf16>
    %164 = vector.extract_strided_slice %139 {offsets = [0, 8], sizes = [16, 8], strides = [1, 1]} : vector<16x32xf32> to vector<16x8xf32>
    %165 = arith.truncf %164 : vector<16x8xf32> to vector<16x8xbf16>
    %166 = vector.extract_strided_slice %140 {offsets = [0, 8], sizes = [16, 8], strides = [1, 1]} : vector<16x32xf32> to vector<16x8xf32>
    %167 = arith.truncf %166 : vector<16x8xf32> to vector<16x8xbf16>
    %cst_58 = arith.constant dense<0.000000e+00> : vector<8x16xf32>
    %168 = tpu.matmul %163, %165, %cst_58 {dimension_numbers = #tpu.dot_dimension_numbers<[1], [1], [0], [0], [0, 0, 1, 0], [], []>} : vector<8x8xbf16>, vector<16x8xbf16>, vector<8x16xf32> -> vector<8x16xf32>
    %cst_59 = arith.constant 0.353553385 : f32
    %169 = vector.broadcast %cst_59 : f32 to vector<8x16xf32>
    %170 = arith.mulf %168, %169 : vector<8x16xf32>
    %cst_60 = arith.constant dense<0xFF800000> : vector<8xf32>
    %171 = vector.multi_reduction <maximumf>, %170, %cst_60 [1] : vector<8x16xf32> to vector<8xf32>
    %172 = vector.shape_cast %171 : vector<8xf32> to vector<8x1xf32>
    %173 = vector.broadcast %172 : vector<8x1xf32> to vector<8x16xf32>
    %174 = arith.subf %170, %173 : vector<8x16xf32>
    %175 = math.exp %174 : vector<8x16xf32>
    %cst_61 = arith.constant dense<0.000000e+00> : vector<8xf32>
    %176 = vector.multi_reduction <add>, %175, %cst_61 [1] : vector<8x16xf32> to vector<8xf32>
    %177 = vector.shape_cast %176 : vector<8xf32> to vector<8x1xf32>
    %178 = arith.truncf %175 : vector<8x16xf32> to vector<8x16xbf16>
    %cst_62 = arith.constant dense<0.000000e+00> : vector<8x8xf32>
    %179 = tpu.matmul %178, %167, %cst_62 {dimension_numbers = #tpu.dot_dimension_numbers<[1], [0], [0], [1], [0, 0, 1, 1], [], []>} : vector<8x16xbf16>, vector<16x8xbf16>, vector<8x8xf32> -> vector<8x8xf32>
    %180 = tpu.reciprocal %177 {approx = true} : vector<8x1xf32> -> vector<8x1xf32>
    %181 = vector.broadcast %180 : vector<8x1xf32> to vector<8x8xf32>
    %182 = arith.mulf %179, %181 : vector<8x8xf32>
    %183 = vector.extract_strided_slice %132 {offsets = [0, 16], sizes = [8, 8], strides = [1, 1]} : vector<8x32xf32> to vector<8x8xf32>
    %184 = arith.truncf %183 : vector<8x8xf32> to vector<8x8xbf16>
    %185 = vector.extract_strided_slice %139 {offsets = [0, 16], sizes = [16, 8], strides = [1, 1]} : vector<16x32xf32> to vector<16x8xf32>
    %186 = arith.truncf %185 : vector<16x8xf32> to vector<16x8xbf16>
    %187 = vector.extract_strided_slice %140 {offsets = [0, 16], sizes = [16, 8], strides = [1, 1]} : vector<16x32xf32> to vector<16x8xf32>
    %188 = arith.truncf %187 : vector<16x8xf32> to vector<16x8xbf16>
    %cst_63 = arith.constant dense<0.000000e+00> : vector<8x16xf32>
    %189 = tpu.matmul %184, %186, %cst_63 {dimension_numbers = #tpu.dot_dimension_numbers<[1], [1], [0], [0], [0, 0, 1, 0], [], []>} : vector<8x8xbf16>, vector<16x8xbf16>, vector<8x16xf32> -> vector<8x16xf32>
    %cst_64 = arith.constant 0.353553385 : f32
    %190 = vector.broadcast %cst_64 : f32 to vector<8x16xf32>
    %191 = arith.mulf %189, %190 : vector<8x16xf32>
    %cst_65 = arith.constant dense<0xFF800000> : vector<8xf32>
    %192 = vector.multi_reduction <maximumf>, %191, %cst_65 [1] : vector<8x16xf32> to vector<8xf32>
    %193 = vector.shape_cast %192 : vector<8xf32> to vector<8x1xf32>
    %194 = vector.broadcast %193 : vector<8x1xf32> to vector<8x16xf32>
    %195 = arith.subf %191, %194 : vector<8x16xf32>
    %196 = math.exp %195 : vector<8x16xf32>
    %cst_66 = arith.constant dense<0.000000e+00> : vector<8xf32>
    %197 = vector.multi_reduction <add>, %196, %cst_66 [1] : vector<8x16xf32> to vector<8xf32>
    %198 = vector.shape_cast %197 : vector<8xf32> to vector<8x1xf32>
    %199 = arith.truncf %196 : vector<8x16xf32> to vector<8x16xbf16>
    %cst_67 = arith.constant dense<0.000000e+00> : vector<8x8xf32>
    %200 = tpu.matmul %199, %188, %cst_67 {dimension_numbers = #tpu.dot_dimension_numbers<[1], [0], [0], [1], [0, 0, 1, 1], [], []>} : vector<8x16xbf16>, vector<16x8xbf16>, vector<8x8xf32> -> vector<8x8xf32>
    %201 = tpu.reciprocal %198 {approx = true} : vector<8x1xf32> -> vector<8x1xf32>
    %202 = vector.broadcast %201 : vector<8x1xf32> to vector<8x8xf32>
    %203 = arith.mulf %200, %202 : vector<8x8xf32>
    %204 = vector.extract_strided_slice %132 {offsets = [0, 24], sizes = [8, 8], strides = [1, 1]} : vector<8x32xf32> to vector<8x8xf32>
    %205 = arith.truncf %204 : vector<8x8xf32> to vector<8x8xbf16>
    %206 = vector.extract_strided_slice %139 {offsets = [0, 24], sizes = [16, 8], strides = [1, 1]} : vector<16x32xf32> to vector<16x8xf32>
    %207 = arith.truncf %206 : vector<16x8xf32> to vector<16x8xbf16>
    %208 = vector.extract_strided_slice %140 {offsets = [0, 24], sizes = [16, 8], strides = [1, 1]} : vector<16x32xf32> to vector<16x8xf32>
    %209 = arith.truncf %208 : vector<16x8xf32> to vector<16x8xbf16>
    %cst_68 = arith.constant dense<0.000000e+00> : vector<8x16xf32>
    %210 = tpu.matmul %205, %207, %cst_68 {dimension_numbers = #tpu.dot_dimension_numbers<[1], [1], [0], [0], [0, 0, 1, 0], [], []>} : vector<8x8xbf16>, vector<16x8xbf16>, vector<8x16xf32> -> vector<8x16xf32>
    %cst_69 = arith.constant 0.353553385 : f32
    %211 = vector.broadcast %cst_69 : f32 to vector<8x16xf32>
    %212 = arith.mulf %210, %211 : vector<8x16xf32>
    %cst_70 = arith.constant dense<0xFF800000> : vector<8xf32>
    %213 = vector.multi_reduction <maximumf>, %212, %cst_70 [1] : vector<8x16xf32> to vector<8xf32>
    %214 = vector.shape_cast %213 : vector<8xf32> to vector<8x1xf32>
    %215 = vector.broadcast %214 : vector<8x1xf32> to vector<8x16xf32>
    %216 = arith.subf %212, %215 : vector<8x16xf32>
    %217 = math.exp %216 : vector<8x16xf32>
    %cst_71 = arith.constant dense<0.000000e+00> : vector<8xf32>
    %218 = vector.multi_reduction <add>, %217, %cst_71 [1] : vector<8x16xf32> to vector<8xf32>
    %219 = vector.shape_cast %218 : vector<8xf32> to vector<8x1xf32>
    %220 = arith.truncf %217 : vector<8x16xf32> to vector<8x16xbf16>
    %cst_72 = arith.constant dense<0.000000e+00> : vector<8x8xf32>
    %221 = tpu.matmul %220, %209, %cst_72 {dimension_numbers = #tpu.dot_dimension_numbers<[1], [0], [0], [1], [0, 0, 1, 1], [], []>} : vector<8x16xbf16>, vector<16x8xbf16>, vector<8x8xf32> -> vector<8x8xf32>
    %222 = tpu.reciprocal %219 {approx = true} : vector<8x1xf32> -> vector<8x1xf32>
    %223 = vector.broadcast %222 : vector<8x1xf32> to vector<8x8xf32>
    %224 = arith.mulf %221, %223 : vector<8x8xf32>
    %225 = tpu.concatenate %161, %182, %203, %224 in 1 : vector<8x8xf32>, vector<8x8xf32>, vector<8x8xf32>, vector<8x8xf32> -> vector<8x32xf32>
    %226 = arith.truncf %225 : vector<8x32xf32> to vector<8x32xbf16>
    %c0_73 = arith.constant 0 : index
    %c0_74 = arith.constant 0 : index
    %227 = vector.load %arg13[%c0_73, %c0_74] : memref<32x32xbf16, #tpu.memory_space<vmem>>, vector<32x32xbf16>
    %cst_75 = arith.constant dense<0.000000e+00> : vector<8x32xf32>
    %228 = tpu.matmul %226, %227, %cst_75 {dimension_numbers = #tpu.dot_dimension_numbers<[1], [0], [0], [1], [0, 0, 1, 1], [], []>} : vector<8x32xbf16>, vector<32x32xbf16>, vector<8x32xf32> -> vector<8x32xf32>
    %c0_76 = arith.constant 0 : index
    %c0_77 = arith.constant 0 : index
    %229 = vector.load %arg14[%c0_76, %c0_77] : memref<1x32xf32, #tpu.memory_space<vmem>>, vector<1x32xf32>
    %230 = vector.broadcast %229 : vector<1x32xf32> to vector<8x32xf32>
    %231 = arith.addf %228, %230 : vector<8x32xf32>
    %232 = arith.addf %126, %231 : vector<8x32xf32>
    %cst_78 = arith.constant dense<0.000000e+00> : vector<8xf32>
    %233 = vector.multi_reduction <add>, %232, %cst_78 [1] : vector<8x32xf32> to vector<8xf32>
    %234 = vector.shape_cast %233 : vector<8xf32> to vector<8x1xf32>
    %cst_79 = arith.constant 3.200000e+01 : f32
    %235 = vector.broadcast %cst_79 : f32 to vector<8x1xf32>
    %236 = arith.divf %234, %235 : vector<8x1xf32>
    %237 = vector.broadcast %236 : vector<8x1xf32> to vector<8x32xf32>
    %238 = arith.subf %232, %237 : vector<8x32xf32>
    %239 = arith.mulf %238, %238 : vector<8x32xf32>
    %cst_80 = arith.constant dense<0.000000e+00> : vector<8xf32>
    %240 = vector.multi_reduction <add>, %239, %cst_80 [1] : vector<8x32xf32> to vector<8xf32>
    %241 = vector.shape_cast %240 : vector<8xf32> to vector<8x1xf32>
    %cst_81 = arith.constant 3.200000e+01 : f32
    %242 = vector.broadcast %cst_81 : f32 to vector<8x1xf32>
    %243 = arith.divf %241, %242 : vector<8x1xf32>
    %cst_82 = arith.constant 9.99999974E-6 : f32
    %244 = vector.broadcast %cst_82 : f32 to vector<8x1xf32>
    %245 = arith.addf %243, %244 : vector<8x1xf32>
    %246 = math.rsqrt %245 : vector<8x1xf32>
    %247 = vector.broadcast %246 : vector<8x1xf32> to vector<8x32xf32>
    %248 = arith.mulf %238, %247 : vector<8x32xf32>
    %c0_83 = arith.constant 0 : index
    %c0_84 = arith.constant 0 : index
    %249 = vector.load %arg15[%c0_83, %c0_84] : memref<1x32xf32, #tpu.memory_space<vmem>>, vector<1x32xf32>
    %250 = vector.broadcast %249 : vector<1x32xf32> to vector<8x32xf32>
    %251 = arith.mulf %248, %250 : vector<8x32xf32>
    %c0_85 = arith.constant 0 : index
    %c0_86 = arith.constant 0 : index
    %252 = vector.load %arg16[%c0_85, %c0_86] : memref<1x32xf32, #tpu.memory_space<vmem>>, vector<1x32xf32>
    %253 = vector.broadcast %252 : vector<1x32xf32> to vector<8x32xf32>
    %254 = arith.addf %251, %253 : vector<8x32xf32>
    %255 = arith.truncf %254 : vector<8x32xf32> to vector<8x32xbf16>
    %c0_87 = arith.constant 0 : index
    %c0_88 = arith.constant 0 : index
    %256 = vector.load %arg17[%c0_87, %c0_88] : memref<32x64xbf16, #tpu.memory_space<vmem>>, vector<32x64xbf16>
    %cst_89 = arith.constant dense<0.000000e+00> : vector<8x64xf32>
    %257 = tpu.matmul %255, %256, %cst_89 {dimension_numbers = #tpu.dot_dimension_numbers<[1], [0], [0], [1], [0, 0, 1, 1], [], []>} : vector<8x32xbf16>, vector<32x64xbf16>, vector<8x64xf32> -> vector<8x64xf32>
    %c0_90 = arith.constant 0 : index
    %c0_91 = arith.constant 0 : index
    %258 = vector.load %arg18[%c0_90, %c0_91] : memref<1x64xf32, #tpu.memory_space<vmem>>, vector<1x64xf32>
    %259 = vector.broadcast %258 : vector<1x64xf32> to vector<8x64xf32>
    %260 = arith.addf %257, %259 : vector<8x64xf32>
    %cst_92 = arith.constant 0.000000e+00 : f32
    %261 = vector.broadcast %cst_92 : f32 to vector<8x64xf32>
    %262 = arith.maximumf %260, %261 : vector<8x64xf32>
    %263 = arith.truncf %262 : vector<8x64xf32> to vector<8x64xbf16>
    %c0_93 = arith.constant 0 : index
    %c0_94 = arith.constant 0 : index
    %264 = vector.load %arg19[%c0_93, %c0_94] : memref<64x32xbf16, #tpu.memory_space<vmem>>, vector<64x32xbf16>
    %cst_95 = arith.constant dense<0.000000e+00> : vector<8x32xf32>
    %265 = tpu.matmul %263, %264, %cst_95 {dimension_numbers = #tpu.dot_dimension_numbers<[1], [0], [0], [1], [0, 0, 1, 1], [], []>} : vector<8x64xbf16>, vector<64x32xbf16>, vector<8x32xf32> -> vector<8x32xf32>
    %c0_96 = arith.constant 0 : index
    %c0_97 = arith.constant 0 : index
    %266 = vector.load %arg20[%c0_96, %c0_97] : memref<1x32xf32, #tpu.memory_space<vmem>>, vector<1x32xf32>
    %267 = vector.broadcast %266 : vector<1x32xf32> to vector<8x32xf32>
    %268 = arith.addf %265, %267 : vector<8x32xf32>
    %269 = arith.addf %254, %268 : vector<8x32xf32>
    %cst_98 = arith.constant dense<0.000000e+00> : vector<8xf32>
    %270 = vector.multi_reduction <add>, %269, %cst_98 [1] : vector<8x32xf32> to vector<8xf32>
    %271 = vector.shape_cast %270 : vector<8xf32> to vector<8x1xf32>
    %cst_99 = arith.constant 3.200000e+01 : f32
    %272 = vector.broadcast %cst_99 : f32 to vector<8x1xf32>
    %273 = arith.divf %271, %272 : vector<8x1xf32>
    %274 = vector.broadcast %273 : vector<8x1xf32> to vector<8x32xf32>
    %275 = arith.subf %269, %274 : vector<8x32xf32>
    %276 = arith.mulf %275, %275 : vector<8x32xf32>
    %cst_100 = arith.constant dense<0.000000e+00> : vector<8xf32>
    %277 = vector.multi_reduction <add>, %276, %cst_100 [1] : vector<8x32xf32> to vector<8xf32>
    %278 = vector.shape_cast %277 : vector<8xf32> to vector<8x1xf32>
    %cst_101 = arith.constant 3.200000e+01 : f32
    %279 = vector.broadcast %cst_101 : f32 to vector<8x1xf32>
    %280 = arith.divf %278, %279 : vector<8x1xf32>
    %cst_102 = arith.constant 9.99999974E-6 : f32
    %281 = vector.broadcast %cst_102 : f32 to vector<8x1xf32>
    %282 = arith.addf %280, %281 : vector<8x1xf32>
    %283 = math.rsqrt %282 : vector<8x1xf32>
    %284 = vector.broadcast %283 : vector<8x1xf32> to vector<8x32xf32>
    %285 = arith.mulf %275, %284 : vector<8x32xf32>
    %c0_103 = arith.constant 0 : index
    %c0_104 = arith.constant 0 : index
    %286 = vector.load %arg21[%c0_103, %c0_104] : memref<1x32xf32, #tpu.memory_space<vmem>>, vector<1x32xf32>
    %287 = vector.broadcast %286 : vector<1x32xf32> to vector<8x32xf32>
    %288 = arith.mulf %285, %287 : vector<8x32xf32>
    %c0_105 = arith.constant 0 : index
    %c0_106 = arith.constant 0 : index
    %289 = vector.load %arg22[%c0_105, %c0_106] : memref<1x32xf32, #tpu.memory_space<vmem>>, vector<1x32xf32>
    %290 = vector.broadcast %289 : vector<1x32xf32> to vector<8x32xf32>
    %291 = arith.addf %288, %290 : vector<8x32xf32>
    %c0_107 = arith.constant 0 : index
    %c0_108 = arith.constant 0 : index
    %c0_109 = arith.constant 0 : index
    %292 = vector.load %arg23[%c0_107, %c0_108, %c0_109] : memref<1x8x32xf32, #tpu.memory_space<vmem>>, vector<1x8x32xf32>
    %293 = vector.shape_cast %292 : vector<1x8x32xf32> to vector<8x32xf32>
    %294 = vector.shape_cast %291 : vector<8x32xf32> to vector<1x8x32xf32>
    tpu.vector_store %arg23[%c0_107, %c0_108, %c0_109], %294 {strides = array<i32>} : memref<1x8x32xf32, #tpu.memory_space<vmem>>, vector<1x8x32xf32>,
    return
  }
  func.func @transform_0(%arg0: i32) -> (i32, i32, i32) {
    %c0_i32 = arith.constant 0 : i32
    %c0_i32_0 = arith.constant 0 : i32
    %c0_i32_1 = arith.constant 0 : i32
    return %arg0, %c0_i32, %c0_i32_0 : i32, i32, i32
  }
  func.func @transform_1(%arg0: i32) -> (i32, i32, i32) {
    %c0_i32 = arith.constant 0 : i32
    %c0_i32_0 = arith.constant 0 : i32
    %c0_i32_1 = arith.constant 0 : i32
    return %arg0, %c0_i32, %c0_i32_0 : i32, i32, i32
  }
  func.func @transform_2(%arg0: i32) -> (i32, i32) {
    %c0_i32 = arith.constant 0 : i32
    %c0_i32_0 = arith.constant 0 : i32
    %c0_i32_1 = arith.constant 0 : i32
    return %c0_i32, %c0_i32_0 : i32, i32
  }
  func.func @transform_3(%arg0: i32) -> (i32, i32) {
    %c0_i32 = arith.constant 0 : i32
    %c0_i32_0 = arith.constant 0 : i32
    %c0_i32_1 = arith.constant 0 : i32
    return %c0_i32, %c0_i32_0 : i32, i32
  }
  func.func @transform_4(%arg0: i32) -> (i32, i32) {
    %c0_i32 = arith.constant 0 : i32
    %c0_i32_0 = arith.constant 0 : i32
    %c0_i32_1 = arith.constant 0 : i32
    return %c0_i32, %c0_i32_0 : i32, i32
  }
  func.func @transform_5(%arg0: i32) -> (i32, i32) {
    %c0_i32 = arith.constant 0 : i32
    %c0_i32_0 = arith.constant 0 : i32
    %c0_i32_1 = arith.constant 0 : i32
    return %c0_i32, %c0_i32_0 : i32, i32
  }
  func.func @transform_6(%arg0: i32) -> (i32, i32) {
    %c0_i32 = arith.constant 0 : i32
    %c0_i32_0 = arith.constant 0 : i32
    %c0_i32_1 = arith.constant 0 : i32
    return %c0_i32, %c0_i32_0 : i32, i32
  }
  func.func @transform_7(%arg0: i32) -> (i32, i32) {
    %c0_i32 = arith.constant 0 : i32
    %c0_i32_0 = arith.constant 0 : i32
    %c0_i32_1 = arith.constant 0 : i32
    return %c0_i32, %c0_i32_0 : i32, i32
  }
  func.func @transform_8(%arg0: i32) -> (i32, i32) {
    %c0_i32 = arith.constant 0 : i32
    %c0_i32_0 = arith.constant 0 : i32
    %c0_i32_1 = arith.constant 0 : i32
    return %c0_i32, %c0_i32_0 : i32, i32
  }
  func.func @transform_9(%arg0: i32) -> (i32, i32) {
    %c0_i32 = arith.constant 0 : i32
    %c0_i32_0 = arith.constant 0 : i32
    %c0_i32_1 = arith.constant 0 : i32
    return %c0_i32, %c0_i32_0 : i32, i32
  }
  func.func @transform_10(%arg0: i32) -> (i32, i32) {
    %c0_i32 = arith.constant 0 : i32
    %c0_i32_0 = arith.constant 0 : i32
    %c0_i32_1 = arith.constant 0 : i32
    return %c0_i32, %c0_i32_0 : i32, i32
  }
  func.func @transform_11(%arg0: i32) -> (i32, i32) {
    %c0_i32 = arith.constant 0 : i32
    %c0_i32_0 = arith.constant 0 : i32
    %c0_i32_1 = arith.constant 0 : i32
    return %c0_i32, %c0_i32_0 : i32, i32
  }
  func.func @transform_12(%arg0: i32) -> (i32, i32) {
    %c0_i32 = arith.constant 0 : i32
    %c0_i32_0 = arith.constant 0 : i32
    %c0_i32_1 = arith.constant 0 : i32
    return %c0_i32, %c0_i32_0 : i32, i32
  }
  func.func @transform_13(%arg0: i32) -> (i32, i32) {
    %c0_i32 = arith.constant 0 : i32
    %c0_i32_0 = arith.constant 0 : i32
    %c0_i32_1 = arith.constant 0 : i32
    return %c0_i32, %c0_i32_0 : i32, i32
  }
  func.func @transform_14(%arg0: i32) -> (i32, i32) {
    %c0_i32 = arith.constant 0 : i32
    %c0_i32_0 = arith.constant 0 : i32
    %c0_i32_1 = arith.constant 0 : i32
    return %c0_i32, %c0_i32_0 : i32, i32
  }
  func.func @transform_15(%arg0: i32) -> (i32, i32) {
    %c0_i32 = arith.constant 0 : i32
    %c0_i32_0 = arith.constant 0 : i32
    %c0_i32_1 = arith.constant 0 : i32
    return %c0_i32, %c0_i32_0 : i32, i32
  }
  func.func @transform_16(%arg0: i32) -> (i32, i32) {
    %c0_i32 = arith.constant 0 : i32
    %c0_i32_0 = arith.constant 0 : i32
    %c0_i32_1 = arith.constant 0 : i32
    return %c0_i32, %c0_i32_0 : i32, i32
  }
  func.func @transform_17(%arg0: i32) -> (i32, i32) {
    %c0_i32 = arith.constant 0 : i32
    %c0_i32_0 = arith.constant 0 : i32
    %c0_i32_1 = arith.constant 0 : i32
    return %c0_i32, %c0_i32_0 : i32, i32
  }
  func.func @transform_18(%arg0: i32) -> (i32, i32) {
    %c0_i32 = arith.constant 0 : i32
    %c0_i32_0 = arith.constant 0 : i32
    %c0_i32_1 = arith.constant 0 : i32
    return %c0_i32, %c0_i32_0 : i32, i32
  }
  func.func @transform_19(%arg0: i32) -> (i32, i32) {
    %c0_i32 = arith.constant 0 : i32
    %c0_i32_0 = arith.constant 0 : i32
    %c0_i32_1 = arith.constant 0 : i32
    return %c0_i32, %c0_i32_0 : i32, i32
  }
  func.func @transform_20(%arg0: i32) -> (i32, i32) {
    %c0_i32 = arith.constant 0 : i32
    %c0_i32_0 = arith.constant 0 : i32
    %c0_i32_1 = arith.constant 0 : i32
    return %c0_i32, %c0_i32_0 : i32, i32
  }
  func.func @transform_21(%arg0: i32) -> (i32, i32) {
    %c0_i32 = arith.constant 0 : i32
    %c0_i32_0 = arith.constant 0 : i32
    %c0_i32_1 = arith.constant 0 : i32
    return %c0_i32, %c0_i32_0 : i32, i32
  }
  func.func @transform_22(%arg0: i32) -> (i32, i32, i32) {
    %c0_i32 = arith.constant 0 : i32
    %c0_i32_0 = arith.constant 0 : i32
    %c0_i32_1 = arith.constant 0 : i32
    return %arg0, %c0_i32, %c0_i32_0 : i32, i32, i32
  }
}

</mosaic_0001>

<bundles_post_ra>
// kernel: transformer_forward.13
= control target key start
LH: loop header
LB: loop body
LE: loop exit
PB: predicated region body
PF: predicated region fallthrough
CT: control target
= control target key end

     0   :  { %v152_v1 = vmov 0.0   ;;  %vm153_vm0 = vmmov 0   ;;  %s204_s0 = inlined_call_operand.vmem [shape: f32[16,32], index: 0, kind: input, shape index: {}]   ;;  %s205_s1 = inlined_call_operand.vmem [shape: bf16[32,60], index: 1, kind: input, shape index: {}]   ;;  %s206_s2 = inlined_call_operand.vmem [shape: f32[1,60], index: 2, kind: input, shape index: {}]   ;;  %s207_s3 = inlined_call_operand.hbm [shape: f32[16,60], index: 3, kind: output, shape index: {}]  }
   0x1   :  { %v126_v0 = vld [vmem:[%s205_s1] sm:$0xff]   ;;  %113 = vmatprep.subr.bf16.mxu0 %v152_v1  ;;  %v127_v2 = vld [vmem:[%s205_s1 + $0x8] sm:$0xff]   ;;  %117 = vmatprep.mubr.msk.bf16.mxu0 %vm153_vm0, %v152_v1 }
   0x2   :  { %114 = vmatpush3.bf16.msra.mxu0 %v126_v0  ;;  %v16_v3 = vld [vmem:[%s204_s0] sm:$0xff]  ;;  %v17_v4 = vld [vmem:[%s204_s0 + $0x8] sm:$0xff] }
   0x3   :  { %115 = vmatprep.subr.bf16.mxu0 %v152_v1 }
   0x4   :  { %8 = vsyncpa [#allocation3], 0  ;;  %v18_v5 = vpack.c.bf16 %v17_v4, %v16_v3  ;;  %vm42_vm1 = vcmask 261120   ;;  %v106_v6 = vld [vmem:[%s206_s2] ss:$0 sm:$0xff]  ;;  %s154_s1 = smov [#allocation2]  }
   0x5   :  { %s95_s22 = sshll.u32 %s154_s1, 4  ;;  %vm87_vm2 = vcmask 490496   ;;  %s96_s22 = int_to_ptr.vmem [resolvable:$true] %s95_s22 }
   0x6   :  { %116 = vmatpush3.bf16.msra.mxu0 %v127_v2  ;;  %s128_s0 = scalar_lea.vmem %s96_s22, 256  ;;  %p133_p1 = scmp.lt.s32.totalorder %s96_s22, %s96_s22 }
   0x7   :  { %p129_p0 = scmp.ne.s32.totalorder %s96_s22, %s128_s0  ;;  %p134_p2 = scmp.lt.s32.totalorder %s128_s0, %s128_s0 }
   0x9   :  { %118 = vmatmul.mubr.msk.bf16.vlgmr.msra.gmra.mrb[0].mxu0 %vm42_vm1, %v18_v5  ;;  %p135_p3 = por %p134_p2, %p133_p1 }
   0xb   :  { %p136_p4 = pnand %p135_p3, %p129_p0 }
  0xdc   :  { %v80_v7 = vpop.f32.mrb[0].mxu0 }
  0xdd   :  { %v81_v8 = vadd.f32 %v106_v6, %v80_v7  ;;  %v119_v9 = vpop.f32.mrb[1].mxu0 }
  0xde   :  { %v83_v10 = vpop.f32.mrb[2].mxu0 }
  0xdf   :  { %88 = vst.msk [vmem:[#allocation2] sm:$0xff] %vm87_vm2, %v81_v8  ;;  %v84_v11 = vadd.f32 %v106_v6, %v83_v10  ;;  %v120_v12 = vpop.f32.mrb[3].mxu0 }
  0xe1   :  { %89 = vst.msk [vmem:[#allocation2 + $0x8] sm:$0xff] %vm87_vm2, %v84_v11 }
  0xe2   :  { %139 = shalt.err (!%p136_p4)
}
  0xe3   :  { %s140_s24 = scalar_lea.hbm %s207_s3, 256 }
  0xe4   :  { %p141_p5 = scmp.ne.s32.totalorder %s207_s3, %s140_s24  ;;  %p144_p6 = scmp.lt.u32.totalorder %s140_s24, %s207_s3 }
  0xe6   :  { %p146_p7 = pnand %p144_p6, %p141_p5 }
  0xe8   :  { %149 = shalt.err (!%p146_p7)
}
  0xe9   :  { %s155_s29 = smov 128   ;;  %s156_s30 = smov 8  }
  0xea   :  { %101 = dma.vmem_to_hbm [thread:$0]  %s96_s22, 256, %s207_s3, [#allocation3], %s155_s29, %s155_s29, %s156_s30  }
  0xeb   :  { %150 = dma.done.wait [#allocation3], 256  }
  0xec   :  { %151 = vsyncadd [#allocation3], 4294967040 }
  0xed   :  { %105 = vsyncpa [#allocation3], 1 }

// kernel: transformer_forward.7
= control target key start
LH: loop header
LB: loop body
LE: loop exit
PB: predicated region body
PF: predicated region fallthrough
CT: control target
= control target key end

     0   :  { %s1751_s25 = smov 0   ;;  %s1945_s0 = inlined_call_operand.vmem [shape: f32[2,16,32], index: 0, kind: input, shape index: {}]   ;;  %s1946_s1 = inlined_call_operand.vmem [shape: bf16[32,96], index: 1, kind: input, shape index: {}]   ;;  %s1947_s2 = inlined_call_operand.vmem [shape: f32[1,96], index: 2, kind: input, shape index: {}]   ;;  %s1948_s3 = inlined_call_operand.vmem [shape: bf16[32,32], index: 3, kind: input, shape index: {}]   ;;  %s1949_s4 = inlined_call_operand.vmem [shape: f32[1,32], index: 4, kind: input, shape index: {}]   ;;  %s1950_s5 = inlined_call_operand.vmem [shape: f32[1,32], index: 5, kind: input, shape index: {}]   ;;  %s1951_s6 = inlined_call_operand.vmem [shape: f32[1,32], index: 6, kind: input, shape index: {}]   ;;  %s1952_s7 = inlined_call_operand.vmem [shape: bf16[32,64], index: 7, kind: input, shape index: {}]   ;;  %s1953_s8 = inlined_call_operand.vmem [shape: f32[1,64], index: 8, kind: input, shape index: {}]   ;;  %s1954_s9 = inlined_call_operand.vmem [shape: bf16[64,32], index: 9, kind: input, shape index: {}]   ;;  %s1955_s10 = inlined_call_operand.vmem [shape: f32[1,32], index: 10, kind: input, shape index: {}]   ;;  %s1956_s11 = inlined_call_operand.vmem [shape: f32[1,32], index: 11, kind: input, shape index: {}]   ;;  %s1957_s12 = inlined_call_operand.vmem [shape: f32[1,32], index: 12, kind: input, shape index: {}]   ;;  %s1958_s13 = inlined_call_operand.vmem [shape: f32[2,16,32], index: 13, kind: output, shape index: {}]  }
   0x1 LB: > { %s1411_s26 = sadd.s32 4294967295, %s1663_s25   ;;  %p1415_p0 = scmp.ge.s32.totalorder %s1663_s25, 1  ;;  %s1663_s25 = sphi %s1751_s25, %s23_s25  }
   0x2   : > { %p387_p1 = scmp.lt.s32.totalorder %s1663_s25, 3 }
   0x4   : > { %p388_p2 = pnand %p1415_p0, %p387_p1 }
   0x5   : > { %v1607_v0 = vld [vmem:[%s1946_s1] sm:$0xff] (!%p388_p2)   ;;  %v1665_v1 = vmov (!%p388_p2), 0.0   ;;  %v1608_v2 = vld [vmem:[%s1946_s1 + $0x8] sm:$0xff] (!%p388_p2)   ;;  %vm1666_vm0 = vmmov (!%p388_p2), 0   ;;  %p431_p3 = scmp.lt.s32.totalorder (!%p388_p2), %s1411_s26, 1  ;;  %vm468_vm1 = vcmask (!%p388_p2), 261120  }
   0x6   : > { %391 = sbr.rel (%p388_p2) target bundleno = 2430 (0x97e), region = 72  ;;  %1484 = vmatprep.subr.bf16.mxu0 (!%p388_p2), %v1665_v1  ;;  %1492 = vmatprep.subr.bf16.mxu1 (!%p388_p2), %v1665_v1  ;;  %v1420_v6 = vld [vmem:[%s1947_s2] ss:$0 sm:$0xff] (!%p388_p2)  ;;  %s1667_s20 = smov (!%p388_p2), 120   ;;  %vm517_vm2 = vcmask (!%p388_p2), 64512   ;;  %vm567_vm3 = vcmask (!%p388_p2), 130048  }
   0x7   : > { %1485 = vmatpush3.bf16.msra.mxu0 (!%p388_p2), %v1607_v0  ;;  %1488 = vmatprep.mubr.msk.bf16.mxu0 (!%p388_p2), %vm1666_vm0, %v1665_v1  ;;  %s1668_s21 = smov (!%p388_p2), 96   ;;  %s1669_s22 = smov (!%p388_p2), 80   ;;  %vm1035_vm4 = vcmask (!%p388_p2), 195584   ;;  %vm1263_vm5 = vcmask (!%p388_p2), 523264  }
   0x8   : > { %1486 = vmatprep.subr.bf16.mxu0 (!%p388_p2), %v1665_v1  ;;  %1494 = vmatprep.mubr.msk.bf16.mxu1 (!%p388_p2), %vm1666_vm0, %v1665_v1  ;;  %s1670_s23 = smov (!%p388_p2), 88   ;;  %s1671_s24 = smov (!%p388_p2), 72  }
   0x9   : > { %s1672_s27 = smov (!%p388_p2), 112   ;;  %s1673_s28 = smov (!%p388_p2), 104  }
   0xa   : > { %s1674_s29 = smov (!%p388_p2), 56   ;;  %s1675_s30 = smov (!%p388_p2), 64  }
   0xb   : > { %1487 = vmatpush3.bf16.msra.mxu0 (!%p388_p2), %v1608_v2  ;;  %s1676_s15 = smov (!%p388_p2), 48   ;;  %s1677_s16 = smov (!%p388_p2), 40  }
   0xc   : > { %1498 = vmatprep.subr.bf16.mxu0 (!%p388_p2), %v1665_v1 }
   0xd   : > { %s1960_s26 = smov (!%p431_p3, %s1411_s26), 1 }
   0xe   : > { %s1452_s14 = sshll.u32 %s1960_s26, 4 }
   0xf   : > { %s435_s17 = scalar_lea.vmem %s1945_s0, %s1452_s14 }
  0x10   : > { %v1781_v3 = vld [vmem:[%s435_s17] sm:$0xff]  ;;  %v1783_v4 = vld [vmem:[%s435_s17 + $0x8] sm:$0xff]  ;;  %s1678_s17 = smov 8  }
  0x11   : > { %v444_v5 = vpack.c.bf16 %v1783_v4, %v1781_v3 }
  0x13   : > { %1489 = vmatmul.mubr.msk.bf16.vlgmr.msra.gmra.mrb[0].mxu0 %vm468_vm1, %v444_v5 }
  0x14   : > { %1500 = vmatprep.mubr.msk.bf16.mxu0 %vm1666_vm0, %v1665_v1 }
  0xe6   : > { %v506_v7 = vpop.f32.mrb[0].mxu0 }
  0xe7   : > { %v1490_v8 = vpop.f32.mrb[1].mxu0  ;;  %v507_v10 = vadd.f32 %v1420_v6, %v506_v7 }
  0xe8   : > { %v509_v9 = vpop.f32.mrb[2].mxu0 }
  0xe9   : > { %v510_v11 = vadd.f32 %v1420_v6, %v509_v9  ;;  %v1491_v12 = vpop.f32.mrb[3].mxu0 }
  0xeb   : > { %v1793_v13 = vpack.c.bf16 %v510_v11, %v507_v10 }
  0xed   : > { %638 = vrot.lane.b32.xlu1 %v1793_v13, %s1667_s20  ;;  %515 = vrot.lane.b32.xlu0 %v1793_v13, %s1668_s21 }
  0xf1   : > { %763 = vrot.lane.b32.xlu1 %v1793_v13, %s1669_s22  ;;  %640 = vrot.lane.b32.xlu0 %v1793_v13, %s1670_s23  ;;  %s1679_s22 = smov 16   ;;  %s1680_s23 = smov 24  }
  0xf5   : > { %886 = vrot.lane.b32.xlu1 %v1793_v13, %s1671_s24  ;;  %761 = vrot.lane.b32.xlu0 %v1793_v13, %s1672_s27  ;;  %s440_s24 = scalar_lea.vmem %s1958_s13, %s1452_s14 }
  0xf9   : > { %884 = vrot.lane.b32.xlu0 %v1793_v13, %s1673_s28 }
 0x15f   : > { %v516_v14 = vpop.permute.xlu0 %515  ;;  %v639_v17 = vpop.permute.xlu1 %638 }
 0x160   : > { %v522_v15 = vsel %vm517_vm2, %v516_v14, 0 }
 0x161   : > { %1493 = vmatpush3.bf16.xpose.msra.mxu1 %v522_v15 }
 0x162   : > { %1504 = vmatprep.subr.bf16.mxu1 %v1665_v1 }
 0x163   : > { %v641_v16 = vpop.permute.xlu0 %640  ;;  %v764_v19 = vpop.permute.xlu1 %763 }
 0x164   : > { %v646_v18 = vsel %vm517_vm2, %v641_v16, 0  ;;  %v769_v20 = vsel %vm517_vm2, %v764_v19, 0 }
 0x167   : > { %v887_v21 = vpop.permute.xlu1 %886  ;;  %v762_v22 = vpop.permute.xlu0 %761 }
 0x168   : > { %1495 = vmatmul.mubr.msk.bf16.vlgmr.msra.gmra.mrb[0].mxu1 %vm517_vm2, %v1793_v13  ;;  %v892_v23 = vsel %vm517_vm2, %v887_v21, 0 }
 0x169   : > { %1505 = vmatpush3.bf16.xpose.msra.mxu1 %v646_v18  ;;  %1506 = vmatprep.mubr.msk.bf16.mxu1 %vm1666_vm0, %v1665_v1 }
 0x16a   : > { %1516 = vmatprep.subr.bf16.mxu1 %v1665_v1 }
 0x16b   : > { %v885_v24 = vpop.permute.xlu0 %884 }
 0x170   : > { %1507 = vmatmul.mubr.msk.bf16.vlgmr.msra.gmra.mrb[4].mxu1 %vm517_vm2, %v639_v17 }
 0x171   : > { %1517 = vmatpush3.bf16.xpose.msra.mxu1 %v769_v20  ;;  %1518 = vmatprep.mubr.msk.bf16.mxu1 %vm1666_vm0, %v1665_v1 }
 0x172   : > { %1528 = vmatprep.subr.bf16.mxu1 %v1665_v1 }
 0x178   : > { %1519 = vmatmul.mubr.msk.bf16.vlgmr.msra.gmra.mrb[8].mxu1 %vm517_vm2, %v762_v22 }
 0x179   : > { %1529 = vmatpush3.bf16.xpose.msra.mxu1 %v892_v23  ;;  %1530 = vmatprep.mubr.msk.bf16.mxu1 %vm1666_vm0, %v1665_v1 }
 0x17a   : > { %1540 = vmatprep.subr.bf16.mxu1 %v1665_v1 }
 0x180   : > { %1531 = vmatmul.mubr.msk.bf16.vlgmr.msra.gmra.mrb[12].mxu1 %vm517_vm2, %v885_v24 }
 0x181   : > { %1544 = vmatprep.mubr.msk.bf16.mxu1 %vm1666_vm0, %v1665_v1 }
 0x23b   : > { %v558_v25 = vpop.f32.mrb[0].mxu1 }
 0x23c   : > { %v565_v26 = vmul.f32 0.35355338, %v558_v25  ;;  %v1496_v27 = vpop.f32.mrb[1].mxu1 }
 0x23d   : > { %v561_v28 = vpop.f32.mrb[2].mxu1 }
 0x23e   : > { %v566_v29 = vmul.f32 0.35355338, %v561_v28  ;;  %v1497_v30 = vpop.f32.mrb[3].mxu1  ;;  %v568_v31 = vsel %vm567_vm3, %v565_v26, -inf }
 0x23f   : > { %569 = vmax.xlane.f32.xlu1 %v568_v31 }
 0x240   : > { %v571_v32 = vsel %vm567_vm3, %v566_v29, -inf }
 0x241   : > { %572 = vmax.xlane.f32.xlu0 %v571_v32 }
 0x243   : > { %v682_v33 = vpop.f32.mrb[4].mxu1 }
 0x244   : > { %v689_v34 = vmul.f32 0.35355338, %v682_v33  ;;  %v1508_v35 = vpop.f32.mrb[5].mxu1 }
 0x245   : > { %v685_v36 = vpop.f32.mrb[6].mxu1 }
 0x246   : > { %v690_v37 = vmul.f32 0.35355338, %v685_v36  ;;  %v1509_v38 = vpop.f32.mrb[7].mxu1  ;;  %v691_v39 = vsel %vm567_vm3, %v689_v34, -inf }
 0x247   : > { %692 = vmax.xlane.f32.xlu0 %v691_v39 }
 0x248   : > { %v694_v40 = vsel %vm567_vm3, %v690_v37, -inf }
 0x249   : > { %695 = vmax.xlane.f32.xlu1 %v694_v40 }
 0x24b   : > { %v805_v41 = vpop.f32.mrb[8].mxu1 }
 0x24c   : > { %v812_v42 = vmul.f32 0.35355338, %v805_v41  ;;  %v1520_v43 = vpop.f32.mrb[9].mxu1 }
 0x24d   : > { %v808_v44 = vpop.f32.mrb[10].mxu1 }
 0x24e   : > { %v1521_v45 = vpop.f32.mrb[11].mxu1  ;;  %v814_v46 = vsel %vm567_vm3, %v812_v42, -inf  ;;  %v813_v51 = vmul.f32 0.35355338, %v808_v44 }
 0x24f   : > { %815 = vmax.xlane.f32.xlu0 %v814_v46 }
 0x250   : > { %v817_v53 = vsel %vm567_vm3, %v813_v51, -inf }
 0x253   : > { %v928_v47 = vpop.f32.mrb[12].mxu1 }
 0x254   : > { %v1532_v48 = vpop.f32.mrb[13].mxu1  ;;  %v1831_v54 = vmul.f32 0.35355338, %v928_v47 }
 0x255   : > { %v931_v49 = vpop.f32.mrb[14].mxu1 }
 0x256   : > { %v1533_v50 = vpop.f32.mrb[15].mxu1  ;;  %v936_v52 = vmul.f32 0.35355338, %v931_v49  ;;  %v937_v56 = vsel %vm567_vm3, %v1831_v54, -inf }
 0x258   : > { %v940_v55 = vsel %vm567_vm3, %v936_v52, -inf }
 0x25a   : > { %710 = vrot.lane.b32.xlu1 %v1793_v13, %s1674_s29 }
 0x265   : > { %587 = vrot.lane.b32.xlu0 %v1793_v13, %s1675_s30 }
 0x27e   : > { %818 = vmax.xlane.f32.xlu1 %v817_v53 }
 0x282   : > { %941 = vmax.xlane.f32.xlu1 %v940_v55 }
 0x284   : > { %938 = vmax.xlane.f32.xlu0 %v937_v56 }
 0x293   : > { %833 = vrot.lane.b32.xlu1 %v1793_v13, %s1676_s15 }
 0x29a   : > { %956 = vrot.lane.b32.xlu0 %v1793_v13, %s1677_s16 }
 0x2cc   : > { %v570_v57 = vpop.xlane.xlu1 %569 }
 0x2cd   : > { %v574_v59 = vsub.f32 %v565_v26, %v570_v57 }
 0x2ce   : > { %v573_v58 = vpop.xlane.xlu0 %572 }
 0x2cf   : > { %v575_v60 = vsub.f32 %v566_v29, %v573_v58  ;;  %v576_v62 = vmul.f32 1.442695, %v574_v59 }
 0x2d1   : > { %v578_v61 = vmul.f32 1.442695, %v575_v60 }
 0x2d3   : > { %1617 = vpow2.f32 %v578_v61 }
 0x2d4   : > { %v693_v63 = vpop.xlane.xlu0 %692  ;;  %1619 = vpow2.f32 %v576_v62  ;;  %v1609_v62 = vld [vmem:[%s1948_s3] sm:$0xff]  }
 0x2d5   : > { %v697_v0 = vsub.f32 %v689_v34, %v693_v63  ;;  %1541 = vmatpush3.bf16.msra.mxu1 %v1609_v62 }
 0x2d6   : > { %v696_v2 = vpop.xlane.xlu1 %695  ;;  %1542 = vmatprep.subr.bf16.mxu1 %v1665_v1 }
 0x2d7   : > { %v699_v5 = vmul.f32 1.442695, %v697_v0  ;;  %v698_v6 = vsub.f32 %v690_v37, %v696_v2 }
 0x2d9   : > { %1621 = vpow2.f32 %v699_v5  ;;  %v701_v7 = vmul.f32 1.442695, %v698_v6 }
 0x2da   : > { %v711_v16 = vpop.permute.xlu1 %710 }
 0x2db   : > { %1623 = vpow2.f32 %v701_v7 }
 0x2dc   : > { %v816_v8 = vpop.xlane.xlu0 %815 }
 0x2dd   : > { %v820_v9 = vsub.f32 %v812_v42, %v816_v8  ;;  %v1618_v10 = vpop.eup %1617 }
 0x2de   : > { %v1620_v13 = vpop.eup %1619  ;;  %v583_v41 = vsel %vm567_vm3, %v1618_v10, 0.0 }
 0x2df   : > { %v822_v11 = vmul.f32 1.442695, %v820_v9  ;;  %v586_v14 = vpack.c.bf16 %v1618_v10, %v1620_v13  ;;  %v580_v43 = vsel %vm567_vm3, %v1620_v13, 0.0 }
 0x2e0   : > { %v588_v12 = vpop.permute.xlu0 %587 }
 0x2e1   : > { %1625 = vpow2.f32 %v822_v11  ;;  %1499 = vmatpush3.bf16.msra.mxu0 %v588_v12  ;;  %v1610_v11 = vld [vmem:[%s1948_s3 + $0x8] sm:$0xff]  }
 0x2e2   : > { %1510 = vmatprep.subr.bf16.mxu0 %v1665_v1  ;;  %1543 = vmatpush3.bf16.msra.mxu1 %v1610_v11 }
 0x2e3   : > { %v1622_v15 = vpop.eup %1621  ;;  %1556 = vmatprep.subr.bf16.mxu1 %v1665_v1 }
 0x2e4   : > { %1501 = vmatmul.mubr.msk.bf16.vlgmr.msra.gmra.mrb[4].mxu0 %vm567_vm3, %v586_v14  ;;  %v703_v17 = vsel %vm567_vm3, %v1622_v15, 0.0 }
 0x2e5   : > { %v1624_v18 = vpop.eup %1623  ;;  %704 = vadd.xlane.f32.xlu1 %v703_v17  ;;  %1511 = vmatpush3.bf16.msra.mxu0 %v711_v16 }
 0x2e6   : > { %v706_v19 = vsel %vm567_vm3, %v1624_v18, 0.0  ;;  %1512 = vmatprep.mubr.msk.bf16.mxu0 %vm1666_vm0, %v1665_v1  ;;  %1522 = vmatprep.subr.bf16.mxu0 %v1665_v1  ;;  %v709_v20 = vpack.c.bf16 %v1624_v18, %v1622_v15 }
 0x2e7   : > { %707 = vadd.xlane.f32.xlu0 %v706_v19 }
 0x2eb   : > { %v1626_v21 = vpop.eup %1625 }
 0x2ec   : > { %1513 = vmatmul.mubr.msk.bf16.vlgmr.msra.gmra.mrb[8].mxu0 %vm567_vm3, %v709_v20  ;;  %v826_v22 = vsel %vm567_vm3, %v1626_v21, 0.0 }
 0x2ed   : > { %827 = vadd.xlane.f32.xlu0 %v826_v22  ;;  %1524 = vmatprep.mubr.msk.bf16.mxu0 %vm1666_vm0, %v1665_v1 }
 0x30b   : > { %v819_v23 = vpop.xlane.xlu1 %818 }
 0x30c   : > { %v821_v24 = vsub.f32 %v813_v51, %v819_v23 }
 0x30e   : > { %v824_v25 = vmul.f32 1.442695, %v821_v24 }
 0x30f   : > { %v942_v26 = vpop.xlane.xlu1 %941 }
 0x310   : > { %1627 = vpow2.f32 %v824_v25  ;;  %v944_v27 = vsub.f32 %v936_v52, %v942_v26 }
 0x311   : > { %v939_v28 = vpop.xlane.xlu0 %938 }
 0x312   : > { %v947_v29 = vmul.f32 1.442695, %v944_v27  ;;  %v943_v30 = vsub.f32 %v1831_v54, %v939_v28 }
 0x313   : > { %v834_v31 = vpop.permute.xlu1 %833 }
 0x314   : > { %1629 = vpow2.f32 %v947_v29  ;;  %v945_v32 = vmul.f32 1.442695, %v943_v30  ;;  %1523 = vmatpush3.bf16.msra.mxu0 %v834_v31 }
 0x315   : > { %1534 = vmatprep.subr.bf16.mxu0 %v1665_v1  ;;  %v957_v36 = vpop.permute.xlu0 %956 }
 0x316   : > { %1631 = vpow2.f32 %v945_v32 }
 0x31a   : > { %v1628_v33 = vpop.eup %1627 }
 0x31b   : > { %v829_v34 = vsel %vm567_vm3, %v1628_v33, 0.0  ;;  %v832_v35 = vpack.c.bf16 %v1628_v33, %v1626_v21 }
 0x31c   : > { %830 = vadd.xlane.f32.xlu1 %v829_v34 }
 0x31d   : > { %1525 = vmatmul.mubr.msk.bf16.vlgmr.msra.gmra.mrb[12].mxu0 %vm567_vm3, %v832_v35 }
 0x31e   : > { %v1630_v37 = vpop.eup %1629  ;;  %1535 = vmatpush3.bf16.msra.mxu0 %v957_v36  ;;  %1536 = vmatprep.mubr.msk.bf16.mxu0 %vm1666_vm0, %v1665_v1 }
 0x31f   : > { %v952_v38 = vsel %vm567_vm3, %v1630_v37, 0.0  ;;  %1548 = vmatprep.subr.bf16.mxu0 %v1665_v1 }
 0x320   : > { %v1632_v39 = vpop.eup %1631  ;;  %953 = vadd.xlane.f32.xlu1 %v952_v38 }
 0x321   : > { %v949_v40 = vsel %vm567_vm3, %v1632_v39, 0.0  ;;  %v955_v42 = vpack.c.bf16 %v1630_v37, %v1632_v39 }
 0x322   : > { %950 = vadd.xlane.f32.xlu0 %v949_v40 }
 0x324   : > { %584 = vadd.xlane.f32.xlu1 %v583_v41 }
 0x325   : > { %1537 = vmatmul.mubr.msk.bf16.vlgmr.msra.gmra.mrb[16].mxu0 %vm567_vm3, %v955_v42 }
 0x326   : > { %581 = vadd.xlane.f32.xlu0 %v580_v43  ;;  %1552 = vmatprep.mubr.msk.bf16.mxu0 %vm1666_vm0, %v1665_v1 }
 0x372   : > { %v705_v44 = vpop.xlane.xlu1 %704 }
 0x373   : > { %1633 = vrcp.f32 %v705_v44  ;;  %v1432_v44 = vld [vmem:[%s1949_s4] ss:$0 sm:$0xff] }
 0x374   : > { %v708_v45 = vpop.xlane.xlu0 %707 }
 0x375   : > { %1635 = vrcp.f32 %v708_v45 }
 0x37a   : > { %v828_v59 = vpop.xlane.xlu0 %827 }
 0x37b   : > { %1637 = vrcp.f32 %v828_v59 }
 0x37d   : > { %v1634_v51 = vpop.eup %1633 }
 0x37f   : > { %v1636_v53 = vpop.eup %1635 }
 0x385   : > { %v1638_v2 = vpop.eup %1637 }
 0x3a9   : > { %v831_v60 = vpop.xlane.xlu1 %830 }
 0x3aa   : > { %1639 = vrcp.f32 %v831_v60 }
 0x3ad   : > { %v954_v61 = vpop.xlane.xlu1 %953 }
 0x3ae   : > { %1641 = vrcp.f32 %v954_v61 }
 0x3af   : > { %v951_v63 = vpop.xlane.xlu0 %950 }
 0x3b0   : > { %1643 = vrcp.f32 %v951_v63 }
 0x3b1   : > { %v585_v22 = vpop.xlane.xlu1 %584 }
 0x3b2   : > { %1645 = vrcp.f32 %v585_v22 }
 0x3b3   : > { %v582_v23 = vpop.xlane.xlu0 %581 }
 0x3b4   : > { %v1640_v6 = vpop.eup %1639  ;;  %1647 = vrcp.f32 %v582_v23  ;;  %v1615_v23 = vld [vmem:[%s1954_s9 + $0x10] sm:$0xff]  }
 0x3b7   : > { %v1863_v46 = vpop.f32.mrb[4].mxu0 }
 0x3b8   : > { %v1502_v47 = vpop.f32.mrb[5].mxu0  ;;  %v1642_v14 = vpop.eup %1641 }
 0x3b9   : > { %v630_v48 = vpop.f32.mrb[6].mxu0 }
 0x3ba   : > { %v1503_v49 = vpop.f32.mrb[7].mxu0  ;;  %v1644_v16 = vpop.eup %1643 }
 0x3bc   : > { %v1646_v25 = vpop.eup %1645 }
 0x3bd   : > { %v637_v33 = vmul.f32 %v1646_v25, %v630_v48  ;;  %v1438_v25 = vld [vmem:[%s1953_s8] ss:$0 sm:$0xff] }
 0x3be   : > { %v1648_v27 = vpop.eup %1647 }
 0x3bf   : > { %v750_v50 = vpop.f32.mrb[8].mxu0  ;;  %v636_v32 = vmul.f32 %v1648_v27, %v1863_v46 }
 0x3c0   : > { %v1514_v52 = vpop.f32.mrb[9].mxu0  ;;  %v759_v55 = vmul.f32 %v1634_v51, %v750_v50 }
 0x3c1   : > { %v753_v54 = vpop.f32.mrb[10].mxu0 }
 0x3c2   : > { %v760_v56 = vmul.f32 %v1636_v53, %v753_v54  ;;  %v1515_v57 = vpop.f32.mrb[11].mxu0 }
 0x3c4   : > { %v1592_v58 = vpack.i.bf16 %v760_v56, %v759_v55 }
 0x3c6   : > { %1593 = vrot.lane.b32.xlu0 %v1592_v58, %s1678_s17 }
 0x3f0   : > { %v873_v0 = vpop.f32.mrb[12].mxu0 }
 0x3f1   : > { %v1526_v5 = vpop.f32.mrb[13].mxu0  ;;  %v882_v8 = vmul.f32 %v1638_v2, %v873_v0  ;;  %v1612_v0 = vld [vmem:[%s1952_s7 + $0x8] sm:$0xff]   ;;  %v1613_v2 = vld [vmem:[%s1954_s9] sm:$0xff]  }
 0x3f2   : > { %v876_v7 = vpop.f32.mrb[14].mxu0  ;;  %v1614_v5 = vld [vmem:[%s1954_s9 + $0x8] sm:$0xff]  }
 0x3f3   : > { %v883_v9 = vmul.f32 %v1640_v6, %v876_v7  ;;  %v1527_v10 = vpop.f32.mrb[15].mxu0 }
 0x3f5   : > { %v1597_v12 = vpack.i.bf16 %v883_v9, %v882_v8 }
 0x3f7   : > { %1598 = vrot.lane.b32.xlu1 %v1597_v12, %s1679_s22 }
 0x3f8   : > { %v996_v13 = vpop.f32.mrb[16].mxu0 }
 0x3f9   : > { %v1538_v15 = vpop.f32.mrb[17].mxu0  ;;  %v1005_v18 = vmul.f32 %v1644_v16, %v996_v13 }
 0x3fa   : > { %v999_v17 = vpop.f32.mrb[18].mxu0 }
 0x3fb   : > { %v1006_v19 = vmul.f32 %v1642_v14, %v999_v17  ;;  %v1539_v20 = vpop.f32.mrb[19].mxu0  ;;  %v1436_v14 = vld [vmem:[%s1950_s5] ss:$0 sm:$0xff] }
 0x3fd   : > { %v1602_v21 = vpack.i.bf16 %v1006_v19, %v1005_v18  ;;  %v1437_v18 = vld [vmem:[%s1951_s6] ss:$0 sm:$0xff] }
 0x3ff   : > { %1603 = vrot.lane.b32.xlu1 %v1602_v21, %s1680_s23 }
 0x438   : > { %v1594_v24 = vpop.permute.xlu0 %1593 }
 0x439   : > { %v1596_v28 = vunpack.i.h.bf16 %v1594_v24  ;;  %v1595_v29 = vunpack.i.l.bf16 %v1594_v24  ;;  %v1616_v24 = vld [vmem:[%s1954_s9 + $0x18] sm:$0xff]  }
 0x43b   : > { %v1032_v35 = vsel %vm517_vm2, %v637_v33, %v1596_v28  ;;  %v1031_v36 = vsel %vm517_vm2, %v636_v32, %v1595_v29 }
 0x469   : > { %v1599_v26 = vpop.permute.xlu1 %1598 }
 0x46a   : > { %v1601_v30 = vunpack.i.h.bf16 %v1599_v26  ;;  %v1600_v31 = vunpack.i.l.bf16 %v1599_v26 }
 0x46c   : > { %v1034_v39 = vsel %vm567_vm3, %v1032_v35, %v1601_v30  ;;  %v1033_v40 = vsel %vm567_vm3, %v1031_v36, %v1600_v31 }
 0x471   : > { %v1604_v34 = vpop.permute.xlu1 %1603 }
 0x472   : > { %v1606_v37 = vunpack.i.h.bf16 %v1604_v34  ;;  %v1605_v38 = vunpack.i.l.bf16 %v1604_v34 }
 0x474   : > { %v1037_v41 = vsel %vm1035_vm4, %v1034_v39, %v1606_v37  ;;  %v1036_v42 = vsel %vm1035_vm4, %v1033_v40, %v1605_v38 }
 0x475   : > { %v1038_v43 = vpack.c.bf16 %v1037_v41, %v1036_v42 }
 0x477   : > { %1545 = vmatmul.mubr.msk.bf16.vlgmr.msra.gmra.mrb[16].mxu1 %vm468_vm1, %v1038_v43 }
 0x478   : > { %1564 = vmatprep.mubr.msk.bf16.mxu1 %vm1666_vm0, %v1665_v1  ;;  %1557 = vmatpush3.bf16.msra.mxu1 %v1613_v2 }
 0x479   : > { %1558 = vmatprep.subr.bf16.mxu1 %v1665_v1 }
 0x47c   : > { %1559 = vmatpush3.bf16.msra.mxu1 %v1614_v5 }
 0x47d   : > { %1560 = vmatprep.subr.bf16.mxu1 %v1665_v1 }
 0x480   : > { %1561 = vmatpush3.bf16.msra.mxu1 %v1615_v23 }
 0x481   : > { %1562 = vmatprep.subr.bf16.mxu1 %v1665_v1 }
 0x484   : > { %1563 = vmatpush3.bf16.msra.mxu1 %v1616_v24 }
 0x54a   : > { %v1099_v45 = vpop.f32.mrb[16].mxu1 }
 0x54b   : > { %v1100_v46 = vadd.f32 %v1432_v44, %v1099_v45  ;;  %v1546_v47 = vpop.f32.mrb[17].mxu1 }
 0x54c   : > { %v1102_v48 = vpop.f32.mrb[18].mxu1 }
 0x54d   : > { %v1103_v49 = vadd.f32 %v1432_v44, %v1102_v48  ;;  %v1547_v50 = vpop.f32.mrb[19].mxu1  ;;  %v1106_v51 = vadd.f32 %v1100_v46, %v1781_v3 }
 0x54f   : > { %v1108_v52 = vsel %vm468_vm1, %v1106_v51, 0.0  ;;  %v1107_v53 = vadd.f32 %v1103_v49, %v1783_v4  ;;  %v1611_v4 = vld [vmem:[%s1952_s7] sm:$0xff]  }
 0x550   : > { %1109 = vadd.xlane.f32.xlu0 %v1108_v52  ;;  %1549 = vmatpush3.bf16.msra.mxu0 %v1611_v4  ;;  %v1449_v4 = vld [vmem:[%s1957_s12] ss:$0 sm:$0xff] }
 0x551   : > { %v1111_v54 = vsel %vm468_vm1, %v1107_v53, 0.0  ;;  %1550 = vmatprep.subr.bf16.mxu0 %v1665_v1  ;;  %v1442_v1 = vld [vmem:[%s1955_s10] ss:$0 sm:$0xff] }
 0x552   : > { %1112 = vadd.xlane.f32.xlu1 %v1111_v54 }
 0x554   : > { %1551 = vmatpush3.bf16.msra.mxu0 %v1612_v0 }
 0x5dd   : > { %v1110_v55 = vpop.xlane.xlu0 %1109 }
 0x5de   : > { %v1115_v56 = vmul.f32 0.03125, %v1110_v55 }
 0x5df   : > { %v1113_v57 = vpop.xlane.xlu1 %1112 }
 0x5e0   : > { %v1117_v58 = vsub.f32 %v1106_v51, %v1115_v56  ;;  %v1116_v59 = vmul.f32 0.03125, %v1113_v57 }
 0x5e2   : > { %v1118_v60 = vsub.f32 %v1107_v53, %v1116_v59  ;;  %v1119_v61 = vmul.f32 %v1117_v58, %v1117_v58 }
 0x5e4   : > { %v1121_v62 = vsel %vm468_vm1, %v1119_v61, 0.0  ;;  %v1120_v63 = vmul.f32 %v1118_v60, %v1118_v60 }
 0x5e5   : > { %1122 = vadd.xlane.f32.xlu0 %v1121_v62  ;;  %v1448_v62 = vld [vmem:[%s1956_s11] ss:$0 sm:$0xff] }
 0x5e6   : > { %v1124_v3 = vsel %vm468_vm1, %v1120_v63, 0.0 }
 0x5e9   : > { %1125 = vadd.xlane.f32.xlu0 %v1124_v3 }
 0x672   : > { %v1123_v6 = vpop.xlane.xlu0 %1122 }
 0x673   : > { %v1127_v7 = vmul.f32 0.03125, %v1123_v6 }
 0x675   : > { %v1129_v8 = vadd.f32 1e-05, %v1127_v7 }
 0x676   : > { %v1126_v9 = vpop.xlane.xlu0 %1125 }
 0x677   : > { %1649 = vrsqrt.f32 %v1129_v8  ;;  %v1128_v10 = vmul.f32 0.03125, %v1126_v9 }
 0x679   : > { %v1130_v11 = vadd.f32 1e-05, %v1128_v10 }
 0x67b   : > { %1651 = vrsqrt.f32 %v1130_v11 }
 0x681   : > { %v1650_v12 = vpop.eup %1649 }
 0x682   : > { %v1133_v13 = vmul.f32 %v1650_v12, %v1117_v58 }
 0x684   : > { %v1142_v16 = vmul.f32 %v1436_v14, %v1133_v13 }
 0x685   : > { %v1652_v15 = vpop.eup %1651 }
 0x686   : > { %v1134_v17 = vmul.f32 %v1652_v15, %v1118_v60  ;;  %v1151_v20 = vadd.f32 %v1437_v18, %v1142_v16 }
 0x688   : > { %v1143_v19 = vmul.f32 %v1436_v14, %v1134_v17 }
 0x68a   : > { %v1152_v21 = vadd.f32 %v1437_v18, %v1143_v19 }
 0x68c   : > { %v1153_v22 = vpack.c.bf16 %v1152_v21, %v1151_v20 }
 0x68e   : > { %1553 = vmatmul.mubr.msk.bf16.vlgmr.msra.gmra.mrb[20].mxu0 %vm468_vm1, %v1153_v22 }
 0x761   : > { %v1214_v26 = vpop.f32.mrb[20].mxu0 }
 0x762   : > { %v1215_v27 = vadd.f32 %v1438_v25, %v1214_v26  ;;  %v1554_v28 = vpop.f32.mrb[21].mxu0 }
 0x763   : > { %v1217_v29 = vpop.f32.mrb[22].mxu0 }
 0x764   : > { %v1218_v30 = vadd.f32 %v1438_v25, %v1217_v29  ;;  %v1555_v31 = vpop.f32.mrb[23].mxu0  ;;  %v1221_v32 = vmax.f32 %v1215_v27, 0.0 }
 0x766   : > { %v1222_v33 = vmax.f32 %v1218_v30, 0.0 }
 0x768   : > { %v1223_v34 = vpack.c.bf16 %v1222_v33, %v1221_v32 }
 0x76a   : > { %1565 = vmatmul.mubr.msk.bf16.vlgmr.msra.gmra.mrb[20].mxu1 %vm1263_vm5, %v1223_v34 }
 0x83d   : > { %v1301_v35 = vpop.f32.mrb[20].mxu1 }
 0x83e   : > { %v1302_v36 = vadd.f32 %v1442_v1, %v1301_v35  ;;  %v1566_v37 = vpop.f32.mrb[21].mxu1 }
 0x83f   : > { %v1304_v38 = vpop.f32.mrb[22].mxu1 }
 0x840   : > { %v1305_v39 = vadd.f32 %v1442_v1, %v1304_v38  ;;  %v1567_v40 = vpop.f32.mrb[23].mxu1  ;;  %v1308_v41 = vadd.f32 %v1302_v36, %v1151_v20 }
 0x842   : > { %v1310_v42 = vsel %vm468_vm1, %v1308_v41, 0.0  ;;  %v1309_v43 = vadd.f32 %v1305_v39, %v1152_v21 }
 0x843   : > { %1311 = vadd.xlane.f32.xlu1 %v1310_v42 }
 0x844   : > { %v1313_v44 = vsel %vm468_vm1, %v1309_v43, 0.0 }
 0x845   : > { %1314 = vadd.xlane.f32.xlu0 %v1313_v44 }
 0x8d0   : > { %v1312_v45 = vpop.xlane.xlu1 %1311 }
 0x8d1   : > { %v1316_v46 = vmul.f32 0.03125, %v1312_v45 }
 0x8d2   : > { %v1315_v47 = vpop.xlane.xlu0 %1314 }
 0x8d3   : > { %v1318_v48 = vsub.f32 %v1308_v41, %v1316_v46  ;;  %v1317_v49 = vmul.f32 0.03125, %v1315_v47 }
 0x8d5   : > { %v1319_v50 = vsub.f32 %v1309_v43, %v1317_v49  ;;  %v1320_v51 = vmul.f32 %v1318_v48, %v1318_v48 }
 0x8d7   : > { %v1322_v52 = vsel %vm468_vm1, %v1320_v51, 0.0  ;;  %v1321_v53 = vmul.f32 %v1319_v50, %v1319_v50 }
 0x8d8   : > { %1323 = vadd.xlane.f32.xlu1 %v1322_v52 }
 0x8d9   : > { %v1325_v54 = vsel %vm468_vm1, %v1321_v53, 0.0 }
 0x8da   : > { %1326 = vadd.xlane.f32.xlu0 %v1325_v54 }
 0x965   : > { %v1324_v55 = vpop.xlane.xlu1 %1323 }
 0x966   : > { %v1328_v56 = vmul.f32 0.03125, %v1324_v55 }
 0x967   : > { %v1327_v57 = vpop.xlane.xlu0 %1326 }
 0x968   : > { %v1330_v58 = vadd.f32 1e-05, %v1328_v56  ;;  %v1329_v59 = vmul.f32 0.03125, %v1327_v57 }
 0x96a   : > { %1653 = vrsqrt.f32 %v1330_v58  ;;  %v1331_v60 = vadd.f32 1e-05, %v1329_v59 }
 0x96c   : > { %1655 = vrsqrt.f32 %v1331_v60 }
 0x974   : > { %v1654_v61 = vpop.eup %1653 }
 0x975   : > { %v1334_v63 = vmul.f32 %v1654_v61, %v1318_v48 }
 0x976   : > { %v1656_v3 = vpop.eup %1655 }
 0x977   : > { %v1343_v0 = vmul.f32 %v1448_v62, %v1334_v63  ;;  %v1335_v2 = vmul.f32 %v1656_v3, %v1319_v50 }
 0x979   : > { %v1352_v5 = vadd.f32 %v1449_v4, %v1343_v0  ;;  %v1344_v6 = vmul.f32 %v1448_v62, %v1335_v2 }
 0x97b   : > { %1354 = vst.msk [vmem:[%s440_s24] sm:$0xff] %vm468_vm1, %v1352_v5  ;;  %v1353_v7 = vadd.f32 %v1449_v4, %v1344_v6 }
 0x97d   : > { %1355 = vst.msk [vmem:[%s440_s24 + $0x8] sm:$0xff] %vm468_vm1, %v1353_v7 }
 0x97e PF: > { %s23_s25 = sadd.s32 1, %s1663_s25  }
 0x97f   : > { %p20_p4 = scmp.ge.s32.totalorder %s23_s25, 4  }
 0x981   :  { %22 = sbr.rel (!%p20_p4) target bundleno = 1 (0x1), region = 102 }

// kernel: transformer_forward.10
= control target key start
LH: loop header
LB: loop body
LE: loop exit
PB: predicated region body
PF: predicated region fallthrough
CT: control target
= control target key end

     0   :  { %s3068_s0 = inlined_call_operand.vmem [shape: f32[2,8,32], index: 0, kind: input, shape index: {}]   ;;  %s3069_s1 = inlined_call_operand.vmem [shape: f32[2,16,32], index: 1, kind: input, shape index: {}]   ;;  %s3070_s2 = inlined_call_operand.vmem [shape: bf16[32,96], index: 2, kind: input, shape index: {}]   ;;  %s3071_s3 = inlined_call_operand.vmem [shape: f32[1,96], index: 3, kind: input, shape index: {}]   ;;  %s3072_s4 = inlined_call_operand.vmem [shape: bf16[32,32], index: 4, kind: input, shape index: {}]   ;;  %s3073_s5 = inlined_call_operand.vmem [shape: f32[1,32], index: 5, kind: input, shape index: {}]   ;;  %s3074_s6 = inlined_call_operand.vmem [shape: f32[1,32], index: 6, kind: input, shape index: {}]   ;;  %s3075_s7 = inlined_call_operand.vmem [shape: f32[1,32], index: 7, kind: input, shape index: {}]   ;;  %s3076_s8 = inlined_call_operand.vmem [shape: bf16[32,32], index: 8, kind: input, shape index: {}]   ;;  %s3077_s9 = inlined_call_operand.vmem [shape: f32[1,32], index: 9, kind: input, shape index: {}]   ;;  %s3078_s10 = inlined_call_operand.vmem [shape: bf16[32,64], index: 10, kind: input, shape index: {}]   ;;  %s3079_s11 = inlined_call_operand.vmem [shape: f32[1,64], index: 11, kind: input, shape index: {}]   ;;  %s3080_s12 = inlined_call_operand.vmem [shape: bf16[32,32], index: 12, kind: input, shape index: {}]   ;;  %s3081_s13 = inlined_call_operand.vmem [shape: f32[1,32], index: 13, kind: input, shape index: {}]   ;;  %s3082_s14 = inlined_call_operand.vmem [shape: f32[1,32], index: 14, kind: input, shape index: {}]   ;;  %s3083_s15 = inlined_call_operand.vmem [shape: f32[1,32], index: 15, kind: input, shape index: {}]   ;;  %s3084_s16 = inlined_call_operand.vmem [shape: bf16[32,64], index: 16, kind: input, shape index: {}]   ;;  %s3085_s17 = inlined_call_operand.vmem [shape: f32[1,64], index: 17, kind: input, shape index: {}]   ;;  %s3086_s18 = inlined_call_operand.vmem [shape: bf16[64,32], index: 18, kind: input, shape index: {}]   ;;  %s3087_s19 = inlined_call_operand.vmem [shape: f32[1,32], index: 19, kind: input, shape index: {}]   ;;  %s3088_s20 = inlined_call_operand.vmem [shape: f32[1,32], index: 20, kind: input, shape index: {}]   ;;  %s3089_s21 = inlined_call_operand.vmem [shape: f32[1,32], index: 21, kind: input, shape index: {}]   ;;  %s3090_s22 = inlined_call_operand.vmem [shape: f32[2,8,32], index: 22, kind: output, shape index: {}]  }
   0x1   :  { %3103 = sst [smem:[#allocation2_spill]] %s3068_s0 }
   0x2   :  { %3104 = sst [smem:[#allocation3_spill]] %s3069_s1 }
   0x3   :  { %3105 = sst [smem:[#allocation4_spill]] %s3070_s2 }
   0x4   :  { %3106 = sst [smem:[#allocation5_spill]] %s3071_s3  ;;  %s2755_s3 = smov 0  }
   0x5   :  { %3107 = sst [smem:[#allocation6_spill]] %s3072_s4 }
   0x6   :  { %3108 = sst [smem:[#allocation7_spill]] %s3073_s5 }
   0x7   :  { %3109 = sst [smem:[#allocation8_spill]] %s3074_s6 }
   0x8 LB: > { %s2263_s28 = sadd.s32 4294967295, %s2622_s3   ;;  %p2267_p0 = scmp.ge.s32.totalorder %s2622_s3, 1  ;;  %s2622_s3 = sphi %s2755_s3, %s32_s3  }
   0x9   : > { %p621_p1 = scmp.lt.s32.totalorder %s2622_s3, 3 }
   0xb   : > { %p622_p2 = pnand %p2267_p0, %p621_p1 }
   0xc   : > { %s3110_s4 = sld [smem:[#allocation4_spill]] (!%p622_p2)  ;;  %v2624_v1 = vmov (!%p622_p2), 0.0   ;;  %vm2625_vm0 = vmmov (!%p622_p2), 0   ;;  %p686_p3 = scmp.lt.s32.totalorder (!%p622_p2), %s2263_s28, 1  ;;  %vm727_vm1 = vcmask (!%p622_p2), 261120   ;;  %vm775_vm2 = vcmask (!%p622_p2), 64512  }
   0xd   : > { %625 = sbr.rel (%p622_p2) target bundleno = 3993 (0xf99), region = 108  ;;  %2382 = vmatprep.subr.bf16.mxu1 (!%p622_p2), %v2624_v1  ;;  %2396 = vmatprep.subr.bf16.mxu0 (!%p622_p2), %v2624_v1  ;;  %s3111_s6 = sld [smem:[#allocation2_spill]] (!%p622_p2)  ;;  %vm838_vm3 = vcmask (!%p622_p2), 1043456   ;;  %vm1230_vm4 = vcmask (!%p622_p2), 130048   ;;  %vm1232_vm5 = vcmask (!%p622_p2), 195584   ;;  %vm2123_vm6 = vcmask (!%p622_p2), 523264  }
   0xe   : > { %2386 = vmatprep.mubr.msk.bf16.mxu1 (!%p622_p2), %vm2625_vm0, %v2624_v1  ;;  %2398 = vmatprep.mubr.msk.bf16.mxu0 (!%p622_p2), %vm2625_vm0, %v2624_v1  ;;  %s3112_s27 = sld [smem:[#allocation5_spill]] (!%p622_p2)  ;;  %s2626_s29 = smov (!%p622_p2), 120  }
   0xf   : > { %s3100_s30 = smov (!%p622_p2), 96   ;;  %s3099_s0 = smov (!%p622_p2), 80  }
  0x10   : > { %s3094_s23 = smov (!%p622_p2), 88   ;;  %s3098_s5 = smov (!%p622_p2), 72  }
  0x11   : > { %s2631_s24 = smov (!%p622_p2), 112   ;;  %s2634_s26 = smov (!%p622_p2), 64  }
  0x12   : > { %v2562_v0 = vld [vmem:[%s3110_s4] sm:$0xff] (!%p622_p2)   ;;  %v2563_v2 = vld [vmem:[%s3110_s4 + $0x8] sm:$0xff] (!%p622_p2)   ;;  %s2635_s2 = smov (!%p622_p2), 40  }
  0x13   : > { %2383 = vmatpush3.bf16.msra.mxu1 (!%p622_p2), %v2562_v0 }
  0x14   : > { %2384 = vmatprep.subr.bf16.mxu1 %v2624_v1  ;;  %s3127_s28 = smov (!%p686_p3, %s2263_s28), 1  ;;  %v2272_v5 = vld [vmem:[%s3112_s27] ss:$0 sm:$0xff]  ;;  %s2636_s27 = smov 48  }
  0x15   : > { %s3093_s1 = sshll.u32 %s3127_s28, 3 }
  0x16   : > { %s689_s25 = scalar_lea.vmem %s3111_s6, %s3093_s1  ;;  %s3101_s6 = smov 104  }
  0x17   : > { %2385 = vmatpush3.bf16.msra.mxu1 %v2563_v2  ;;  %v2785_v3 = vld [vmem:[%s689_s25] sm:$0xff]  ;;  %s2633_s25 = smov 56   ;;  %s3096_s1 = smov 24  }
  0x18   : > { %2390 = vmatprep.subr.bf16.mxu1 %v2624_v1  ;;  %v703_v4 = vpack.c.bf16 %v2785_v3, %v2785_v3 }
  0x1a   : > { %2387 = vmatmul.mubr.msk.bf16.vlgmr.msra.gmra.mrb[0].mxu1 %vm727_vm1, %v703_v4 }
  0x1b   : > { %2392 = vmatprep.mubr.msk.bf16.mxu1 %vm2625_vm0, %v2624_v1 }
  0xed   : > { %v765_v6 = vpop.f32.mrb[0].mxu1 }
  0xee   : > { %v766_v7 = vadd.f32 %v2272_v5, %v765_v6  ;;  %v2388_v8 = vpop.f32.mrb[1].mxu1 }
  0xef   : > { %v768_v9 = vpop.f32.mrb[2].mxu1 }
  0xf0   : > { %v2795_v10 = vpack.c.bf16 %v766_v7, %v766_v7  ;;  %v2389_v11 = vpop.f32.mrb[3].mxu1 }
  0xf2   : > { %884 = vrot.lane.b32.xlu1 %v2795_v10, %s2626_s29  ;;  %773 = vrot.lane.b32.xlu0 %v2795_v10, %s3100_s30  ;;  %s3115_s30 = sld [smem:[#allocation3_spill]] }
  0xf6   : > { %997 = vrot.lane.b32.xlu1 %v2795_v10, %s3099_s0  ;;  %886 = vrot.lane.b32.xlu0 %v2795_v10, %s3094_s23  ;;  %s2326_s23 = sshll.u32 %s3127_s28, 4  ;;  %s3117_s0 = smov 104  }
  0xfa   : > { %1108 = vrot.lane.b32.xlu1 %v2795_v10, %s3098_s5  ;;  %995 = vrot.lane.b32.xlu0 %v2795_v10, %s2631_s24  ;;  %s3124_s5 = smov 24  }
  0xfe   : > { %1106 = vrot.lane.b32.xlu0 %v2795_v10, %s3101_s6  ;;  %s3125_s6 = sshll.u32 %s3127_s28, 3 }
 0x164   : > { %v774_v12 = vpop.permute.xlu0 %773  ;;  %v885_v15 = vpop.permute.xlu1 %884 }
 0x165   : > { %v780_v13 = vsel %vm775_vm2, %v774_v12, 0 }
 0x166   : > { %2391 = vmatpush3.bf16.xpose.msra.mxu1 %v780_v13 }
 0x167   : > { %2402 = vmatprep.subr.bf16.mxu1 %v2624_v1 }
 0x168   : > { %v887_v14 = vpop.permute.xlu0 %886  ;;  %v998_v17 = vpop.permute.xlu1 %997 }
 0x169   : > { %v892_v16 = vsel %vm775_vm2, %v887_v14, 0  ;;  %v1003_v18 = vsel %vm775_vm2, %v998_v17, 0 }
 0x16c   : > { %v1109_v19 = vpop.permute.xlu1 %1108  ;;  %v996_v20 = vpop.permute.xlu0 %995 }
 0x16d   : > { %2393 = vmatmul.mubr.msk.bf16.vlgmr.msra.gmra.mrb[4].mxu1 %vm775_vm2, %v2795_v10  ;;  %v1114_v21 = vsel %vm775_vm2, %v1109_v19, 0 }
 0x16e   : > { %2403 = vmatpush3.bf16.xpose.msra.mxu1 %v892_v16  ;;  %2404 = vmatprep.mubr.msk.bf16.mxu1 %vm2625_vm0, %v2624_v1 }
 0x16f   : > { %2414 = vmatprep.subr.bf16.mxu1 %v2624_v1 }
 0x170   : > { %v1107_v22 = vpop.permute.xlu0 %1106 }
 0x175   : > { %2405 = vmatmul.mubr.msk.bf16.vlgmr.msra.gmra.mrb[8].mxu1 %vm775_vm2, %v885_v15 }
 0x176   : > { %2415 = vmatpush3.bf16.xpose.msra.mxu1 %v1003_v18  ;;  %2416 = vmatprep.mubr.msk.bf16.mxu1 %vm2625_vm0, %v2624_v1 }
 0x177   : > { %2426 = vmatprep.subr.bf16.mxu1 %v2624_v1 }
 0x17d   : > { %2417 = vmatmul.mubr.msk.bf16.vlgmr.msra.gmra.mrb[12].mxu1 %vm775_vm2, %v996_v20 }
 0x17e   : > { %2427 = vmatpush3.bf16.xpose.msra.mxu1 %v1114_v21  ;;  %2428 = vmatprep.mubr.msk.bf16.mxu1 %vm2625_vm0, %v2624_v1 }
 0x17f   : > { %2438 = vmatprep.subr.bf16.mxu1 %v2624_v1 }
 0x185   : > { %2429 = vmatmul.mubr.msk.bf16.vlgmr.msra.gmra.mrb[16].mxu1 %vm775_vm2, %v1107_v22 }
 0x186   : > { %2442 = vmatprep.mubr.msk.bf16.mxu1 %vm2625_vm0, %v2624_v1 }
 0x240   : > { %v816_v23 = vpop.f32.mrb[4].mxu1 }
 0x241   : > { %v822_v24 = vmul.f32 0.35355338, %v816_v23  ;;  %v2394_v25 = vpop.f32.mrb[5].mxu1 }
 0x242   : > { %v819_v26 = vpop.f32.mrb[6].mxu1 }
 0x243   : > { %v2395_v27 = vpop.f32.mrb[7].mxu1  ;;  %v823_v28 = vsel %vm775_vm2, %v822_v24, -inf }
 0x244   : > { %824 = vmax.xlane.f32.xlu1 %v823_v28 }
 0x248   : > { %v928_v29 = vpop.f32.mrb[8].mxu1 }
 0x249   : > { %v934_v30 = vmul.f32 0.35355338, %v928_v29  ;;  %v2406_v31 = vpop.f32.mrb[9].mxu1 }
 0x24a   : > { %v931_v32 = vpop.f32.mrb[10].mxu1 }
 0x24b   : > { %v2407_v33 = vpop.f32.mrb[11].mxu1  ;;  %v935_v34 = vsel %vm775_vm2, %v934_v30, -inf }
 0x24c   : > { %936 = vmax.xlane.f32.xlu0 %v935_v34 }
 0x250   : > { %v1039_v35 = vpop.f32.mrb[12].mxu1 }
 0x251   : > { %v1045_v36 = vmul.f32 0.35355338, %v1039_v35  ;;  %v2418_v37 = vpop.f32.mrb[13].mxu1 }
 0x252   : > { %v1042_v38 = vpop.f32.mrb[14].mxu1 }
 0x253   : > { %v2419_v39 = vpop.f32.mrb[15].mxu1  ;;  %v1046_v40 = vsel %vm775_vm2, %v1045_v36, -inf }
 0x254   : > { %1047 = vmax.xlane.f32.xlu0 %v1046_v40 }
 0x255   : > { %945 = vrot.lane.b32.xlu1 %v2795_v10, %s2633_s25  ;;  %s3095_s25 = smov 8  }
 0x258   : > { %v1150_v41 = vpop.f32.mrb[16].mxu1 }
 0x259   : > { %v2430_v42 = vpop.f32.mrb[17].mxu1  ;;  %v1156_v45 = vmul.f32 0.35355338, %v1150_v41 }
 0x25a   : > { %v1153_v43 = vpop.f32.mrb[18].mxu1 }
 0x25b   : > { %v2431_v44 = vpop.f32.mrb[19].mxu1  ;;  %v1157_v46 = vsel %vm775_vm2, %v1156_v45, -inf }
 0x26a   : > { %833 = vrot.lane.b32.xlu0 %v2795_v10, %s2634_s26  ;;  %s3116_s26 = sld [smem:[#allocation8_spill]] }
 0x26e   : > { %1167 = vrot.lane.b32.xlu0 %v2795_v10, %s2635_s2  ;;  %s3114_s2 = sld [smem:[#allocation7_spill]] }
 0x279   : > { %1158 = vmax.xlane.f32.xlu1 %v1157_v46 }
 0x28a   : > { %1056 = vrot.lane.b32.xlu1 %v2795_v10, %s2636_s27  ;;  %s3113_s27 = sld [smem:[#allocation6_spill]] }
 0x290   : > { %v2564_v29 = vld [vmem:[%s3113_s27] sm:$0xff]   ;;  %v2565_v31 = vld [vmem:[%s3113_s27 + $0x8] sm:$0xff]  }
 0x291   : > { %2439 = vmatpush3.bf16.msra.mxu1 %v2564_v29 }
 0x292   : > { %2440 = vmatprep.subr.bf16.mxu1 %v2624_v1 }
 0x295   : > { %2441 = vmatpush3.bf16.msra.mxu1 %v2565_v31 }
 0x296   : > { %2454 = vmatprep.subr.bf16.mxu1 %v2624_v1 }
 0x2d1   : > { %v825_v47 = vpop.xlane.xlu1 %824 }
 0x2d2   : > { %v826_v48 = vsub.f32 %v822_v24, %v825_v47 }
 0x2d4   : > { %v827_v49 = vmul.f32 1.442695, %v826_v48 }
 0x2d5   : > { %v946_v59 = vpop.permute.xlu1 %945 }
 0x2d6   : > { %2578 = vpow2.f32 %v827_v49  ;;  %v951_v63 = vsel %vm838_vm3, %v946_v59, 0 }
 0x2d9   : > { %v937_v50 = vpop.xlane.xlu0 %936 }
 0x2da   : > { %v938_v51 = vsub.f32 %v934_v30, %v937_v50 }
 0x2dc   : > { %v939_v52 = vmul.f32 1.442695, %v938_v51 }
 0x2de   : > { %2580 = vpow2.f32 %v939_v52 }
 0x2e0   : > { %v2579_v56 = vpop.eup %2578 }
 0x2e1   : > { %v1048_v53 = vpop.xlane.xlu0 %1047  ;;  %v832_v61 = vpack.c.bf16 %v2579_v56, %v2579_v56  ;;  %v829_v0 = vsel %vm775_vm2, %v2579_v56, 0.0 }
 0x2e2   : > { %v1049_v54 = vsub.f32 %v1045_v36, %v1048_v53 }
 0x2e4   : > { %v1050_v55 = vmul.f32 1.442695, %v1049_v54  ;;  %v2284_v54 = vld [vmem:[%s3114_s2] ss:$0 sm:$0xff] }
 0x2e5   : > { %v834_v57 = vpop.permute.xlu0 %833 }
 0x2e6   : > { %2582 = vpow2.f32 %v1050_v55  ;;  %v840_v58 = vsel %vm838_vm3, %v834_v57, 0 }
 0x2e7   : > { %2397 = vmatpush3.bf16.msra.mxu0 %v840_v58 }
 0x2e8   : > { %v2581_v60 = vpop.eup %2580  ;;  %2408 = vmatprep.subr.bf16.mxu0 %v2624_v1 }
 0x2e9   : > { %v941_v62 = vsel %vm775_vm2, %v2581_v60, 0.0  ;;  %v944_v4 = vpack.c.bf16 %v2581_v60, %v2581_v60  ;;  %v1168_v11 = vpop.permute.xlu0 %1167 }
 0x2ea   : > { %2399 = vmatmul.mubr.msk.bf16.vlgmr.msra.gmra.mrb[0].mxu0 %vm775_vm2, %v832_v61  ;;  %942 = vadd.xlane.f32.xlu1 %v941_v62  ;;  %v1173_v13 = vsel %vm838_vm3, %v1168_v11, 0  ;;  %v2566_v62 = vld [vmem:[%s3078_s10] sm:$0xff]  }
 0x2eb   : > { %2409 = vmatpush3.bf16.msra.mxu0 %v951_v63  ;;  %2410 = vmatprep.mubr.msk.bf16.mxu0 %vm2625_vm0, %v2624_v1 }
 0x2ec   : > { %2420 = vmatprep.subr.bf16.mxu0 %v2624_v1 }
 0x2ee   : > { %830 = vadd.xlane.f32.xlu1 %v829_v0 }
 0x2f0   : > { %v2583_v2 = vpop.eup %2582 }
 0x2f1   : > { %v1052_v5 = vsel %vm775_vm2, %v2583_v2, 0.0  ;;  %v1055_v12 = vpack.c.bf16 %v2583_v2, %v2583_v2 }
 0x2f2   : > { %1053 = vadd.xlane.f32.xlu0 %v1052_v5  ;;  %2411 = vmatmul.mubr.msk.bf16.vlgmr.msra.gmra.mrb[4].mxu0 %vm775_vm2, %v944_v4 }
 0x2f3   : > { %2422 = vmatprep.mubr.msk.bf16.mxu0 %vm2625_vm0, %v2624_v1 }
 0x306   : > { %v1159_v6 = vpop.xlane.xlu1 %1158 }
 0x307   : > { %v1160_v7 = vsub.f32 %v1156_v45, %v1159_v6 }
 0x309   : > { %v1161_v8 = vmul.f32 1.442695, %v1160_v7 }
 0x30a   : > { %v1057_v9 = vpop.permute.xlu1 %1056 }
 0x30b   : > { %2584 = vpow2.f32 %v1161_v8  ;;  %v1062_v10 = vsel %vm838_vm3, %v1057_v9, 0  ;;  %v2568_v9 = vld [vmem:[%s3076_s8] sm:$0xff]  }
 0x30c   : > { %2421 = vmatpush3.bf16.msra.mxu0 %v1062_v10  ;;  %v2569_v10 = vld [vmem:[%s3076_s8 + $0x8] sm:$0xff]  }
 0x30d   : > { %2432 = vmatprep.subr.bf16.mxu0 %v2624_v1 }
 0x30f   : > { %2423 = vmatmul.mubr.msk.bf16.vlgmr.msra.gmra.mrb[8].mxu0 %vm775_vm2, %v1055_v12 }
 0x310   : > { %2433 = vmatpush3.bf16.msra.mxu0 %v1173_v13  ;;  %2434 = vmatprep.mubr.msk.bf16.mxu0 %vm2625_vm0, %v2624_v1 }
 0x311   : > { %2446 = vmatprep.subr.bf16.mxu0 %v2624_v1 }
 0x315   : > { %v2585_v14 = vpop.eup %2584 }
 0x316   : > { %v1163_v15 = vsel %vm775_vm2, %v2585_v14, 0.0  ;;  %v1166_v16 = vpack.c.bf16 %v2585_v14, %v2585_v14 }
 0x317   : > { %1164 = vadd.xlane.f32.xlu0 %v1163_v15  ;;  %v2288_v15 = vld [vmem:[%s3116_s26] ss:$0 sm:$0xff]  ;;  %s3121_s26 = smov 88  }
 0x318   : > { %2435 = vmatmul.mubr.msk.bf16.vlgmr.msra.gmra.mrb[12].mxu0 %vm775_vm2, %v1166_v16 }
 0x319   : > { %2450 = vmatprep.mubr.msk.bf16.mxu0 %vm2625_vm0, %v2624_v1  ;;  %2447 = vmatpush3.bf16.msra.mxu0 %v2568_v9 }
 0x31a   : > { %2448 = vmatprep.subr.bf16.mxu0 %v2624_v1 }
 0x31d   : > { %2449 = vmatpush3.bf16.msra.mxu0 %v2569_v10 }
 0x31e   : > { %2462 = vmatprep.subr.bf16.mxu0 %v2624_v1 }
 0x377   : > { %v943_v17 = vpop.xlane.xlu1 %942 }
 0x378   : > { %2586 = vrcp.f32 %v943_v17  ;;  %v2289_v17 = vld [vmem:[%s3075_s7] ss:$0 sm:$0xff] }
 0x37b   : > { %v831_v44 = vpop.xlane.xlu1 %830 }
 0x37f   : > { %v1054_v28 = vpop.xlane.xlu0 %1053 }
 0x380   : > { %2588 = vrcp.f32 %v1054_v28 }
 0x382   : > { %v2587_v22 = vpop.eup %2586 }
 0x38a   : > { %v2589_v32 = vpop.eup %2588 }
 0x3a4   : > { %v1165_v30 = vpop.xlane.xlu0 %1164 }
 0x3a5   : > { %2590 = vrcp.f32 %v1165_v30  ;;  %v2290_v30 = vld [vmem:[%s3077_s9] ss:$0 sm:$0xff] }
 0x3a6   : > { %2592 = vrcp.f32 %v831_v44 }
 0x3af   : > { %v2591_v38 = vpop.eup %2590 }
 0x3b0   : > { %v2593_v45 = vpop.eup %2592 }
 0x3bd   : > { %v876_v18 = vpop.f32.mrb[0].mxu0 }
 0x3be   : > { %v2400_v19 = vpop.f32.mrb[1].mxu0  ;;  %v883_v48 = vmul.f32 %v2593_v45, %v876_v18 }
 0x3bf   : > { %v879_v20 = vpop.f32.mrb[2].mxu0 }
 0x3c0   : > { %v2401_v21 = vpop.f32.mrb[3].mxu0 }
 0x3c1   : > { %v2294_v21 = vld [vmem:[%s3079_s11] ss:$0 sm:$0xff] }
 0x3c5   : > { %v987_v23 = vpop.f32.mrb[4].mxu0 }
 0x3c6   : > { %v994_v24 = vmul.f32 %v2587_v22, %v987_v23  ;;  %v2412_v25 = vpop.f32.mrb[5].mxu0 }
 0x3c7   : > { %v990_v26 = vpop.f32.mrb[6].mxu0 }
 0x3c8   : > { %v2413_v27 = vpop.f32.mrb[7].mxu0  ;;  %1218 = vrot.lane.b32.xlu0 %v994_v24, %s3095_s25  ;;  %s3097_s25 = smov 16  }
 0x3e2   : > { %v1098_v33 = vpop.f32.mrb[8].mxu0 }
 0x3e3   : > { %v1105_v34 = vmul.f32 %v2589_v32, %v1098_v33  ;;  %v2424_v35 = vpop.f32.mrb[9].mxu0 }
 0x3e4   : > { %v1101_v36 = vpop.f32.mrb[10].mxu0 }
 0x3e5   : > { %1222 = vrot.lane.b32.xlu1 %v1105_v34, %s3097_s25  ;;  %v2425_v37 = vpop.f32.mrb[11].mxu0  ;;  %s694_s25 = scalar_lea.vmem %s3115_s30, %s2326_s23  ;;  %s3118_s23 = smov 96  }
 0x3e6   : > { %v701_v6 = vld [vmem:[%s694_s25] sm:$0xff]  ;;  %v702_v7 = vld [vmem:[%s694_s25 + $0x8] sm:$0xff]  ;;  %s3122_s25 = smov 8   ;;  %s3123_s30 = smov 16  }
 0x3e7   : > { %v1399_v8 = vpack.c.bf16 %v702_v7, %v701_v6 }
 0x3eb   : > { %v1209_v39 = vpop.f32.mrb[12].mxu0 }
 0x3ec   : > { %v1216_v40 = vmul.f32 %v2591_v38, %v1209_v39  ;;  %v2436_v41 = vpop.f32.mrb[13].mxu0 }
 0x3ed   : > { %v1212_v42 = vpop.f32.mrb[14].mxu0 }
 0x3ee   : > { %1226 = vrot.lane.b32.xlu1 %v1216_v40, %s3096_s1  ;;  %v2437_v43 = vpop.f32.mrb[15].mxu0  ;;  %s698_s1 = scalar_lea.vmem %s3090_s22, %s3125_s6 }
 0x43a   : > { %v1219_v46 = vpop.permute.xlu0 %1218 }
 0x43b   : > { %v1229_v49 = vsel %vm775_vm2, %v883_v48, %v1219_v46 }
 0x457   : > { %v1223_v47 = vpop.permute.xlu1 %1222 }
 0x458   : > { %v1231_v50 = vsel %vm1230_vm4, %v1229_v49, %v1223_v47 }
 0x460   : > { %v1227_v51 = vpop.permute.xlu1 %1226 }
 0x461   : > { %v1233_v52 = vsel %vm1232_vm5, %v1231_v50, %v1227_v51 }
 0x462   : > { %v1234_v53 = vpack.c.bf16 %v1233_v52, %v1233_v52 }
 0x464   : > { %2443 = vmatmul.mubr.msk.bf16.vlgmr.msra.gmra.mrb[20].mxu1 %vm727_vm1, %v1234_v53 }
 0x465   : > { %2458 = vmatprep.mubr.msk.bf16.mxu1 %vm2625_vm0, %v2624_v1  ;;  %2455 = vmatpush3.bf16.msra.mxu1 %v2566_v62 }
 0x466   : > { %2456 = vmatprep.subr.bf16.mxu1 %v2624_v1 }
 0x537   : > { %v1295_v55 = vpop.f32.mrb[20].mxu1 }
 0x538   : > { %v1296_v56 = vadd.f32 %v2284_v54, %v1295_v55  ;;  %v2444_v57 = vpop.f32.mrb[21].mxu1 }
 0x539   : > { %v1298_v58 = vpop.f32.mrb[22].mxu1 }
 0x53a   : > { %v2445_v59 = vpop.f32.mrb[23].mxu1  ;;  %v1301_v60 = vadd.f32 %v1296_v56, %v2785_v3  ;;  %v2567_v3 = vld [vmem:[%s3078_s10 + $0x8] sm:$0xff]  }
 0x53b   : > { %2457 = vmatpush3.bf16.msra.mxu1 %v2567_v3 }
 0x53c   : > { %v1302_v61 = vsel %vm727_vm1, %v1301_v60, 0.0  ;;  %2468 = vmatprep.subr.bf16.mxu1 %v2624_v1 }
 0x53d   : > { %1303 = vadd.xlane.f32.xlu0 %v1302_v61 }
 0x53e   : > { %2459 = vmatmul.mubr.msk.bf16.vlgmr.msra.gmra.mrb[24].mxu1 %vm727_vm1, %v1399_v8 }
 0x53f   : > { %2470 = vmatprep.mubr.msk.bf16.mxu1 %vm2625_vm0, %v2624_v1 }
 0x5ca   : > { %v1304_v63 = vpop.xlane.xlu0 %1303 }
 0x5cb   : > { %v1306_v0 = vmul.f32 0.03125, %v1304_v63 }
 0x5cd   : > { %v1307_v2 = vsub.f32 %v1301_v60, %v1306_v0 }
 0x5cf   : > { %v1308_v4 = vmul.f32 %v1307_v2, %v1307_v2 }
 0x5d1   : > { %v1309_v5 = vsel %vm727_vm1, %v1308_v4, 0.0 }
 0x5d2   : > { %1310 = vadd.xlane.f32.xlu1 %v1309_v5 }
 0x611   : > { %v1460_v22 = vpop.f32.mrb[24].mxu1 }
 0x612   : > { %v1461_v23 = vadd.f32 %v2294_v21, %v1460_v22  ;;  %v2460_v24 = vpop.f32.mrb[25].mxu1 }
 0x613   : > { %v1463_v25 = vpop.f32.mrb[26].mxu1 }
 0x614   : > { %v1464_v26 = vadd.f32 %v2294_v21, %v1463_v25  ;;  %v2461_v27 = vpop.f32.mrb[27].mxu1 }
 0x616   : > { %v2926_v28 = vpack.c.bf16 %v1464_v26, %v1461_v23 }
 0x618   : > { %1578 = vrot.lane.b32.xlu0 %v2926_v28, %s2626_s29  ;;  %v1473_v29 = vsel %vm775_vm2, %v2926_v28, 0 }
 0x61c   : > { %1687 = vrot.lane.b32.xlu0 %v2926_v28, %s2631_s24 }
 0x620   : > { %1796 = vrot.lane.b32.xlu0 %v2926_v28, %s3117_s0 }
 0x65f   : > { %v1311_v11 = vpop.xlane.xlu1 %1310 }
 0x660   : > { %v1312_v12 = vmul.f32 0.03125, %v1311_v11 }
 0x662   : > { %v1313_v13 = vadd.f32 1e-05, %v1312_v12 }
 0x664   : > { %2594 = vrsqrt.f32 %v1313_v13 }
 0x66e   : > { %v2595_v14 = vpop.eup %2594 }
 0x66f   : > { %v1315_v16 = vmul.f32 %v2595_v14, %v1307_v2 }
 0x671   : > { %v1323_v18 = vmul.f32 %v2288_v15, %v1315_v16 }
 0x673   : > { %v2916_v19 = vadd.f32 %v2289_v17, %v1323_v18 }
 0x675   : > { %v1332_v20 = vpack.c.bf16 %v2916_v19, %v2916_v19 }
 0x677   : > { %2451 = vmatmul.mubr.msk.bf16.vlgmr.msra.gmra.mrb[16].mxu0 %vm727_vm1, %v1332_v20 }
 0x678   : > { %2464 = vmatprep.mubr.msk.bf16.mxu0 %vm2625_vm0, %v2624_v1  ;;  %2463 = vmatpush3.bf16.xpose.msra.mxu0 %v1473_v29 }
 0x679   : > { %2474 = vmatprep.subr.bf16.mxu0 %v2624_v1 }
 0x68a   : > { %v1579_v35 = vpop.permute.xlu0 %1578 }
 0x68b   : > { %v1584_v38 = vsel %vm775_vm2, %v1579_v35, 0 }
 0x68e   : > { %v1688_v39 = vpop.permute.xlu0 %1687 }
 0x68f   : > { %v1693_v41 = vsel %vm775_vm2, %v1688_v39, 0 }
 0x692   : > { %v1797_v43 = vpop.permute.xlu0 %1796 }
 0x693   : > { %v1802_v45 = vsel %vm775_vm2, %v1797_v43, 0 }
 0x74a   : > { %v1393_v31 = vpop.f32.mrb[16].mxu0 }
 0x74b   : > { %v1394_v32 = vadd.f32 %v2290_v30, %v1393_v31  ;;  %v2452_v33 = vpop.f32.mrb[17].mxu0 }
 0x74c   : > { %v1396_v34 = vpop.f32.mrb[18].mxu0 }
 0x74d   : > { %v1467_v36 = vpack.c.bf16 %v1394_v32, %v1394_v32  ;;  %v2453_v37 = vpop.f32.mrb[19].mxu0 }
 0x74f   : > { %1576 = vrot.lane.b32.xlu1 %v1467_v36, %s2626_s29  ;;  %2465 = vmatmul.mubr.msk.bf16.vlgmr.msra.gmra.mrb[20].mxu0 %vm775_vm2, %v1467_v36  ;;  %s3119_s29 = smov 80  }
 0x750   : > { %2475 = vmatpush3.bf16.xpose.msra.mxu0 %v1584_v38  ;;  %2476 = vmatprep.mubr.msk.bf16.mxu0 %vm2625_vm0, %v2624_v1 }
 0x751   : > { %2486 = vmatprep.subr.bf16.mxu0 %v2624_v1 }
 0x753   : > { %1685 = vrot.lane.b32.xlu1 %v1467_v36, %s2631_s24  ;;  %s3120_s24 = smov 72  }
 0x757   : > { %1794 = vrot.lane.b32.xlu1 %v1467_v36, %s3117_s0 }
 0x75b   : > { %1527 = vrot.lane.b32.xlu1 %v2926_v28, %s3118_s23 }
 0x7c1   : > { %v1577_v40 = vpop.permute.xlu1 %1576 }
 0x7c2   : > { %2477 = vmatmul.mubr.msk.bf16.vlgmr.msra.gmra.mrb[24].mxu0 %vm775_vm2, %v1577_v40 }
 0x7c3   : > { %2487 = vmatpush3.bf16.xpose.msra.mxu0 %v1693_v41  ;;  %2488 = vmatprep.mubr.msk.bf16.mxu0 %vm2625_vm0, %v2624_v1 }
 0x7c4   : > { %2498 = vmatprep.subr.bf16.mxu0 %v2624_v1 }
 0x7c5   : > { %v1686_v42 = vpop.permute.xlu1 %1685 }
 0x7c9   : > { %v1795_v44 = vpop.permute.xlu1 %1794 }
 0x7ca   : > { %2489 = vmatmul.mubr.msk.bf16.vlgmr.msra.gmra.mrb[28].mxu0 %vm775_vm2, %v1686_v42  ;;  %v2570_v42 = vld [vmem:[%s3080_s12] sm:$0xff]  }
 0x7cb   : > { %2499 = vmatpush3.bf16.xpose.msra.mxu0 %v1802_v45  ;;  %2500 = vmatprep.mubr.msk.bf16.mxu0 %vm2625_vm0, %v2624_v1 }
 0x7cc   : > { %2510 = vmatprep.subr.bf16.mxu0 %v2624_v1 }
 0x7cd   : > { %v1528_v46 = vpop.permute.xlu1 %1527 }
 0x7ce   : > { %2469 = vmatpush3.bf16.msra.mxu1 %v1528_v46 }
 0x7cf   : > { %2480 = vmatprep.subr.bf16.mxu1 %v2624_v1 }
 0x7d2   : > { %2501 = vmatmul.mubr.msk.bf16.vlgmr.msra.gmra.mrb[32].mxu0 %vm775_vm2, %v1795_v44 }
 0x7d3   : > { %2514 = vmatprep.mubr.msk.bf16.mxu0 %vm2625_vm0, %v2624_v1  ;;  %2511 = vmatpush3.bf16.msra.mxu0 %v2570_v42 }
 0x7d4   : > { %2512 = vmatprep.subr.bf16.mxu0 %v2624_v1 }
 0x822   : > { %v1509_v47 = vpop.f32.mrb[20].mxu0 }
 0x823   : > { %v1515_v48 = vmul.f32 0.35355338, %v1509_v47  ;;  %v2466_v49 = vpop.f32.mrb[21].mxu0 }
 0x824   : > { %v1512_v50 = vpop.f32.mrb[22].mxu0 }
 0x825   : > { %v2467_v51 = vpop.f32.mrb[23].mxu0  ;;  %v1516_v52 = vsel %vm1230_vm4, %v1515_v48, -inf  ;;  %v2571_v50 = vld [vmem:[%s3080_s12 + $0x8] sm:$0xff]  }
 0x826   : > { %1517 = vmax.xlane.f32.xlu0 %v1516_v52  ;;  %2513 = vmatpush3.bf16.msra.mxu0 %v2571_v50 }
 0x827   : > { %2526 = vmatprep.subr.bf16.mxu0 %v2624_v1 }
 0x895   : > { %v1620_v53 = vpop.f32.mrb[24].mxu0 }
 0x896   : > { %v1626_v54 = vmul.f32 0.35355338, %v1620_v53  ;;  %v2478_v55 = vpop.f32.mrb[25].mxu0 }
 0x897   : > { %v1623_v56 = vpop.f32.mrb[26].mxu0 }
 0x898   : > { %v2479_v57 = vpop.f32.mrb[27].mxu0  ;;  %v1627_v58 = vsel %vm1230_vm4, %v1626_v54, -inf }
 0x899   : > { %1628 = vmax.xlane.f32.xlu1 %v1627_v58 }
 0x89d   : > { %v1729_v59 = vpop.f32.mrb[28].mxu0 }
 0x89e   : > { %v1735_v60 = vmul.f32 0.35355338, %v1729_v59  ;;  %v2490_v61 = vpop.f32.mrb[29].mxu0 }
 0x89f   : > { %v1732_v62 = vpop.f32.mrb[30].mxu0 }
 0x8a0   : > { %v2491_v63 = vpop.f32.mrb[31].mxu0  ;;  %v1736_v0 = vsel %vm1230_vm4, %v1735_v60, -inf }
 0x8a1   : > { %1737 = vmax.xlane.f32.xlu0 %v1736_v0 }
 0x8a5   : > { %v1838_v2 = vpop.f32.mrb[32].mxu0 }
 0x8a6   : > { %v1844_v4 = vmul.f32 0.35355338, %v1838_v2  ;;  %v2502_v5 = vpop.f32.mrb[33].mxu0 }
 0x8a7   : > { %v1841_v3 = vpop.f32.mrb[34].mxu0 }
 0x8a8   : > { %v2503_v6 = vpop.f32.mrb[35].mxu0  ;;  %v1845_v7 = vsel %vm1230_vm4, %v1844_v4, -inf }
 0x8a9   : > { %1846 = vmax.xlane.f32.xlu0 %v1845_v7 }
 0x8aa   : > { %1746 = vrot.lane.b32.xlu1 %v2926_v28, %s3119_s29 }
 0x8ae   : > { %1855 = vrot.lane.b32.xlu1 %v2926_v28, %s3120_s24 }
 0x8b3   : > { %v1518_v8 = vpop.xlane.xlu0 %1517 }
 0x8b4   : > { %v1519_v9 = vsub.f32 %v1515_v48, %v1518_v8 }
 0x8b6   : > { %v1520_v10 = vmul.f32 1.442695, %v1519_v9 }
 0x8b8   : > { %2596 = vpow2.f32 %v1520_v10  ;;  %v2306_v10 = vld [vmem:[%s3081_s13] ss:$0 sm:$0xff] }
 0x8bf   : > { %1637 = vrot.lane.b32.xlu0 %v2926_v28, %s3121_s26 }
 0x8c2   : > { %v2597_v11 = vpop.eup %2596 }
 0x8c3   : > { %v1525_v12 = vpack.c.bf16 %v2597_v11, %v2597_v11  ;;  %v1522_v34 = vsel %vm1230_vm4, %v2597_v11, 0.0 }
 0x8c5   : > { %2471 = vmatmul.mubr.msk.bf16.vlgmr.msra.gmra.mrb[28].mxu1 %vm1230_vm4, %v1525_v12 }
 0x8c6   : > { %2482 = vmatprep.mubr.msk.bf16.mxu1 %vm2625_vm0, %v2624_v1 }
 0x926   : > { %v1629_v13 = vpop.xlane.xlu1 %1628 }
 0x927   : > { %v1630_v14 = vsub.f32 %v1626_v54, %v1629_v13 }
 0x929   : > { %v1631_v15 = vmul.f32 1.442695, %v1630_v14 }
 0x92a   : > { %v1747_v28 = vpop.permute.xlu1 %1746 }
 0x92b   : > { %2598 = vpow2.f32 %v1631_v15 }
 0x92e   : > { %v1738_v16 = vpop.xlane.xlu0 %1737  ;;  %v1856_v32 = vpop.permute.xlu1 %1855 }
 0x92f   : > { %v1739_v17 = vsub.f32 %v1735_v60, %v1738_v16 }
 0x931   : > { %v1740_v18 = vmul.f32 1.442695, %v1739_v17 }
 0x933   : > { %2600 = vpow2.f32 %v1740_v18 }
 0x935   : > { %v2599_v20 = vpop.eup %2598 }
 0x936   : > { %v1847_v21 = vpop.xlane.xlu0 %1846  ;;  %v1633_v22 = vsel %vm1230_vm4, %v2599_v20, 0.0  ;;  %v1636_v26 = vpack.c.bf16 %v2599_v20, %v2599_v20 }
 0x937   : > { %v1848_v23 = vsub.f32 %v1844_v4, %v1847_v21  ;;  %1634 = vadd.xlane.f32.xlu0 %v1633_v22 }
 0x939   : > { %v1849_v24 = vmul.f32 1.442695, %v1848_v23 }
 0x93a   : > { %v1638_v25 = vpop.permute.xlu0 %1637 }
 0x93b   : > { %2602 = vpow2.f32 %v1849_v24  ;;  %2481 = vmatpush3.bf16.msra.mxu1 %v1638_v25  ;;  %v2572_v24 = vld [vmem:[%s3084_s16] sm:$0xff]   ;;  %v2573_v25 = vld [vmem:[%s3084_s16 + $0x8] sm:$0xff]  }
 0x93c   : > { %2492 = vmatprep.subr.bf16.mxu1 %v2624_v1 }
 0x93d   : > { %v2601_v27 = vpop.eup %2600 }
 0x93e   : > { %2483 = vmatmul.mubr.msk.bf16.vlgmr.msra.gmra.mrb[32].mxu1 %vm1230_vm4, %v1636_v26  ;;  %v1742_v29 = vsel %vm1230_vm4, %v2601_v27, 0.0  ;;  %v1745_v30 = vpack.c.bf16 %v2601_v27, %v2601_v27  ;;  %v2575_v26 = vld [vmem:[%s3086_s18 + $0x8] sm:$0xff]  }
 0x93f   : > { %1743 = vadd.xlane.f32.xlu1 %v1742_v29  ;;  %2493 = vmatpush3.bf16.msra.mxu1 %v1747_v28 }
 0x940   : > { %2494 = vmatprep.mubr.msk.bf16.mxu1 %vm2625_vm0, %v2624_v1  ;;  %2504 = vmatprep.subr.bf16.mxu1 %v2624_v1 }
 0x945   : > { %v2603_v31 = vpop.eup %2602 }
 0x946   : > { %2495 = vmatmul.mubr.msk.bf16.vlgmr.msra.gmra.mrb[36].mxu1 %vm1230_vm4, %v1745_v30  ;;  %v1851_v33 = vsel %vm1230_vm4, %v2603_v31, 0.0  ;;  %v1854_v35 = vpack.c.bf16 %v2603_v31, %v2603_v31  ;;  %v2310_v31 = vld [vmem:[%s3082_s14] ss:$0 sm:$0xff] }
 0x947   : > { %2505 = vmatpush3.bf16.msra.mxu1 %v1856_v32  ;;  %1852 = vadd.xlane.f32.xlu0 %v1851_v33  ;;  %v2311_v33 = vld [vmem:[%s3083_s15] ss:$0 sm:$0xff] }
 0x948   : > { %2506 = vmatprep.mubr.msk.bf16.mxu1 %vm2625_vm0, %v2624_v1  ;;  %2518 = vmatprep.subr.bf16.mxu1 %v2624_v1 }
 0x94b   : > { %1523 = vadd.xlane.f32.xlu0 %v1522_v34 }
 0x94e   : > { %2507 = vmatmul.mubr.msk.bf16.vlgmr.msra.gmra.mrb[40].mxu1 %vm1230_vm4, %v1854_v35 }
 0x94f   : > { %2522 = vmatprep.mubr.msk.bf16.mxu1 %vm2625_vm0, %v2624_v1  ;;  %2519 = vmatpush3.bf16.msra.mxu1 %v2572_v24 }
 0x950   : > { %2520 = vmatprep.subr.bf16.mxu1 %v2624_v1 }
 0x953   : > { %2521 = vmatpush3.bf16.msra.mxu1 %v2573_v25 }
 0x998   : > { %v1567_v36 = vpop.f32.mrb[28].mxu1 }
 0x999   : > { %v2472_v37 = vpop.f32.mrb[29].mxu1 }
 0x99a   : > { %v1570_v38 = vpop.f32.mrb[30].mxu1  ;;  %v2576_v37 = vld [vmem:[%s3086_s18 + $0x10] sm:$0xff]  }
 0x99b   : > { %v2473_v39 = vpop.f32.mrb[31].mxu1  ;;  %v2577_v38 = vld [vmem:[%s3086_s18 + $0x18] sm:$0xff]  }
 0x99c   : > { %v2312_v39 = vld [vmem:[%s3085_s17] ss:$0 sm:$0xff] }
 0x9c4   : > { %v1635_v40 = vpop.xlane.xlu0 %1634 }
 0x9c5   : > { %2604 = vrcp.f32 %v1635_v40 }
 0x9cc   : > { %v1744_v41 = vpop.xlane.xlu1 %1743 }
 0x9cd   : > { %2606 = vrcp.f32 %v1744_v41 }
 0x9cf   : > { %v2605_v43 = vpop.eup %2604 }
 0x9d4   : > { %v1853_v48 = vpop.xlane.xlu0 %1852 }
 0x9d5   : > { %2608 = vrcp.f32 %v1853_v48 }
 0x9d7   : > { %v2607_v51 = vpop.eup %2606 }
 0x9d8   : > { %v1524_v63 = vpop.xlane.xlu0 %1523 }
 0x9d9   : > { %2610 = vrcp.f32 %v1524_v63  ;;  %v2322_v63 = vld [vmem:[%s3088_s20] ss:$0 sm:$0xff] }
 0x9df   : > { %v2609_v57 = vpop.eup %2608 }
 0x9e3   : > { %v2611_v0 = vpop.eup %2610 }
 0x9e4   : > { %v1574_v4 = vmul.f32 %v2611_v0, %v1567_v36 }
 0xa11   : > { %v1677_v44 = vpop.f32.mrb[32].mxu1 }
 0xa12   : > { %v1684_v45 = vmul.f32 %v2605_v43, %v1677_v44  ;;  %v2484_v46 = vpop.f32.mrb[33].mxu1 }
 0xa13   : > { %v1680_v47 = vpop.f32.mrb[34].mxu1 }
 0xa14   : > { %1904 = vrot.lane.b32.xlu1 %v1684_v45, %s3122_s25  ;;  %v2485_v49 = vpop.f32.mrb[35].mxu1 }
 0xa19   : > { %v1786_v52 = vpop.f32.mrb[36].mxu1 }
 0xa1a   : > { %v1793_v53 = vmul.f32 %v2607_v51, %v1786_v52  ;;  %v2496_v54 = vpop.f32.mrb[37].mxu1 }
 0xa1b   : > { %v1789_v55 = vpop.f32.mrb[38].mxu1 }
 0xa1c   : > { %1908 = vrot.lane.b32.xlu0 %v1793_v53, %s3123_s30  ;;  %v2497_v56 = vpop.f32.mrb[39].mxu1 }
 0xa21   : > { %v1895_v58 = vpop.f32.mrb[40].mxu1 }
 0xa22   : > { %v1902_v59 = vmul.f32 %v2609_v57, %v1895_v58  ;;  %v2508_v60 = vpop.f32.mrb[41].mxu1 }
 0xa23   : > { %v1898_v61 = vpop.f32.mrb[42].mxu1 }
 0xa24   : > { %1912 = vrot.lane.b32.xlu1 %v1902_v59, %s3124_s5  ;;  %v2509_v62 = vpop.f32.mrb[43].mxu1 }
 0xa86   : > { %v1905_v2 = vpop.permute.xlu1 %1904 }
 0xa87   : > { %v1915_v3 = vsel %vm775_vm2, %v1574_v4, %v1905_v2  ;;  %v2323_v2 = vld [vmem:[%s3089_s21] ss:$0 sm:$0xff] }
 0xa8e   : > { %v1909_v5 = vpop.permute.xlu0 %1908 }
 0xa8f   : > { %v1916_v6 = vsel %vm1230_vm4, %v1915_v3, %v1909_v5 }
 0xa96   : > { %v1913_v7 = vpop.permute.xlu1 %1912 }
 0xa97   : > { %v1917_v8 = vsel %vm1232_vm5, %v1916_v6, %v1913_v7 }
 0xa98   : > { %v1918_v9 = vpack.c.bf16 %v1917_v8, %v1917_v8 }
 0xa9a   : > { %2515 = vmatmul.mubr.msk.bf16.vlgmr.msra.gmra.mrb[36].mxu0 %vm727_vm1, %v1918_v9 }
 0xa9b   : > { %2534 = vmatprep.mubr.msk.bf16.mxu0 %vm2625_vm0, %v2624_v1 }
 0xb6d   : > { %v1979_v11 = vpop.f32.mrb[36].mxu0 }
 0xb6e   : > { %v1980_v12 = vadd.f32 %v2306_v10, %v1979_v11  ;;  %v2516_v13 = vpop.f32.mrb[37].mxu0 }
 0xb6f   : > { %v1982_v14 = vpop.f32.mrb[38].mxu0 }
 0xb70   : > { %v2517_v15 = vpop.f32.mrb[39].mxu0  ;;  %v1985_v16 = vadd.f32 %v1980_v12, %v2916_v19  ;;  %v2574_v19 = vld [vmem:[%s3086_s18] sm:$0xff]  }
 0xb71   : > { %2527 = vmatpush3.bf16.msra.mxu0 %v2574_v19 }
 0xb72   : > { %v1986_v17 = vsel %vm727_vm1, %v1985_v16, 0.0  ;;  %2528 = vmatprep.subr.bf16.mxu0 %v2624_v1 }
 0xb73   : > { %1987 = vadd.xlane.f32.xlu1 %v1986_v17 }
 0xb75   : > { %2529 = vmatpush3.bf16.msra.mxu0 %v2575_v26 }
 0xb76   : > { %2530 = vmatprep.subr.bf16.mxu0 %v2624_v1 }
 0xb79   : > { %2531 = vmatpush3.bf16.msra.mxu0 %v2576_v37 }
 0xb7a   : > { %2532 = vmatprep.subr.bf16.mxu0 %v2624_v1  ;;  %v2316_v1 = vld [vmem:[%s3087_s19] ss:$0 sm:$0xff] }
 0xb7d   : > { %2533 = vmatpush3.bf16.msra.mxu0 %v2577_v38 }
 0xc00   : > { %v1988_v18 = vpop.xlane.xlu1 %1987 }
 0xc01   : > { %v1989_v20 = vmul.f32 0.03125, %v1988_v18 }
 0xc03   : > { %v1990_v21 = vsub.f32 %v1985_v16, %v1989_v20 }
 0xc05   : > { %v1991_v22 = vmul.f32 %v1990_v21, %v1990_v21 }
 0xc07   : > { %v1992_v23 = vsel %vm727_vm1, %v1991_v22, 0.0 }
 0xc08   : > { %1993 = vadd.xlane.f32.xlu0 %v1992_v23 }
 0xc95   : > { %v1994_v27 = vpop.xlane.xlu0 %1993 }
 0xc96   : > { %v1995_v28 = vmul.f32 0.03125, %v1994_v27 }
 0xc98   : > { %v1996_v29 = vadd.f32 1e-05, %v1995_v28 }
 0xc9a   : > { %2612 = vrsqrt.f32 %v1996_v29 }
 0xca4   : > { %v2613_v30 = vpop.eup %2612 }
 0xca5   : > { %v1998_v32 = vmul.f32 %v2613_v30, %v1990_v21 }
 0xca7   : > { %v2006_v34 = vmul.f32 %v2310_v31, %v1998_v32 }
 0xca9   : > { %v2014_v35 = vadd.f32 %v2311_v33, %v2006_v34 }
 0xcab   : > { %v2015_v36 = vpack.c.bf16 %v2014_v35, %v2014_v35 }
 0xcad   : > { %2523 = vmatmul.mubr.msk.bf16.vlgmr.msra.gmra.mrb[44].mxu1 %vm727_vm1, %v2015_v36 }
 0xd80   : > { %v2076_v40 = vpop.f32.mrb[44].mxu1 }
 0xd81   : > { %v2077_v41 = vadd.f32 %v2312_v39, %v2076_v40  ;;  %v2524_v42 = vpop.f32.mrb[45].mxu1 }
 0xd82   : > { %v2079_v43 = vpop.f32.mrb[46].mxu1 }
 0xd83   : > { %v2082_v44 = vmax.f32 %v2077_v41, 0.0  ;;  %v2525_v45 = vpop.f32.mrb[47].mxu1 }
 0xd85   : > { %v2083_v46 = vpack.c.bf16 %v2082_v44, %v2082_v44 }
 0xd87   : > { %2535 = vmatmul.mubr.msk.bf16.vlgmr.msra.gmra.mrb[40].mxu0 %vm2123_vm6, %v2083_v46 }
 0xe5a   : > { %v2161_v47 = vpop.f32.mrb[40].mxu0 }
 0xe5b   : > { %v2162_v48 = vadd.f32 %v2316_v1, %v2161_v47  ;;  %v2536_v49 = vpop.f32.mrb[41].mxu0 }
 0xe5c   : > { %v2164_v50 = vpop.f32.mrb[42].mxu0 }
 0xe5d   : > { %v2537_v51 = vpop.f32.mrb[43].mxu0  ;;  %v2167_v52 = vadd.f32 %v2162_v48, %v2014_v35 }
 0xe5f   : > { %v2168_v53 = vsel %vm727_vm1, %v2167_v52, 0.0 }
 0xe60   : > { %2169 = vadd.xlane.f32.xlu0 %v2168_v53 }
 0xeed   : > { %v2170_v54 = vpop.xlane.xlu0 %2169 }
 0xeee   : > { %v2171_v55 = vmul.f32 0.03125, %v2170_v54 }
 0xef0   : > { %v2172_v56 = vsub.f32 %v2167_v52, %v2171_v55 }
 0xef2   : > { %v2173_v57 = vmul.f32 %v2172_v56, %v2172_v56 }
 0xef4   : > { %v2174_v58 = vsel %vm727_vm1, %v2173_v57, 0.0 }
 0xef5   : > { %2175 = vadd.xlane.f32.xlu1 %v2174_v58 }
 0xf82   : > { %v2176_v59 = vpop.xlane.xlu1 %2175 }
 0xf83   : > { %v2177_v60 = vmul.f32 0.03125, %v2176_v59 }
 0xf85   : > { %v2178_v61 = vadd.f32 1e-05, %v2177_v60 }
 0xf87   : > { %2614 = vrsqrt.f32 %v2178_v61 }
 0xf91   : > { %v2615_v62 = vpop.eup %2614 }
 0xf92   : > { %v2180_v0 = vmul.f32 %v2615_v62, %v2172_v56 }
 0xf94   : > { %v2188_v4 = vmul.f32 %v2322_v63, %v2180_v0 }
 0xf96   : > { %v2196_v5 = vadd.f32 %v2323_v2, %v2188_v4 }
 0xf98   : > { %2197 = vst.msk [vmem:[%s698_s1] sm:$0xff] %vm727_vm1, %v2196_v5 }
 0xf99 PF: > { %s32_s3 = sadd.s32 1, %s2622_s3  }
 0xf9a   : > { %p29_p4 = scmp.ge.s32.totalorder %s32_s3, 4  }
 0xf9c   :  { %31 = sbr.rel (!%p29_p4) target bundleno = 8 (0x8), region = 141 }

// kernel: transformer_forward.11
= control target key start
LH: loop header
LB: loop body
LE: loop exit
PB: predicated region body
PF: predicated region fallthrough
CT: control target
= control target key end

     0   :  { %s3458_s0 = inlined_call_operand.vmem [shape: f32[2,8,32], index: 0, kind: input, shape index: {}]   ;;  %s3459_s1 = inlined_call_operand.vmem [shape: f32[2,16,32], index: 1, kind: input, shape index: {}]   ;;  %s3460_s2 = inlined_call_operand.vmem [shape: bf16[32,96], index: 2, kind: input, shape index: {}]   ;;  %s3461_s3 = inlined_call_operand.vmem [shape: f32[1,96], index: 3, kind: input, shape index: {}]   ;;  %s3462_s4 = inlined_call_operand.vmem [shape: bf16[32,32], index: 4, kind: input, shape index: {}]   ;;  %s3463_s5 = inlined_call_operand.vmem [shape: f32[1,32], index: 5, kind: input, shape index: {}]   ;;  %s3464_s6 = inlined_call_operand.vmem [shape: f32[1,32], index: 6, kind: input, shape index: {}]   ;;  %s3465_s7 = inlined_call_operand.vmem [shape: f32[1,32], index: 7, kind: input, shape index: {}]   ;;  %s3466_s8 = inlined_call_operand.vmem [shape: bf16[32,32], index: 8, kind: input, shape index: {}]   ;;  %s3467_s9 = inlined_call_operand.vmem [shape: f32[1,32], index: 9, kind: input, shape index: {}]   ;;  %s3468_s10 = inlined_call_operand.vmem [shape: bf16[32,64], index: 10, kind: input, shape index: {}]   ;;  %s3469_s11 = inlined_call_operand.vmem [shape: f32[1,64], index: 11, kind: input, shape index: {}]   ;;  %s3470_s12 = inlined_call_operand.vmem [shape: bf16[32,32], index: 12, kind: input, shape index: {}]   ;;  %s3471_s13 = inlined_call_operand.vmem [shape: f32[1,32], index: 13, kind: input, shape index: {}]   ;;  %s3472_s14 = inlined_call_operand.vmem [shape: f32[1,32], index: 14, kind: input, shape index: {}]   ;;  %s3473_s15 = inlined_call_operand.vmem [shape: f32[1,32], index: 15, kind: input, shape index: {}]   ;;  %s3474_s16 = inlined_call_operand.vmem [shape: bf16[32,64], index: 16, kind: input, shape index: {}]   ;;  %s3475_s17 = inlined_call_operand.hbm [shape: f32[1,64], index: 17, kind: input, shape index: {}]   ;;  %s3476_s18 = inlined_call_operand.vmem [shape: bf16[64,32], index: 18, kind: input, shape index: {}]   ;;  %s3477_s19 = inlined_call_operand.hbm [shape: f32[1,32], index: 19, kind: input, shape index: {}]   ;;  %s3478_s20 = inlined_call_operand.hbm [shape: f32[1,32], index: 20, kind: input, shape index: {}]   ;;  %s3479_s21 = inlined_call_operand.hbm [shape: f32[1,32], index: 21, kind: input, shape index: {}]   ;;  %s3480_s22 = inlined_call_operand.vmem [shape: f32[2,8,32], index: 22, kind: output, shape index: {}]  }
   0x1   :  { %3492 = sst [smem:[#allocation13_spill]] %s3458_s0 }
   0x2   :  { %3493 = sst [smem:[#allocation14_spill]] %s3459_s1 }
   0x3   :  { %3494 = sst [smem:[#allocation15_spill]] %s3460_s2 }
   0x4   :  { %3495 = sst [smem:[#allocation16_spill]] %s3461_s3 }
   0x5   :  { %3496 = sst [smem:[#allocation17_spill]] %s3462_s4 }
   0x6   :  { %3497 = sst [smem:[#allocation18_spill]] %s3463_s5 }
   0x7   :  { %3498 = sst [smem:[#allocation19_spill]] %s3464_s6 }
   0x8   :  { %3499 = sst [smem:[#allocation20_spill]] %s3473_s15 }
   0x9   :  { %3500 = sst [smem:[#allocation21_spill]] %s3480_s22 }
   0xa   :  { %27 = vsyncpa [#allocation3], 0 }
   0xb   :  { %28 = vsyncpa [#allocation5], 0 }
   0xc   :  { %29 = vsyncpa [#allocation8], 0  ;;  %s3024_s3 = smov 0  }
   0xd LB: > { %3501 = sst [smem:[#allocation12_spill]] %s2887_s3  ;;  %s3030_s28 = sadd.s32 4294967295, %s2887_s3   ;;  %s2887_s3 = sphi %s3024_s3, %s35_s3  }
   0xe   : > { %p2357_p0 = scmp.ge.s32.totalorder %s2887_s3, 1  ;;  %p538_p1 = scmp.lt.s32.totalorder %s2887_s3, 3 }
   0xf   : > { %p3484_p2 = scmp.eq.s32.totalorder %s3030_s28, 0  ;;  %s2889_s29 = smov [#allocation4]  }
  0x10   : > { %s610_s30 = sshll.u32 %s2889_s29, 4  ;;  %p3035_p3 = pnand %p2357_p0, %p538_p1  ;;  %s611_s30 = int_to_ptr.vmem [resolvable:$true] %s610_s30 }
  0x11   : > { %s2890_s0 = smov [#allocation2]   ;;  %s2891_s1 = smov [#allocation6]  }
  0x12   : > { %s3502_s4 = scalar_select %p3035_p3, 1, 0 }
  0x13   : > { %s596_s23 = sshll.u32 %s2890_s0, 4  ;;  %p2654_p4 = pneg %p3035_p3  ;;  %s3047_s23 = int_to_ptr.vmem [resolvable:$true] %s596_s23 }
  0x14   : > { %s621_s5 = sshll.u32 %s2891_s1, 4  ;;  %s2892_s6 = smov [#allocation7]   ;;  %s3049_s5 = int_to_ptr.vmem [resolvable:$true] %s621_s5 }
  0x15   : > { %p3043_p5 = pnand %p3484_p2, %p2654_p4  ;;  %s632_s25 = sshll.u32 %s2892_s6, 4  ;;  %s3051_s25 = int_to_ptr.vmem [resolvable:$true] %s632_s25 }
  0x16   : > { %s2757_s27 = scalar_lea.hbm %s3477_s19, 16 }
  0x17   : > { %p2758_p6 = scmp.ne.s32.totalorder %s3477_s19, %s2757_s27  ;;  %p3061_p7 = pneg %p3043_p5 }
  0x18   : > { %p2764_p10 = scmp.lt.u32.totalorder %s2757_s27, %s3477_s19 }
  0x19   : > { %p2760_p8 = pnand %p3061_p7, %p2758_p6 }
  0x1b   : > { %p2761_p9 = pneg %p2760_p8 }
  0x1d   : > { %p2766_p11 = pnand %p2764_p10, %p2761_p9 }
  0x1f   : > { %2769 = shalt.err (!%p2766_p11)
}
  0x20   : > { %s2770_s26 = scalar_lea.vmem %s611_s30, 16  ;;  %s2777_s2 = scalar_lea.vmem %s611_s30, 32 }
  0x21   : > { %p2771_p12 = scmp.ne.s32.totalorder %s611_s30, %s2770_s26  ;;  %p2778_p1 = scmp.lt.s32.totalorder %s611_s30, %s611_s30 }
  0x22   : > { %p2779_p4 = scmp.lt.s32.totalorder %s2777_s2, %s2770_s26 }
  0x23   : > { %p2773_p13 = pnand %p2771_p12, %p3061_p7 }
  0x24   : > { %p2780_p2 = por %p2779_p4, %p2778_p1 }
  0x25   : > { %p2774_p0 = pneg %p2773_p13 }
  0x27   : > { %p2781_p3 = pnand %p2780_p2, %p2774_p0 }
  0x29   : > { %2784 = shalt.err (!%p2781_p3)
}
  0x2a   : > { %2660 = dma.hbm_to_vmem [thread:$0]  (!%p3043_p5), %s3477_s19, 16, %s611_s30, [#allocation5]  }
  0x2b   : > { %s2785_s6 = scalar_lea.hbm %s3475_s17, 16 }
  0x2c   : > { %p2786_p6 = scmp.ne.s32.totalorder %s3475_s17, %s2785_s6  ;;  %p2792_p2 = scmp.lt.u32.totalorder %s2785_s6, %s3475_s17 }
  0x2e   : > { %p2788_p8 = pnand %p2786_p6, %p3061_p7 }
  0x30   : > { %p2789_p9 = pneg %p2788_p8 }
  0x32   : > { %p2794_p3 = pnand %p2792_p2, %p2789_p9 }
  0x34   : > { %2797 = shalt.err (!%p2794_p3)
}
  0x35   : > { %s2798_s30 = scalar_lea.vmem %s3047_s23, 16  ;;  %s2805_s15 = scalar_lea.vmem %s3047_s23, 32 }
  0x36   : > { %p2799_p10 = scmp.ne.s32.totalorder %s3047_s23, %s2798_s30  ;;  %p2806_p13 = scmp.lt.s32.totalorder %s3047_s23, %s3047_s23 }
  0x37   : > { %p2807_p0 = scmp.lt.s32.totalorder %s2805_s15, %s2798_s30 }
  0x38   : > { %p2801_p11 = pnand %p2799_p10, %p3061_p7 }
  0x39   : > { %p2808_p1 = por %p2807_p0, %p2806_p13 }
  0x3a   : > { %p2802_p12 = pneg %p2801_p11 }
  0x3c   : > { %p2809_p4 = pnand %p2808_p1, %p2802_p12 }
  0x3e   : > { %2812 = shalt.err (!%p2809_p4)
}
  0x3f   : > { %2657 = dma.hbm_to_vmem [thread:$0]  (!%p3043_p5), %s3475_s17, 16, %s3047_s23, [#allocation3]  }
  0x40   : > { %s2813_s27 = scalar_lea.hbm %s3478_s20, 16 }
  0x41   : > { %p2814_p6 = scmp.ne.s32.totalorder %s3478_s20, %s2813_s27  ;;  %p2820_p2 = scmp.lt.u32.totalorder %s2813_s27, %s3478_s20 }
  0x43   : > { %p2816_p8 = pnand %p2814_p6, %p3061_p7 }
  0x45   : > { %p2817_p9 = pneg %p2816_p8 }
  0x47   : > { %p2822_p3 = pnand %p2820_p2, %p2817_p9 }
  0x49   : > { %2825 = shalt.err (!%p2822_p3)
}
  0x4a   : > { %s2826_s23 = scalar_lea.vmem %s3049_s5, 16  ;;  %s2833_s15 = scalar_lea.vmem %s3049_s5, 32 }
  0x4b   : > { %p2827_p10 = scmp.ne.s32.totalorder %s3049_s5, %s2826_s23  ;;  %p2834_p13 = scmp.lt.s32.totalorder %s3049_s5, %s3049_s5 }
  0x4c   : > { %p2835_p0 = scmp.lt.s32.totalorder %s2833_s15, %s2826_s23 }
  0x4d   : > { %p2829_p11 = pnand %p2827_p10, %p3061_p7 }
  0x4e   : > { %p2836_p1 = por %p2835_p0, %p2834_p13 }
  0x4f   : > { %p2830_p12 = pneg %p2829_p11 }
  0x51   : > { %p2837_p4 = pnand %p2836_p1, %p2830_p12 }
  0x53   : > { %2840 = shalt.err (!%p2837_p4)
}
  0x54   : > { %2663 = dma.hbm_to_vmem [thread:$0]  (!%p3043_p5), %s3478_s20, 16, %s3049_s5, [#allocation5]  }
  0x55   : > { %s2841_s27 = scalar_lea.hbm %s3479_s21, 16 }
  0x56   : > { %p2842_p6 = scmp.ne.s32.totalorder %s3479_s21, %s2841_s27  ;;  %p2848_p2 = scmp.lt.u32.totalorder %s2841_s27, %s3479_s21 }
  0x58   : > { %p2844_p8 = pnand %p2842_p6, %p3061_p7 }
  0x5a   : > { %p2845_p9 = pneg %p2844_p8 }
  0x5c   : > { %p2850_p3 = pnand %p2848_p2, %p2845_p9 }
  0x5e   : > { %2853 = shalt.err (!%p2850_p3)
}
  0x5f   : > { %s2854_s5 = scalar_lea.vmem %s3051_s25, 16  ;;  %s2861_s23 = scalar_lea.vmem %s3051_s25, 32 }
  0x60   : > { %p2855_p10 = scmp.ne.s32.totalorder %s3051_s25, %s2854_s5  ;;  %p2862_p13 = scmp.lt.s32.totalorder %s3051_s25, %s3051_s25 }
  0x61   : > { %p2863_p0 = scmp.lt.s32.totalorder %s2861_s23, %s2854_s5 }
  0x62   : > { %p2857_p11 = pnand %p2855_p10, %p3061_p7 }
  0x63   : > { %p2864_p1 = por %p2863_p0, %p2862_p13 }
  0x64   : > { %p2858_p12 = pneg %p2857_p11 }
  0x66   : > { %p2865_p4 = pnand %p2864_p1, %p2858_p12 }
  0x68   : > { %2868 = shalt.err (!%p2865_p4)
}
  0x69   : > { %2666 = dma.hbm_to_vmem [thread:$0]  (!%p3043_p5), %s3479_s21, 16, %s3051_s25, [#allocation8]  }
  0x6a   : > { %p3505_p6 = scmp.ne.s32.totalorder %s3502_s4, 0 }
  0x6b   : > { %p3506_p7 = scmp.eq.s32.totalorder (!%p3505_p6), %s3030_s28, 0 }
  0x6c   : > { %660 = sbr.rel (%p3505_p6) target bundleno = 4105 (0x1009), region = 108 }
  0x73   : > { %2874 = dma.done.wait (%p3506_p7), [#allocation3], 16   ;;  %p3507_p8 = pmov %p3506_p7 }
  0x74   : > { %p3508_p9 = pmov %p3506_p7 }
  0x75   : > { %2876 = vsyncadd (%p3507_p8), [#allocation3], 4294967280 }
  0x76   : > { %2878 = dma.done.wait (%p3508_p9), [#allocation5], 32   ;;  %p3509_p2 = pmov %p3506_p7 }
  0x78   : > { %2880 = vsyncadd (%p3509_p2), [#allocation5], 4294967264  ;;  %p3510_p3 = pmov %p3509_p2 }
  0x79   : > { %p3511_p5 = pmov %p3509_p2 }
  0x7a   : > { %2882 = dma.done.wait (%p3510_p3), [#allocation8], 16  }
  0x7b   : > { %2884 = vsyncadd (%p3511_p5), [#allocation8], 4294967280  ;;  %p737_p10 = scmp.lt.s32.totalorder %s3030_s28, 1  ;;  %v2893_v0 = vmov 0.0   ;;  %vm2894_vm0 = vmmov 0   ;;  %s3512_s1 = sld [smem:[#allocation13_spill]] }
  0x7c   : > { %2482 = vmatprep.subr.bf16.mxu1 %v2893_v0  ;;  %2486 = vmatprep.mubr.msk.bf16.mxu1 %vm2894_vm0, %v2893_v0  ;;  %s3513_s27 = sld [smem:[#allocation15_spill]]  ;;  %vm778_vm1 = vcmask 261120   ;;  %s3514_s5 = sld [smem:[#allocation16_spill]]  ;;  %vm826_vm2 = vcmask 64512   ;;  %vm889_vm3 = vcmask 1043456   ;;  %vm1281_vm4 = vcmask 130048  }
  0x7d   : > { %s3529_s28 = smov (!%p737_p10, %s3030_s28), 1  ;;  %2496 = vmatprep.subr.bf16.mxu0 %v2893_v0  ;;  %2498 = vmatprep.mubr.msk.bf16.mxu0 %vm2894_vm0, %v2893_v0  ;;  %s2895_s23 = smov 120   ;;  %vm1283_vm5 = vcmask 195584   ;;  %vm2174_vm6 = vcmask 523264  }
  0x7e   : > { %s3486_s4 = sshll.u32 %s3529_s28, 3  ;;  %s2896_s15 = smov 96  }
  0x7f   : > { %s2897_s22 = smov 80   ;;  %s3490_s24 = smov 88  }
  0x80   : > { %s3491_s25 = smov 72   ;;  %s2902_s0 = smov 56  }
  0x81   : > { %s740_s29 = scalar_lea.vmem %s3512_s1, %s3486_s4  ;;  %s2900_s1 = smov 112  }
  0x82   : > { %v2703_v1 = vld [vmem:[%s3513_s27] sm:$0xff]   ;;  %v2704_v2 = vld [vmem:[%s3513_s27 + $0x8] sm:$0xff]   ;;  %s2903_s3 = smov 64   ;;  %s2904_s6 = smov 40  }
  0x83   : > { %2483 = vmatpush3.bf16.msra.mxu1 %v2703_v1  ;;  %v3185_v3 = vld [vmem:[%s740_s29] sm:$0xff]  ;;  %s2901_s29 = smov 104   ;;  %s2905_s26 = smov 48  }
  0x84   : > { %2484 = vmatprep.subr.bf16.mxu1 %v2893_v0  ;;  %v754_v4 = vpack.c.bf16 %v3185_v3, %v3185_v3  ;;  %v2372_v5 = vld [vmem:[%s3514_s5] ss:$0 sm:$0xff]  ;;  %s3489_s2 = smov 8   ;;  %s3487_s30 = smov 24  }
  0x87   : > { %2485 = vmatpush3.bf16.msra.mxu1 %v2704_v2 }
  0x88   : > { %2490 = vmatprep.subr.bf16.mxu1 %v2893_v0 }
  0x8a   : > { %2487 = vmatmul.mubr.msk.bf16.vlgmr.msra.gmra.mrb[0].mxu1 %vm778_vm1, %v754_v4 }
  0x8b   : > { %2492 = vmatprep.mubr.msk.bf16.mxu1 %vm2894_vm0, %v2893_v0 }
 0x15d   : > { %v816_v6 = vpop.f32.mrb[0].mxu1 }
 0x15e   : > { %v817_v7 = vadd.f32 %v2372_v5, %v816_v6  ;;  %v2488_v8 = vpop.f32.mrb[1].mxu1 }
 0x15f   : > { %v819_v9 = vpop.f32.mrb[2].mxu1 }
 0x160   : > { %v3197_v10 = vpack.c.bf16 %v817_v7, %v817_v7  ;;  %v2489_v11 = vpop.f32.mrb[3].mxu1 }
 0x162   : > { %935 = vrot.lane.b32.xlu1 %v3197_v10, %s2895_s23  ;;  %824 = vrot.lane.b32.xlu0 %v3197_v10, %s2896_s15 }
 0x166   : > { %1048 = vrot.lane.b32.xlu1 %v3197_v10, %s2897_s22  ;;  %937 = vrot.lane.b32.xlu0 %v3197_v10, %s3490_s24  ;;  %s3517_s24 = sld [smem:[#allocation14_spill]] }
 0x16a   : > { %1159 = vrot.lane.b32.xlu1 %v3197_v10, %s3491_s25  ;;  %1046 = vrot.lane.b32.xlu0 %v3197_v10, %s2900_s1  ;;  %s3523_s25 = smov 24  }
 0x16e   : > { %1157 = vrot.lane.b32.xlu0 %v3197_v10, %s2901_s29 }
 0x1d4   : > { %v825_v12 = vpop.permute.xlu0 %824  ;;  %v936_v15 = vpop.permute.xlu1 %935 }
 0x1d5   : > { %v831_v13 = vsel %vm826_vm2, %v825_v12, 0 }
 0x1d6   : > { %2491 = vmatpush3.bf16.xpose.msra.mxu1 %v831_v13 }
 0x1d7   : > { %2502 = vmatprep.subr.bf16.mxu1 %v2893_v0 }
 0x1d8   : > { %v938_v14 = vpop.permute.xlu0 %937  ;;  %v1049_v17 = vpop.permute.xlu1 %1048 }
 0x1d9   : > { %v943_v16 = vsel %vm826_vm2, %v938_v14, 0  ;;  %v1054_v18 = vsel %vm826_vm2, %v1049_v17, 0 }
 0x1dc   : > { %v1160_v19 = vpop.permute.xlu1 %1159  ;;  %v1047_v20 = vpop.permute.xlu0 %1046 }
 0x1dd   : > { %2493 = vmatmul.mubr.msk.bf16.vlgmr.msra.gmra.mrb[4].mxu1 %vm826_vm2, %v3197_v10  ;;  %v1165_v21 = vsel %vm826_vm2, %v1160_v19, 0 }
 0x1de   : > { %2503 = vmatpush3.bf16.xpose.msra.mxu1 %v943_v16  ;;  %2504 = vmatprep.mubr.msk.bf16.mxu1 %vm2894_vm0, %v2893_v0 }
 0x1df   : > { %2514 = vmatprep.subr.bf16.mxu1 %v2893_v0 }
 0x1e0   : > { %v1158_v22 = vpop.permute.xlu0 %1157 }
 0x1e5   : > { %2505 = vmatmul.mubr.msk.bf16.vlgmr.msra.gmra.mrb[8].mxu1 %vm826_vm2, %v936_v15 }
 0x1e6   : > { %2515 = vmatpush3.bf16.xpose.msra.mxu1 %v1054_v18  ;;  %2516 = vmatprep.mubr.msk.bf16.mxu1 %vm2894_vm0, %v2893_v0 }
 0x1e7   : > { %2526 = vmatprep.subr.bf16.mxu1 %v2893_v0 }
 0x1ed   : > { %2517 = vmatmul.mubr.msk.bf16.vlgmr.msra.gmra.mrb[12].mxu1 %vm826_vm2, %v1047_v20 }
 0x1ee   : > { %2527 = vmatpush3.bf16.xpose.msra.mxu1 %v1165_v21  ;;  %2528 = vmatprep.mubr.msk.bf16.mxu1 %vm2894_vm0, %v2893_v0 }
 0x1ef   : > { %2538 = vmatprep.subr.bf16.mxu1 %v2893_v0 }
 0x1f5   : > { %2529 = vmatmul.mubr.msk.bf16.vlgmr.msra.gmra.mrb[16].mxu1 %vm826_vm2, %v1158_v22 }
 0x1f6   : > { %2542 = vmatprep.mubr.msk.bf16.mxu1 %vm2894_vm0, %v2893_v0 }
 0x2b0   : > { %v867_v23 = vpop.f32.mrb[4].mxu1 }
 0x2b1   : > { %v873_v24 = vmul.f32 0.35355338, %v867_v23  ;;  %v2494_v25 = vpop.f32.mrb[5].mxu1 }
 0x2b2   : > { %v870_v26 = vpop.f32.mrb[6].mxu1 }
 0x2b3   : > { %v2495_v27 = vpop.f32.mrb[7].mxu1  ;;  %v874_v28 = vsel %vm826_vm2, %v873_v24, -inf }
 0x2b4   : > { %875 = vmax.xlane.f32.xlu1 %v874_v28 }
 0x2b8   : > { %v979_v29 = vpop.f32.mrb[8].mxu1 }
 0x2b9   : > { %v985_v30 = vmul.f32 0.35355338, %v979_v29  ;;  %v2506_v31 = vpop.f32.mrb[9].mxu1 }
 0x2ba   : > { %v982_v32 = vpop.f32.mrb[10].mxu1 }
 0x2bb   : > { %v2507_v33 = vpop.f32.mrb[11].mxu1  ;;  %v986_v34 = vsel %vm826_vm2, %v985_v30, -inf }
 0x2bc   : > { %987 = vmax.xlane.f32.xlu0 %v986_v34 }
 0x2c0   : > { %v1090_v35 = vpop.f32.mrb[12].mxu1 }
 0x2c1   : > { %v1096_v36 = vmul.f32 0.35355338, %v1090_v35  ;;  %v2518_v37 = vpop.f32.mrb[13].mxu1 }
 0x2c2   : > { %v1093_v38 = vpop.f32.mrb[14].mxu1 }
 0x2c3   : > { %v2519_v39 = vpop.f32.mrb[15].mxu1  ;;  %v1097_v40 = vsel %vm826_vm2, %v1096_v36, -inf }
 0x2c4   : > { %1098 = vmax.xlane.f32.xlu0 %v1097_v40 }
 0x2c5   : > { %996 = vrot.lane.b32.xlu1 %v3197_v10, %s2902_s0  ;;  %s3515_s0 = sld [smem:[#allocation17_spill]] }
 0x2c8   : > { %v1201_v41 = vpop.f32.mrb[16].mxu1 }
 0x2c9   : > { %v2530_v42 = vpop.f32.mrb[17].mxu1  ;;  %v1207_v45 = vmul.f32 0.35355338, %v1201_v41 }
 0x2ca   : > { %v1204_v43 = vpop.f32.mrb[18].mxu1 }
 0x2cb   : > { %v2531_v44 = vpop.f32.mrb[19].mxu1  ;;  %v1208_v46 = vsel %vm826_vm2, %v1207_v45, -inf  ;;  %v2705_v29 = vld [vmem:[%s3515_s0] sm:$0xff]   ;;  %v2706_v31 = vld [vmem:[%s3515_s0 + $0x8] sm:$0xff]  }
 0x2cc   : > { %2539 = vmatpush3.bf16.msra.mxu1 %v2705_v29 }
 0x2cd   : > { %2540 = vmatprep.subr.bf16.mxu1 %v2893_v0 }
 0x2d0   : > { %2541 = vmatpush3.bf16.msra.mxu1 %v2706_v31 }
 0x2d1   : > { %2554 = vmatprep.subr.bf16.mxu1 %v2893_v0 }
 0x2da   : > { %884 = vrot.lane.b32.xlu0 %v3197_v10, %s2903_s3  ;;  %s3518_s3 = sld [smem:[#allocation19_spill]] }
 0x2de   : > { %1218 = vrot.lane.b32.xlu0 %v3197_v10, %s2904_s6  ;;  %s3516_s6 = sld [smem:[#allocation18_spill]] }
 0x2e9   : > { %1209 = vmax.xlane.f32.xlu1 %v1208_v46 }
 0x2fa   : > { %1107 = vrot.lane.b32.xlu1 %v3197_v10, %s2905_s26  ;;  %s3488_s26 = smov 16  }
 0x341   : > { %v876_v47 = vpop.xlane.xlu1 %875 }
 0x342   : > { %v877_v48 = vsub.f32 %v873_v24, %v876_v47 }
 0x344   : > { %v878_v49 = vmul.f32 1.442695, %v877_v48 }
 0x345   : > { %v997_v59 = vpop.permute.xlu1 %996 }
 0x346   : > { %2719 = vpow2.f32 %v878_v49  ;;  %v1002_v63 = vsel %vm889_vm3, %v997_v59, 0 }
 0x349   : > { %v988_v50 = vpop.xlane.xlu0 %987 }
 0x34a   : > { %v989_v51 = vsub.f32 %v985_v30, %v988_v50 }
 0x34c   : > { %v990_v52 = vmul.f32 1.442695, %v989_v51 }
 0x34e   : > { %2721 = vpow2.f32 %v990_v52 }
 0x350   : > { %v2720_v56 = vpop.eup %2719 }
 0x351   : > { %v1099_v53 = vpop.xlane.xlu0 %1098  ;;  %v883_v61 = vpack.c.bf16 %v2720_v56, %v2720_v56  ;;  %v880_v1 = vsel %vm826_vm2, %v2720_v56, 0.0 }
 0x352   : > { %v1100_v54 = vsub.f32 %v1096_v36, %v1099_v53 }
 0x354   : > { %v1101_v55 = vmul.f32 1.442695, %v1100_v54  ;;  %v2384_v54 = vld [vmem:[%s3516_s6] ss:$0 sm:$0xff]  ;;  %s2426_s6 = sshll.u32 %s3529_s28, 4 }
 0x355   : > { %v885_v57 = vpop.permute.xlu0 %884  ;;  %s745_s4 = scalar_lea.vmem %s3517_s24, %s2426_s6  ;;  %s3524_s6 = sld [smem:[#allocation20_spill]] }
 0x356   : > { %2723 = vpow2.f32 %v1101_v55  ;;  %v891_v58 = vsel %vm889_vm3, %v885_v57, 0 }
 0x357   : > { %2497 = vmatpush3.bf16.msra.mxu0 %v891_v58 }
 0x358   : > { %v2722_v60 = vpop.eup %2721  ;;  %2508 = vmatprep.subr.bf16.mxu0 %v2893_v0 }
 0x359   : > { %v992_v62 = vsel %vm826_vm2, %v2722_v60, 0.0  ;;  %v995_v4 = vpack.c.bf16 %v2722_v60, %v2722_v60  ;;  %v1219_v11 = vpop.permute.xlu0 %1218 }
 0x35a   : > { %2499 = vmatmul.mubr.msk.bf16.vlgmr.msra.gmra.mrb[0].mxu0 %vm826_vm2, %v883_v61  ;;  %993 = vadd.xlane.f32.xlu1 %v992_v62  ;;  %v1224_v13 = vsel %vm889_vm3, %v1219_v11, 0  ;;  %v2707_v62 = vld [vmem:[%s3468_s10] sm:$0xff]  }
 0x35b   : > { %2509 = vmatpush3.bf16.msra.mxu0 %v1002_v63  ;;  %2510 = vmatprep.mubr.msk.bf16.mxu0 %vm2894_vm0, %v2893_v0 }
 0x35c   : > { %2520 = vmatprep.subr.bf16.mxu0 %v2893_v0 }
 0x35e   : > { %881 = vadd.xlane.f32.xlu1 %v880_v1 }
 0x360   : > { %v2724_v2 = vpop.eup %2723 }
 0x361   : > { %v1103_v5 = vsel %vm826_vm2, %v2724_v2, 0.0  ;;  %v1106_v12 = vpack.c.bf16 %v2724_v2, %v2724_v2 }
 0x362   : > { %1104 = vadd.xlane.f32.xlu0 %v1103_v5  ;;  %2511 = vmatmul.mubr.msk.bf16.vlgmr.msra.gmra.mrb[4].mxu0 %vm826_vm2, %v995_v4 }
 0x363   : > { %2522 = vmatprep.mubr.msk.bf16.mxu0 %vm2894_vm0, %v2893_v0 }
 0x376   : > { %v1210_v6 = vpop.xlane.xlu1 %1209 }
 0x377   : > { %v1211_v7 = vsub.f32 %v1207_v45, %v1210_v6  ;;  %v752_v6 = vld [vmem:[%s745_s4] sm:$0xff] }
 0x379   : > { %v1212_v8 = vmul.f32 1.442695, %v1211_v7  ;;  %v753_v7 = vld [vmem:[%s745_s4 + $0x8] sm:$0xff] }
 0x37a   : > { %v1108_v9 = vpop.permute.xlu1 %1107 }
 0x37b   : > { %2725 = vpow2.f32 %v1212_v8  ;;  %v1113_v10 = vsel %vm889_vm3, %v1108_v9, 0  ;;  %v1450_v8 = vpack.c.bf16 %v753_v7, %v752_v6  ;;  %v2709_v9 = vld [vmem:[%s3466_s8] sm:$0xff]  }
 0x37c   : > { %2521 = vmatpush3.bf16.msra.mxu0 %v1113_v10  ;;  %v2710_v10 = vld [vmem:[%s3466_s8 + $0x8] sm:$0xff]  }
 0x37d   : > { %2532 = vmatprep.subr.bf16.mxu0 %v2893_v0 }
 0x37f   : > { %2523 = vmatmul.mubr.msk.bf16.vlgmr.msra.gmra.mrb[8].mxu0 %vm826_vm2, %v1106_v12 }
 0x380   : > { %2533 = vmatpush3.bf16.msra.mxu0 %v1224_v13  ;;  %2534 = vmatprep.mubr.msk.bf16.mxu0 %vm2894_vm0, %v2893_v0 }
 0x381   : > { %2546 = vmatprep.subr.bf16.mxu0 %v2893_v0 }
 0x385   : > { %v2726_v14 = vpop.eup %2725 }
 0x386   : > { %v1214_v15 = vsel %vm826_vm2, %v2726_v14, 0.0  ;;  %v1217_v16 = vpack.c.bf16 %v2726_v14, %v2726_v14 }
 0x387   : > { %1215 = vadd.xlane.f32.xlu0 %v1214_v15  ;;  %v2388_v15 = vld [vmem:[%s3518_s3] ss:$0 sm:$0xff]  ;;  %s3522_s3 = smov 16  }
 0x388   : > { %2535 = vmatmul.mubr.msk.bf16.vlgmr.msra.gmra.mrb[12].mxu0 %vm826_vm2, %v1217_v16 }
 0x389   : > { %2550 = vmatprep.mubr.msk.bf16.mxu0 %vm2894_vm0, %v2893_v0  ;;  %2547 = vmatpush3.bf16.msra.mxu0 %v2709_v9 }
 0x38a   : > { %2548 = vmatprep.subr.bf16.mxu0 %v2893_v0 }
 0x38d   : > { %2549 = vmatpush3.bf16.msra.mxu0 %v2710_v10 }
 0x38e   : > { %2562 = vmatprep.subr.bf16.mxu0 %v2893_v0 }
 0x3e7   : > { %v994_v17 = vpop.xlane.xlu1 %993 }
 0x3e8   : > { %2727 = vrcp.f32 %v994_v17  ;;  %v2389_v17 = vld [vmem:[%s3465_s7] ss:$0 sm:$0xff] }
 0x3eb   : > { %v882_v44 = vpop.xlane.xlu1 %881 }
 0x3ef   : > { %v1105_v28 = vpop.xlane.xlu0 %1104 }
 0x3f0   : > { %2729 = vrcp.f32 %v1105_v28 }
 0x3f2   : > { %v2728_v22 = vpop.eup %2727 }
 0x3fa   : > { %v2730_v32 = vpop.eup %2729 }
 0x414   : > { %v1216_v30 = vpop.xlane.xlu0 %1215 }
 0x415   : > { %2731 = vrcp.f32 %v1216_v30  ;;  %v2390_v30 = vld [vmem:[%s3467_s9] ss:$0 sm:$0xff] }
 0x416   : > { %2733 = vrcp.f32 %v882_v44 }
 0x41f   : > { %v2732_v38 = vpop.eup %2731 }
 0x420   : > { %v2734_v45 = vpop.eup %2733 }
 0x42d   : > { %v927_v18 = vpop.f32.mrb[0].mxu0 }
 0x42e   : > { %v2500_v19 = vpop.f32.mrb[1].mxu0  ;;  %v934_v48 = vmul.f32 %v2734_v45, %v927_v18 }
 0x42f   : > { %v930_v20 = vpop.f32.mrb[2].mxu0 }
 0x430   : > { %v2501_v21 = vpop.f32.mrb[3].mxu0 }
 0x431   : > { %v2394_v21 = vld [vmem:[%s3469_s11] ss:$0 sm:$0xff] }
 0x435   : > { %v1038_v23 = vpop.f32.mrb[4].mxu0 }
 0x436   : > { %v1045_v24 = vmul.f32 %v2728_v22, %v1038_v23  ;;  %v2512_v25 = vpop.f32.mrb[5].mxu0 }
 0x437   : > { %v1041_v26 = vpop.f32.mrb[6].mxu0 }
 0x438   : > { %v2513_v27 = vpop.f32.mrb[7].mxu0  ;;  %1269 = vrot.lane.b32.xlu0 %v1045_v24, %s3489_s2 }
 0x452   : > { %v1149_v33 = vpop.f32.mrb[8].mxu0 }
 0x453   : > { %v1156_v34 = vmul.f32 %v2730_v32, %v1149_v33  ;;  %v2524_v35 = vpop.f32.mrb[9].mxu0 }
 0x454   : > { %v1152_v36 = vpop.f32.mrb[10].mxu0 }
 0x455   : > { %1273 = vrot.lane.b32.xlu1 %v1156_v34, %s3488_s26  ;;  %v2525_v37 = vpop.f32.mrb[11].mxu0 }
 0x45b   : > { %v1260_v39 = vpop.f32.mrb[12].mxu0 }
 0x45c   : > { %v1267_v40 = vmul.f32 %v2732_v38, %v1260_v39  ;;  %v2536_v41 = vpop.f32.mrb[13].mxu0 }
 0x45d   : > { %v1263_v42 = vpop.f32.mrb[14].mxu0 }
 0x45e   : > { %1277 = vrot.lane.b32.xlu1 %v1267_v40, %s3487_s30  ;;  %v2537_v43 = vpop.f32.mrb[15].mxu0 }
 0x4aa   : > { %v1270_v46 = vpop.permute.xlu0 %1269 }
 0x4ab   : > { %v1280_v49 = vsel %vm826_vm2, %v934_v48, %v1270_v46 }
 0x4c7   : > { %v1274_v47 = vpop.permute.xlu1 %1273 }
 0x4c8   : > { %v1282_v50 = vsel %vm1281_vm4, %v1280_v49, %v1274_v47 }
 0x4d0   : > { %v1278_v51 = vpop.permute.xlu1 %1277 }
 0x4d1   : > { %v1284_v52 = vsel %vm1283_vm5, %v1282_v50, %v1278_v51 }
 0x4d2   : > { %v1285_v53 = vpack.c.bf16 %v1284_v52, %v1284_v52 }
 0x4d4   : > { %2543 = vmatmul.mubr.msk.bf16.vlgmr.msra.gmra.mrb[20].mxu1 %vm778_vm1, %v1285_v53 }
 0x4d5   : > { %2558 = vmatprep.mubr.msk.bf16.mxu1 %vm2894_vm0, %v2893_v0  ;;  %2555 = vmatpush3.bf16.msra.mxu1 %v2707_v62 }
 0x4d6   : > { %2556 = vmatprep.subr.bf16.mxu1 %v2893_v0 }
 0x5a7   : > { %v1346_v55 = vpop.f32.mrb[20].mxu1 }
 0x5a8   : > { %v1347_v56 = vadd.f32 %v2384_v54, %v1346_v55  ;;  %v2544_v57 = vpop.f32.mrb[21].mxu1 }
 0x5a9   : > { %v1349_v58 = vpop.f32.mrb[22].mxu1 }
 0x5aa   : > { %v2545_v59 = vpop.f32.mrb[23].mxu1  ;;  %v1352_v60 = vadd.f32 %v1347_v56, %v3185_v3  ;;  %v2708_v3 = vld [vmem:[%s3468_s10 + $0x8] sm:$0xff]  }
 0x5ab   : > { %2557 = vmatpush3.bf16.msra.mxu1 %v2708_v3 }
 0x5ac   : > { %v1353_v61 = vsel %vm778_vm1, %v1352_v60, 0.0  ;;  %2568 = vmatprep.subr.bf16.mxu1 %v2893_v0 }
 0x5ad   : > { %1354 = vadd.xlane.f32.xlu0 %v1353_v61 }
 0x5ae   : > { %2559 = vmatmul.mubr.msk.bf16.vlgmr.msra.gmra.mrb[24].mxu1 %vm778_vm1, %v1450_v8 }
 0x5af   : > { %2570 = vmatprep.mubr.msk.bf16.mxu1 %vm2894_vm0, %v2893_v0 }
 0x63a   : > { %v1355_v63 = vpop.xlane.xlu0 %1354 }
 0x63b   : > { %v1357_v1 = vmul.f32 0.03125, %v1355_v63 }
 0x63d   : > { %v1358_v2 = vsub.f32 %v1352_v60, %v1357_v1 }
 0x63f   : > { %v1359_v4 = vmul.f32 %v1358_v2, %v1358_v2 }
 0x641   : > { %v1360_v5 = vsel %vm778_vm1, %v1359_v4, 0.0 }
 0x642   : > { %1361 = vadd.xlane.f32.xlu1 %v1360_v5 }
 0x681   : > { %v1511_v22 = vpop.f32.mrb[24].mxu1 }
 0x682   : > { %v1512_v23 = vadd.f32 %v2394_v21, %v1511_v22  ;;  %v2560_v24 = vpop.f32.mrb[25].mxu1 }
 0x683   : > { %v1514_v25 = vpop.f32.mrb[26].mxu1 }
 0x684   : > { %v1515_v26 = vadd.f32 %v2394_v21, %v1514_v25  ;;  %v2561_v27 = vpop.f32.mrb[27].mxu1 }
 0x686   : > { %v3328_v28 = vpack.c.bf16 %v1515_v26, %v1512_v23 }
 0x688   : > { %1629 = vrot.lane.b32.xlu0 %v3328_v28, %s2895_s23  ;;  %v1524_v29 = vsel %vm826_vm2, %v3328_v28, 0 }
 0x68c   : > { %1738 = vrot.lane.b32.xlu0 %v3328_v28, %s2900_s1 }
 0x690   : > { %1847 = vrot.lane.b32.xlu0 %v3328_v28, %s2901_s29 }
 0x6cf   : > { %v1362_v11 = vpop.xlane.xlu1 %1361 }
 0x6d0   : > { %v1363_v12 = vmul.f32 0.03125, %v1362_v11 }
 0x6d2   : > { %v1364_v13 = vadd.f32 1e-05, %v1363_v12 }
 0x6d4   : > { %2735 = vrsqrt.f32 %v1364_v13 }
 0x6de   : > { %v2736_v14 = vpop.eup %2735 }
 0x6df   : > { %v1366_v16 = vmul.f32 %v2736_v14, %v1358_v2 }
 0x6e1   : > { %v1374_v18 = vmul.f32 %v2388_v15, %v1366_v16 }
 0x6e3   : > { %v3318_v19 = vadd.f32 %v2389_v17, %v1374_v18 }
 0x6e5   : > { %v1383_v20 = vpack.c.bf16 %v3318_v19, %v3318_v19 }
 0x6e7   : > { %2551 = vmatmul.mubr.msk.bf16.vlgmr.msra.gmra.mrb[16].mxu0 %vm778_vm1, %v1383_v20 }
 0x6e8   : > { %2564 = vmatprep.mubr.msk.bf16.mxu0 %vm2894_vm0, %v2893_v0  ;;  %2563 = vmatpush3.bf16.xpose.msra.mxu0 %v1524_v29 }
 0x6e9   : > { %2574 = vmatprep.subr.bf16.mxu0 %v2893_v0 }
 0x6fa   : > { %v1630_v35 = vpop.permute.xlu0 %1629 }
 0x6fb   : > { %v1635_v38 = vsel %vm826_vm2, %v1630_v35, 0 }
 0x6fe   : > { %v1739_v39 = vpop.permute.xlu0 %1738 }
 0x6ff   : > { %v1744_v41 = vsel %vm826_vm2, %v1739_v39, 0 }
 0x702   : > { %v1848_v43 = vpop.permute.xlu0 %1847 }
 0x703   : > { %v1853_v45 = vsel %vm826_vm2, %v1848_v43, 0 }
 0x7ba   : > { %v1444_v31 = vpop.f32.mrb[16].mxu0 }
 0x7bb   : > { %v1445_v32 = vadd.f32 %v2390_v30, %v1444_v31  ;;  %v2552_v33 = vpop.f32.mrb[17].mxu0 }
 0x7bc   : > { %v1447_v34 = vpop.f32.mrb[18].mxu0 }
 0x7bd   : > { %v1518_v36 = vpack.c.bf16 %v1445_v32, %v1445_v32  ;;  %v2553_v37 = vpop.f32.mrb[19].mxu0 }
 0x7bf   : > { %1627 = vrot.lane.b32.xlu1 %v1518_v36, %s2895_s23  ;;  %2565 = vmatmul.mubr.msk.bf16.vlgmr.msra.gmra.mrb[20].mxu0 %vm826_vm2, %v1518_v36  ;;  %s3519_s23 = smov 72  }
 0x7c0   : > { %2575 = vmatpush3.bf16.xpose.msra.mxu0 %v1635_v38  ;;  %2576 = vmatprep.mubr.msk.bf16.mxu0 %vm2894_vm0, %v2893_v0 }
 0x7c1   : > { %2586 = vmatprep.subr.bf16.mxu0 %v2893_v0 }
 0x7c3   : > { %1736 = vrot.lane.b32.xlu1 %v1518_v36, %s2900_s1  ;;  %s3526_s1 = sld [smem:[#allocation21_spill]] }
 0x7c7   : > { %1845 = vrot.lane.b32.xlu1 %v1518_v36, %s2901_s29  ;;  %s3521_s29 = smov 8  }
 0x7cb   : > { %1578 = vrot.lane.b32.xlu1 %v3328_v28, %s2896_s15  ;;  %s3520_s15 = smov 88  }
 0x831   : > { %v1628_v40 = vpop.permute.xlu1 %1627 }
 0x832   : > { %2577 = vmatmul.mubr.msk.bf16.vlgmr.msra.gmra.mrb[24].mxu0 %vm826_vm2, %v1628_v40 }
 0x833   : > { %2587 = vmatpush3.bf16.xpose.msra.mxu0 %v1744_v41  ;;  %2588 = vmatprep.mubr.msk.bf16.mxu0 %vm2894_vm0, %v2893_v0 }
 0x834   : > { %2598 = vmatprep.subr.bf16.mxu0 %v2893_v0 }
 0x835   : > { %v1737_v42 = vpop.permute.xlu1 %1736 }
 0x839   : > { %v1846_v44 = vpop.permute.xlu1 %1845 }
 0x83a   : > { %2589 = vmatmul.mubr.msk.bf16.vlgmr.msra.gmra.mrb[28].mxu0 %vm826_vm2, %v1737_v42  ;;  %v2711_v42 = vld [vmem:[%s3470_s12] sm:$0xff]  }
 0x83b   : > { %2599 = vmatpush3.bf16.xpose.msra.mxu0 %v1853_v45  ;;  %2600 = vmatprep.mubr.msk.bf16.mxu0 %vm2894_vm0, %v2893_v0 }
 0x83c   : > { %2610 = vmatprep.subr.bf16.mxu0 %v2893_v0 }
 0x83d   : > { %v1579_v46 = vpop.permute.xlu1 %1578 }
 0x83e   : > { %2569 = vmatpush3.bf16.msra.mxu1 %v1579_v46 }
 0x83f   : > { %2580 = vmatprep.subr.bf16.mxu1 %v2893_v0 }
 0x842   : > { %2601 = vmatmul.mubr.msk.bf16.vlgmr.msra.gmra.mrb[32].mxu0 %vm826_vm2, %v1846_v44 }
 0x843   : > { %2614 = vmatprep.mubr.msk.bf16.mxu0 %vm2894_vm0, %v2893_v0  ;;  %2611 = vmatpush3.bf16.msra.mxu0 %v2711_v42 }
 0x844   : > { %2612 = vmatprep.subr.bf16.mxu0 %v2893_v0 }
 0x892   : > { %v1560_v47 = vpop.f32.mrb[20].mxu0 }
 0x893   : > { %v1566_v48 = vmul.f32 0.35355338, %v1560_v47  ;;  %v2566_v49 = vpop.f32.mrb[21].mxu0 }
 0x894   : > { %v1563_v50 = vpop.f32.mrb[22].mxu0 }
 0x895   : > { %v2567_v51 = vpop.f32.mrb[23].mxu0  ;;  %v1567_v52 = vsel %vm1281_vm4, %v1566_v48, -inf  ;;  %v2712_v50 = vld [vmem:[%s3470_s12 + $0x8] sm:$0xff]  }
 0x896   : > { %1568 = vmax.xlane.f32.xlu0 %v1567_v52  ;;  %2613 = vmatpush3.bf16.msra.mxu0 %v2712_v50 }
 0x897   : > { %2626 = vmatprep.subr.bf16.mxu0 %v2893_v0 }
 0x905   : > { %v1671_v53 = vpop.f32.mrb[24].mxu0 }
 0x906   : > { %v1677_v54 = vmul.f32 0.35355338, %v1671_v53  ;;  %v2578_v55 = vpop.f32.mrb[25].mxu0 }
 0x907   : > { %v1674_v56 = vpop.f32.mrb[26].mxu0 }
 0x908   : > { %v2579_v57 = vpop.f32.mrb[27].mxu0  ;;  %v1678_v58 = vsel %vm1281_vm4, %v1677_v54, -inf }
 0x909   : > { %1679 = vmax.xlane.f32.xlu1 %v1678_v58 }
 0x90d   : > { %v1780_v59 = vpop.f32.mrb[28].mxu0 }
 0x90e   : > { %v1786_v60 = vmul.f32 0.35355338, %v1780_v59  ;;  %v2590_v61 = vpop.f32.mrb[29].mxu0 }
 0x90f   : > { %v1783_v62 = vpop.f32.mrb[30].mxu0 }
 0x910   : > { %v2591_v63 = vpop.f32.mrb[31].mxu0  ;;  %v1787_v1 = vsel %vm1281_vm4, %v1786_v60, -inf }
 0x911   : > { %1788 = vmax.xlane.f32.xlu0 %v1787_v1 }
 0x915   : > { %v1889_v2 = vpop.f32.mrb[32].mxu0 }
 0x916   : > { %v1895_v4 = vmul.f32 0.35355338, %v1889_v2  ;;  %v2602_v5 = vpop.f32.mrb[33].mxu0 }
 0x917   : > { %v1892_v3 = vpop.f32.mrb[34].mxu0 }
 0x918   : > { %v2603_v6 = vpop.f32.mrb[35].mxu0  ;;  %v1896_v7 = vsel %vm1281_vm4, %v1895_v4, -inf }
 0x919   : > { %1897 = vmax.xlane.f32.xlu0 %v1896_v7 }
 0x91a   : > { %1797 = vrot.lane.b32.xlu1 %v3328_v28, %s2897_s22 }
 0x91e   : > { %1906 = vrot.lane.b32.xlu1 %v3328_v28, %s3519_s23  ;;  %s3525_s23 = sshll.u32 %s3529_s28, 3 }
 0x923   : > { %v1569_v8 = vpop.xlane.xlu0 %1568 }
 0x924   : > { %v1570_v9 = vsub.f32 %v1566_v48, %v1569_v8 }
 0x926   : > { %v1571_v10 = vmul.f32 1.442695, %v1570_v9 }
 0x928   : > { %2737 = vpow2.f32 %v1571_v10  ;;  %v2406_v10 = vld [vmem:[%s3471_s13] ss:$0 sm:$0xff] }
 0x92f   : > { %1688 = vrot.lane.b32.xlu0 %v3328_v28, %s3520_s15 }
 0x932   : > { %v2738_v11 = vpop.eup %2737 }
 0x933   : > { %v1576_v12 = vpack.c.bf16 %v2738_v11, %v2738_v11  ;;  %v1573_v34 = vsel %vm1281_vm4, %v2738_v11, 0.0 }
 0x935   : > { %2571 = vmatmul.mubr.msk.bf16.vlgmr.msra.gmra.mrb[28].mxu1 %vm1281_vm4, %v1576_v12 }
 0x936   : > { %2582 = vmatprep.mubr.msk.bf16.mxu1 %vm2894_vm0, %v2893_v0 }
 0x996   : > { %v1680_v13 = vpop.xlane.xlu1 %1679 }
 0x997   : > { %v1681_v14 = vsub.f32 %v1677_v54, %v1680_v13 }
 0x999   : > { %v1682_v15 = vmul.f32 1.442695, %v1681_v14 }
 0x99a   : > { %v1798_v28 = vpop.permute.xlu1 %1797 }
 0x99b   : > { %2739 = vpow2.f32 %v1682_v15 }
 0x99e   : > { %v1789_v16 = vpop.xlane.xlu0 %1788  ;;  %v1907_v32 = vpop.permute.xlu1 %1906 }
 0x99f   : > { %v1790_v17 = vsub.f32 %v1786_v60, %v1789_v16 }
 0x9a1   : > { %v1791_v18 = vmul.f32 1.442695, %v1790_v17 }
 0x9a3   : > { %2741 = vpow2.f32 %v1791_v18 }
 0x9a5   : > { %v2740_v20 = vpop.eup %2739 }
 0x9a6   : > { %v1898_v21 = vpop.xlane.xlu0 %1897  ;;  %v1684_v22 = vsel %vm1281_vm4, %v2740_v20, 0.0  ;;  %v1687_v26 = vpack.c.bf16 %v2740_v20, %v2740_v20 }
 0x9a7   : > { %v1899_v23 = vsub.f32 %v1895_v4, %v1898_v21  ;;  %1685 = vadd.xlane.f32.xlu0 %v1684_v22 }
 0x9a9   : > { %v1900_v24 = vmul.f32 1.442695, %v1899_v23 }
 0x9aa   : > { %v1689_v25 = vpop.permute.xlu0 %1688 }
 0x9ab   : > { %2743 = vpow2.f32 %v1900_v24  ;;  %2581 = vmatpush3.bf16.msra.mxu1 %v1689_v25  ;;  %v2713_v24 = vld [vmem:[%s3474_s16] sm:$0xff]   ;;  %v2714_v25 = vld [vmem:[%s3474_s16 + $0x8] sm:$0xff]  }
 0x9ac   : > { %2592 = vmatprep.subr.bf16.mxu1 %v2893_v0 }
 0x9ad   : > { %v2742_v27 = vpop.eup %2741 }
 0x9ae   : > { %2583 = vmatmul.mubr.msk.bf16.vlgmr.msra.gmra.mrb[32].mxu1 %vm1281_vm4, %v1687_v26  ;;  %v1793_v29 = vsel %vm1281_vm4, %v2742_v27, 0.0  ;;  %v1796_v30 = vpack.c.bf16 %v2742_v27, %v2742_v27  ;;  %v2716_v26 = vld [vmem:[%s3476_s18 + $0x8] sm:$0xff]  }
 0x9af   : > { %1794 = vadd.xlane.f32.xlu1 %v1793_v29  ;;  %2593 = vmatpush3.bf16.msra.mxu1 %v1798_v28 }
 0x9b0   : > { %2594 = vmatprep.mubr.msk.bf16.mxu1 %vm2894_vm0, %v2893_v0  ;;  %2604 = vmatprep.subr.bf16.mxu1 %v2893_v0 }
 0x9b5   : > { %v2744_v31 = vpop.eup %2743 }
 0x9b6   : > { %2595 = vmatmul.mubr.msk.bf16.vlgmr.msra.gmra.mrb[36].mxu1 %vm1281_vm4, %v1796_v30  ;;  %v1902_v33 = vsel %vm1281_vm4, %v2744_v31, 0.0  ;;  %v1905_v35 = vpack.c.bf16 %v2744_v31, %v2744_v31  ;;  %v2410_v31 = vld [vmem:[%s3472_s14] ss:$0 sm:$0xff] }
 0x9b7   : > { %2605 = vmatpush3.bf16.msra.mxu1 %v1907_v32  ;;  %1903 = vadd.xlane.f32.xlu0 %v1902_v33  ;;  %v2411_v33 = vld [vmem:[%s3524_s6] ss:$0 sm:$0xff] }
 0x9b8   : > { %2606 = vmatprep.mubr.msk.bf16.mxu1 %vm2894_vm0, %v2893_v0  ;;  %2618 = vmatprep.subr.bf16.mxu1 %v2893_v0 }
 0x9bb   : > { %1574 = vadd.xlane.f32.xlu0 %v1573_v34 }
 0x9be   : > { %2607 = vmatmul.mubr.msk.bf16.vlgmr.msra.gmra.mrb[40].mxu1 %vm1281_vm4, %v1905_v35 }
 0x9bf   : > { %2622 = vmatprep.mubr.msk.bf16.mxu1 %vm2894_vm0, %v2893_v0  ;;  %2619 = vmatpush3.bf16.msra.mxu1 %v2713_v24 }
 0x9c0   : > { %2620 = vmatprep.subr.bf16.mxu1 %v2893_v0 }
 0x9c3   : > { %2621 = vmatpush3.bf16.msra.mxu1 %v2714_v25 }
 0xa08   : > { %v1618_v36 = vpop.f32.mrb[28].mxu1 }
 0xa09   : > { %v2572_v37 = vpop.f32.mrb[29].mxu1 }
 0xa0a   : > { %v1621_v38 = vpop.f32.mrb[30].mxu1  ;;  %v2717_v37 = vld [vmem:[%s3476_s18 + $0x10] sm:$0xff]  }
 0xa0b   : > { %v2573_v39 = vpop.f32.mrb[31].mxu1  ;;  %v2718_v38 = vld [vmem:[%s3476_s18 + $0x18] sm:$0xff]  }
 0xa0c   : > { %v2412_v39 = vld [vmem:[#allocation2] ss:$0 sm:$0xff] }
 0xa34   : > { %v1686_v40 = vpop.xlane.xlu0 %1685 }
 0xa35   : > { %2745 = vrcp.f32 %v1686_v40 }
 0xa3c   : > { %v1795_v41 = vpop.xlane.xlu1 %1794 }
 0xa3d   : > { %2747 = vrcp.f32 %v1795_v41 }
 0xa3f   : > { %v2746_v43 = vpop.eup %2745 }
 0xa44   : > { %v1904_v48 = vpop.xlane.xlu0 %1903 }
 0xa45   : > { %2749 = vrcp.f32 %v1904_v48 }
 0xa47   : > { %v2748_v51 = vpop.eup %2747 }
 0xa48   : > { %v1575_v63 = vpop.xlane.xlu0 %1574 }
 0xa49   : > { %2751 = vrcp.f32 %v1575_v63  ;;  %v2422_v63 = vld [vmem:[#allocation6] ss:$0 sm:$0xff] }
 0xa4f   : > { %v2750_v57 = vpop.eup %2749 }
 0xa53   : > { %v2752_v1 = vpop.eup %2751 }
 0xa54   : > { %v1625_v4 = vmul.f32 %v2752_v1, %v1618_v36 }
 0xa81   : > { %v1728_v44 = vpop.f32.mrb[32].mxu1 }
 0xa82   : > { %v1735_v45 = vmul.f32 %v2746_v43, %v1728_v44  ;;  %v2584_v46 = vpop.f32.mrb[33].mxu1 }
 0xa83   : > { %v1731_v47 = vpop.f32.mrb[34].mxu1 }
 0xa84   : > { %1955 = vrot.lane.b32.xlu1 %v1735_v45, %s3521_s29  ;;  %v2585_v49 = vpop.f32.mrb[35].mxu1  ;;  %v2416_v47 = vld [vmem:[#allocation4] ss:$0 sm:$0xff]  ;;  %s749_s29 = scalar_lea.vmem %s3526_s1, %s3525_s23 }
 0xa89   : > { %v1837_v52 = vpop.f32.mrb[36].mxu1 }
 0xa8a   : > { %v1844_v53 = vmul.f32 %v2748_v51, %v1837_v52  ;;  %v2596_v54 = vpop.f32.mrb[37].mxu1 }
 0xa8b   : > { %v1840_v55 = vpop.f32.mrb[38].mxu1 }
 0xa8c   : > { %1959 = vrot.lane.b32.xlu0 %v1844_v53, %s3522_s3  ;;  %v2597_v56 = vpop.f32.mrb[39].mxu1 }
 0xa91   : > { %v1946_v58 = vpop.f32.mrb[40].mxu1 }
 0xa92   : > { %v1953_v59 = vmul.f32 %v2750_v57, %v1946_v58  ;;  %v2608_v60 = vpop.f32.mrb[41].mxu1 }
 0xa93   : > { %v1949_v61 = vpop.f32.mrb[42].mxu1 }
 0xa94   : > { %1963 = vrot.lane.b32.xlu1 %v1953_v59, %s3523_s25  ;;  %v2609_v62 = vpop.f32.mrb[43].mxu1 }
 0xaf6   : > { %v1956_v2 = vpop.permute.xlu1 %1955 }
 0xaf7   : > { %v1966_v3 = vsel %vm826_vm2, %v1625_v4, %v1956_v2  ;;  %v2423_v2 = vld [vmem:[#allocation7] ss:$0 sm:$0xff] }
 0xafe   : > { %v1960_v5 = vpop.permute.xlu0 %1959 }
 0xaff   : > { %v1967_v6 = vsel %vm1281_vm4, %v1966_v3, %v1960_v5 }
 0xb06   : > { %v1964_v7 = vpop.permute.xlu1 %1963 }
 0xb07   : > { %v1968_v8 = vsel %vm1283_vm5, %v1967_v6, %v1964_v7 }
 0xb08   : > { %v1969_v9 = vpack.c.bf16 %v1968_v8, %v1968_v8 }
 0xb0a   : > { %2615 = vmatmul.mubr.msk.bf16.vlgmr.msra.gmra.mrb[36].mxu0 %vm778_vm1, %v1969_v9 }
 0xb0b   : > { %2634 = vmatprep.mubr.msk.bf16.mxu0 %vm2894_vm0, %v2893_v0 }
 0xbdd   : > { %v2030_v11 = vpop.f32.mrb[36].mxu0 }
 0xbde   : > { %v2031_v12 = vadd.f32 %v2406_v10, %v2030_v11  ;;  %v2616_v13 = vpop.f32.mrb[37].mxu0 }
 0xbdf   : > { %v2033_v14 = vpop.f32.mrb[38].mxu0 }
 0xbe0   : > { %v2617_v15 = vpop.f32.mrb[39].mxu0  ;;  %v2036_v16 = vadd.f32 %v2031_v12, %v3318_v19  ;;  %v2715_v19 = vld [vmem:[%s3476_s18] sm:$0xff]  }
 0xbe1   : > { %2627 = vmatpush3.bf16.msra.mxu0 %v2715_v19 }
 0xbe2   : > { %v2037_v17 = vsel %vm778_vm1, %v2036_v16, 0.0  ;;  %2628 = vmatprep.subr.bf16.mxu0 %v2893_v0 }
 0xbe3   : > { %2038 = vadd.xlane.f32.xlu1 %v2037_v17 }
 0xbe5   : > { %2629 = vmatpush3.bf16.msra.mxu0 %v2716_v26 }
 0xbe6   : > { %2630 = vmatprep.subr.bf16.mxu0 %v2893_v0 }
 0xbe9   : > { %2631 = vmatpush3.bf16.msra.mxu0 %v2717_v37 }
 0xbea   : > { %2632 = vmatprep.subr.bf16.mxu0 %v2893_v0 }
 0xbed   : > { %2633 = vmatpush3.bf16.msra.mxu0 %v2718_v38 }
 0xc70   : > { %v2039_v18 = vpop.xlane.xlu1 %2038 }
 0xc71   : > { %v2040_v20 = vmul.f32 0.03125, %v2039_v18 }
 0xc73   : > { %v2041_v21 = vsub.f32 %v2036_v16, %v2040_v20 }
 0xc75   : > { %v2042_v22 = vmul.f32 %v2041_v21, %v2041_v21 }
 0xc77   : > { %v2043_v23 = vsel %vm778_vm1, %v2042_v22, 0.0 }
 0xc78   : > { %2044 = vadd.xlane.f32.xlu0 %v2043_v23 }
 0xd05   : > { %v2045_v27 = vpop.xlane.xlu0 %2044 }
 0xd06   : > { %v2046_v28 = vmul.f32 0.03125, %v2045_v27 }
 0xd08   : > { %v2047_v29 = vadd.f32 1e-05, %v2046_v28 }
 0xd0a   : > { %2753 = vrsqrt.f32 %v2047_v29 }
 0xd14   : > { %v2754_v30 = vpop.eup %2753 }
 0xd15   : > { %v2049_v32 = vmul.f32 %v2754_v30, %v2041_v21 }
 0xd17   : > { %v2057_v34 = vmul.f32 %v2410_v31, %v2049_v32 }
 0xd19   : > { %v2065_v35 = vadd.f32 %v2411_v33, %v2057_v34 }
 0xd1b   : > { %v2066_v36 = vpack.c.bf16 %v2065_v35, %v2065_v35 }
 0xd1d   : > { %2623 = vmatmul.mubr.msk.bf16.vlgmr.msra.gmra.mrb[44].mxu1 %vm778_vm1, %v2066_v36 }
 0xdf0   : > { %v2127_v40 = vpop.f32.mrb[44].mxu1 }
 0xdf1   : > { %v2128_v41 = vadd.f32 %v2412_v39, %v2127_v40  ;;  %v2624_v42 = vpop.f32.mrb[45].mxu1 }
 0xdf2   : > { %v2130_v43 = vpop.f32.mrb[46].mxu1 }
 0xdf3   : > { %v2133_v44 = vmax.f32 %v2128_v41, 0.0  ;;  %v2625_v45 = vpop.f32.mrb[47].mxu1 }
 0xdf5   : > { %v2134_v46 = vpack.c.bf16 %v2133_v44, %v2133_v44 }
 0xdf7   : > { %2635 = vmatmul.mubr.msk.bf16.vlgmr.msra.gmra.mrb[40].mxu0 %vm2174_vm6, %v2134_v46 }
 0xeca   : > { %v2212_v48 = vpop.f32.mrb[40].mxu0 }
 0xecb   : > { %v2213_v49 = vadd.f32 %v2416_v47, %v2212_v48  ;;  %v2636_v50 = vpop.f32.mrb[41].mxu0 }
 0xecc   : > { %v2215_v0 = vpop.f32.mrb[42].mxu0 }
 0xecd   : > { %v2637_v51 = vpop.f32.mrb[43].mxu0  ;;  %v2218_v52 = vadd.f32 %v2213_v49, %v2065_v35 }
 0xecf   : > { %v2219_v53 = vsel %vm778_vm1, %v2218_v52, 0.0 }
 0xed0   : > { %2220 = vadd.xlane.f32.xlu0 %v2219_v53 }
 0xf5d   : > { %v2221_v54 = vpop.xlane.xlu0 %2220 }
 0xf5e   : > { %v2222_v55 = vmul.f32 0.03125, %v2221_v54 }
 0xf60   : > { %v2223_v56 = vsub.f32 %v2218_v52, %v2222_v55 }
 0xf62   : > { %v2224_v57 = vmul.f32 %v2223_v56, %v2223_v56 }
 0xf64   : > { %v2225_v58 = vsel %vm778_vm1, %v2224_v57, 0.0 }
 0xf65   : > { %2226 = vadd.xlane.f32.xlu1 %v2225_v58 }
 0xff2   : > { %v2227_v59 = vpop.xlane.xlu1 %2226 }
 0xff3   : > { %v2228_v60 = vmul.f32 0.03125, %v2227_v59 }
 0xff5   : > { %v2229_v61 = vadd.f32 1e-05, %v2228_v60 }
 0xff7   : > { %2755 = vrsqrt.f32 %v2229_v61 }
0x1001   : > { %v2756_v62 = vpop.eup %2755 }
0x1002   : > { %v2231_v1 = vmul.f32 %v2756_v62, %v2223_v56 }
0x1004   : > { %v2239_v4 = vmul.f32 %v2422_v63, %v2231_v1 }
0x1006   : > { %v2247_v5 = vadd.f32 %v2423_v2, %v2239_v4 }
0x1008   : > { %2248 = vst.msk [vmem:[%s749_s29] sm:$0xff] %vm778_vm1, %v2247_v5 }
0x1009 PF: > { %s3527_s26 = sld [smem:[#allocation12_spill]] }
0x100f   : > { %s35_s3 = sadd.s32 1, %s3527_s26  }
0x1010   : > { %p32_p11 = scmp.ge.s32.totalorder %s35_s3, 4  }
0x1012   :  { %34 = sbr.rel (!%p32_p11) target bundleno = 13 (0xd), region = 158 }
0x1019   :  { %2268 = vsyncpa [#allocation3], 1 }
0x101a   :  { %2270 = vsyncpa [#allocation3 + $0x1], 1 }
0x101b   :  { %2271 = vsyncpa [#allocation5], 1 }
0x101c   :  { %2272 = vsyncpa [#allocation8], 1 }

</bundles_post_ra>
